<compile_context>
chip_gen: v6e
topology: v6e:2x2x1
jax: 0.10.0
libtpu: 0.0.40
codegen_flags: <defaults>
</compile_context>

<pallas_src>
import jax
import jax.numpy as jnp
from jax import lax
from jax.experimental import pallas as pl
from jax.experimental.pallas import tpu as pltpu


# PyTorch gate rows are grouped [i, f, g, o]; fused gate columns are [i | f | o | g]
# so the sigmoid lanes (i, f, o) are contiguous and g (tanh) is last.
_GATE_ORDER = (0, 1, 3, 2)


def _fuse_gates_w(w, H):
    """(4H, X) PyTorch weight -> (X, 4H) fused-gate matmul operand, cols [i|f|o|g]."""
    return jnp.concatenate([w[g * H:(g + 1) * H, :].T for g in _GATE_ORDER], axis=1)


def _fuse_gates_b(b_ih, b_hh, H):
    """Summed bias, reordered to fused-gate column order -> (4H,)."""
    b = (b_ih + b_hh).reshape(4, H)
    return jnp.concatenate([b[g] for g in _GATE_ORDER], axis=0)


# ----------------------------------------------------------------------------
# Fused kernel: bidirectional multi-layer LSTM recurrence + non_seq_proj +
# reparameterization, everything resident in VMEM, invoked once (no grid).
# ----------------------------------------------------------------------------
def _make_fused_kernel(L, T, B, H):
    G4 = 4 * H

    def kernel(*refs):
        idx = 0
        xg0_ref = refs[idx]; idx += 1            # (2, T*B, 4H): layer-0 x@W_ih + b (per dir)
        whh_ref = refs[idx]; idx += 1            # (2L, H, 4H): fused recurrent weights
        if L > 1:
            wrest_ref = refs[idx]                # ((L-1)*2, H, 8H): per (layer, source-half)
            brest_ref = refs[idx + 1]            # (L-1, 1, 8H)
            idx += 2
        else:
            wrest_ref = brest_ref = None
        wm_ref, wl_ref, bm_ref, bl_ref, noise_ref = refs[idx:idx + 5]; idx += 5
        zs_ref, mean_ref, std_ref = refs[idx:idx + 3]; idx += 3
        if L > 1:
            out_ref, xg_ref = refs[idx:idx + 2]  # (2, T*B, H), (2, T*B, 4H) VMEM scratch
        else:
            out_ref = xg_ref = None

        # sigmoid(x) = 0.5*(tanh(x/2) + 1): lanes [i|f|o] get 0.5 scale, [g] gets 1.0,
        # so ONE tanh over the whole fused gates vreg replaces 3 sigmoid + 1 tanh.
        # Constant is hoisted out of all loops (broadcasts are not CSE'd).
        lane = lax.broadcasted_iota(jnp.int32, (1, G4), 1)
        scale = jnp.where(lane < 3 * H, 0.5, 1.0).astype(jnp.float32)

        def cell_update(pre, h, c, w):
            # One fused (B,H)@(H,4H=128) MXU push per direction per step.
            gates = pre + jnp.dot(h, w, preferred_element_type=jnp.float32)
            t_all = jnp.tanh(gates * scale)
            i_g = 0.5 * (t_all[:, 0:H] + 1.0)
            f_g = 0.5 * (t_all[:, H:2 * H] + 1.0)
            o_g = 0.5 * (t_all[:, 2 * H:3 * H] + 1.0)
            g_g = t_all[:, 3 * H:]
            c_new = f_g * c + i_g * g_g
            h_new = o_g * jnp.tanh(c_new)
            return h_new, c_new

        cells = []
        for l in range(L):
            if l == 0:
                gates_src = xg0_ref
            else:
                # Hoisted input projection for layer l (both directions) as two
                # lane-dense GEMMs (M=T*B, N=8H) OFF the recurrent critical path.
                hf = out_ref[0]                  # (T*B, H): layer l-1 fwd hidden, time order
                hb = out_ref[1]                  # (T*B, H): layer l-1 bwd hidden, time order
                base = (l - 1) * 2
                xg_all = (jnp.dot(hf, wrest_ref[base + 0], preferred_element_type=jnp.float32)
                          + jnp.dot(hb, wrest_ref[base + 1], preferred_element_type=jnp.float32)
                          + brest_ref[l - 1])    # (T*B, 8H)
                xg_ref[0] = xg_all[:, :G4]       # 128-aligned lane split: cheap
                xg_ref[1] = xg_all[:, G4:]
                gates_src = xg_ref

            is_last = (l == L - 1)
            w_f = whh_ref[l * 2 + 0]
            w_b = whh_ref[l * 2 + 1]
            h_f = jnp.zeros((B, H), jnp.float32)
            c_f = jnp.zeros((B, H), jnp.float32)
            h_b = jnp.zeros((B, H), jnp.float32)
            c_b = jnp.zeros((B, H), jnp.float32)

            # Merged fwd/bwd recurrence: T steps instead of 2T, two independent
            # cell updates per step. Static unroll (T is small and static).
            for s in range(T):
                tf, tb = s, T - 1 - s
                pre_f = gates_src[0, tf * B:(tf + 1) * B, :]
                pre_b = gates_src[1, tb * B:(tb + 1) * B, :]
                h_f, c_f = cell_update(pre_f, h_f, c_f, w_f)
                h_b, c_b = cell_update(pre_b, h_b, c_b, w_b)
                if not is_last:
                    out_ref[0, tf * B:(tf + 1) * B, :] = h_f
                    out_ref[1, tb * B:(tb + 1) * B, :] = h_b

            cells.append(c_f)                    # final cell state, fwd (time T-1)
            cells.append(c_b)                    # final cell state, bwd (time 0)

        # non_seq_proj fused with chunk / exp(0.5*logvar) / reparameterization.
        # cells order [l0_fwd, l0_bwd, l1_fwd, l1_bwd, ...] matches PyTorch
        # cn.transpose(0, 1).flatten(-2); proj weight is pre-split per block.
        mean = bm_ref[...]
        logvar = bl_ref[...]
        for k in range(2 * L):
            mean = mean + jnp.dot(cells[k], wm_ref[k], preferred_element_type=jnp.float32)
            logvar = logvar + jnp.dot(cells[k], wl_ref[k], preferred_element_type=jnp.float32)
        std = jnp.exp(0.5 * logvar)
        mean_ref[...] = mean
        std_ref[...] = std
        zs_ref[...] = noise_ref[...] * std + mean

    return kernel


# ----------------------------------------------------------------------------
# Weight packing (plain XLA, tiny one-time ops).
# ----------------------------------------------------------------------------
def _pack_params(params):
    lstm = params["lstm"]
    L = len(lstm)
    H = lstm[0][0][1].shape[1]

    # Layer-0 input weights / pre-summed bias (consumed by the hoisted XLA einsum).
    wih0 = jnp.stack([_fuse_gates_w(lstm[0][d][0], H) for d in range(2)], 0)   # (2, I, 4H)
    b0 = jnp.stack([_fuse_gates_b(lstm[0][d][2], lstm[0][d][3], H)
                    for d in range(2)], 0)                                     # (2, 4H)

    # Fused recurrent weights for every (layer, direction).
    whh = jnp.stack([_fuse_gates_w(lstm[l][d][1], H)
                     for l in range(L) for d in range(2)], 0)                  # (2L, H, 4H)

    wrest = None
    brest = None
    if L > 1:
        wblocks, bblocks = [], []
        for l in range(1, L):
            for p in range(2):       # source input half: 0 = fwd features, 1 = bwd features
                wblocks.append(jnp.concatenate(
                    [_fuse_gates_w(lstm[l][d][0][:, p * H:(p + 1) * H], H)
                     for d in range(2)], axis=1))                              # (H, 8H)
            bblocks.append(jnp.concatenate(
                [_fuse_gates_b(lstm[l][d][2], lstm[l][d][3], H)
                 for d in range(2)], axis=0).reshape(1, 8 * H))                # (1, 8H)
        wrest = jnp.stack(wblocks, 0)                                          # ((L-1)*2, H, 8H)
        brest = jnp.stack(bblocks, 0)                                          # (L-1, 1, 8H)

    pw, pb = params["proj_w"], params["proj_b"]
    E = pw.shape[0]
    half = E // 2
    # cells feature order in z_flat: [l0_fwd | l0_bwd | l1_fwd | l1_bwd | ...]
    wm = jnp.stack([pw[:half, k * H:(k + 1) * H].T for k in range(2 * L)], 0)  # (2L, H, half)
    wl = jnp.stack([pw[half:, k * H:(k + 1) * H].T for k in range(2 * L)], 0)  # (2L, H, half)
    bm = pb[:half].reshape(1, half)
    bl = pb[half:].reshape(1, half)
    return dict(wih0=wih0, b0=b0, whh=whh, wrest=wrest, brest=brest,
                wm=wm, wl=wl, bm=bm, bl=bl, L=L, H=H, half=half)


# ----------------------------------------------------------------------------
# Parameter init (deterministic, PyTorch-style uniform(-1/sqrt(H), 1/sqrt(H))).
# ----------------------------------------------------------------------------
def init_params(key, hidden_size, num_layers, encoding_size, input_size=12):
    H = hidden_size
    bound = 1.0 / (H ** 0.5)
    n_keys = num_layers * 2 * 4 + 2
    keys = list(jax.random.split(key, n_keys))

    def u(k, shape, b=bound):
        return jax.random.uniform(k, shape, dtype=jnp.float32, minval=-b, maxval=b)

    idx = 0
    lstm = []
    for layer in range(num_layers):
        in_sz = input_size if layer == 0 else 2 * H
        dirs = []
        for _direction in range(2):   # 0: forward, 1: reverse
            w_ih = u(keys[idx], (4 * H, in_sz)); idx += 1
            w_hh = u(keys[idx], (4 * H, H)); idx += 1
            b_ih = u(keys[idx], (4 * H,)); idx += 1
            b_hh = u(keys[idx], (4 * H,)); idx += 1
            dirs.append((w_ih, w_hh, b_ih, b_hh))
        lstm.append(tuple(dirs))

    F = H * num_layers * 2
    pbnd = 1.0 / (F ** 0.5)
    proj_w = jax.random.uniform(keys[idx], (encoding_size, F), dtype=jnp.float32,
                                minval=-pbnd, maxval=pbnd); idx += 1
    proj_b = jax.random.uniform(keys[idx], (encoding_size,), dtype=jnp.float32,
                                minval=-pbnd, maxval=pbnd); idx += 1
    return {"lstm": lstm, "proj_w": proj_w, "proj_b": proj_b}


# ----------------------------------------------------------------------------
# Forward pass (encoder path; equivalent to forward(..., onlyz=True) output:
# z_sample plus the (mean, std) defining Normal(mean, std)).
# ----------------------------------------------------------------------------
def black_box_autoencoder_forward(params, x, noise):
    """x: (B, 12, T) NCW;  noise: (B, encoding_size // 2)."""
    B = x.shape[0]
    T = x.shape[2]
    packed = _pack_params(params)
    L, H, half = packed["L"], packed["H"], packed["half"]

    # x.permute(2, 0, 1): (B, 12, T) -> (T, B, 12); hoist the layer-0 input
    # projection (+bias) out of the recurrence as one lane-dense XLA GEMM.
    x_tbi = jnp.transpose(x, (2, 0, 1)).astype(jnp.float32)
    xg0 = jnp.einsum("tbi,dif->dtbf", x_tbi, packed["wih0"],
                     precision=lax.Precision.HIGHEST)
    xg0 = (xg0 + packed["b0"][:, None, None, :]).reshape(2, T * B, 4 * H)

    inputs = [xg0, packed["whh"]]
    if L > 1:
        inputs += [packed["wrest"], packed["brest"]]
    inputs += [packed["wm"], packed["wl"], packed["bm"], packed["bl"],
               noise.astype(jnp.float32)]

    scratch = []
    if L > 1:
        scratch = [pltpu.VMEM((2, T * B, H), jnp.float32),      # layer output (time-major rows)
                   pltpu.VMEM((2, T * B, 4 * H), jnp.float32)]  # hoisted input proj, layers >= 1

    kernel = _make_fused_kernel(L, T, B, H)
    z_sample, mean, std = pl.pallas_call(
        kernel,
        out_shape=(jax.ShapeDtypeStruct((B, half), jnp.float32),
                   jax.ShapeDtypeStruct((B, half), jnp.float32),
                   jax.ShapeDtypeStruct((B, half), jnp.float32)),
        scratch_shapes=scratch,
    )(*inputs)
    return z_sample, mean, std


# ----------------------------------------------------------------------------
# Pure-JAX reference (PyTorch nn.LSTM semantics) for a correctness check.
# ----------------------------------------------------------------------------
def _reference_forward(params, x, noise):
    lstm = params["lstm"]
    L = len(lstm)
    H = lstm[0][0][1].shape[1]
    x_tbi = jnp.transpose(x, (2, 0, 1)).astype(jnp.float32)   # (T, B, I)
    T, B = x_tbi.shape[0], x_tbi.shape[1]
    hp = lax.Precision.HIGHEST

    layer_in = x_tbi
    cells = []
    for l in range(L):
        outs = []
        for d in range(2):
            w_ih, w_hh, b_ih, b_hh = lstm[l][d]
            h = jnp.zeros((B, H), jnp.float32)
            c = jnp.zeros((B, H), jnp.float32)
            order = range(T) if d == 0 else range(T - 1, -1, -1)
            hs = [None] * T
            for t in order:
                g = (jnp.dot(layer_in[t], w_ih.T, precision=hp) + b_ih
                     + jnp.dot(h, w_hh.T, precision=hp) + b_hh)
                i_g = jax.nn.sigmoid(g[:, 0:H])
                f_g = jax.nn.sigmoid(g[:, H:2 * H])
                g_g = jnp.tanh(g[:, 2 * H:3 * H])
                o_g = jax.nn.sigmoid(g[:, 3 * H:4 * H])
                c = f_g * c + i_g * g_g
                h = o_g * jnp.tanh(c)
                hs[t] = h
            outs.append(jnp.stack(hs, 0))
            cells.append(c)
        layer_in = jnp.concatenate(outs, axis=-1)
    z = jnp.dot(jnp.concatenate(cells, axis=-1), params["proj_w"].T, precision=hp) + params["proj_b"]
    half = params["proj_w"].shape[0] // 2
    mean, logvar = z[:, :half], z[:, half:]
    std = jnp.exp(0.5 * logvar)
    return noise * std + mean, mean, std


if __name__ == "__main__":
    B, T = 2, 8
    hidden_size = 32
    num_layers = 2
    encoding_size = 16            # must be even (chunked into mean / log-var)

    key = jax.random.PRNGKey(0)
    kp, kx, kn = jax.random.split(key, 3)

    params = init_params(kp, hidden_size, num_layers, encoding_size)
    x = jax.random.normal(kx, (B, 12, T), dtype=jnp.float32)               # NCW
    noise = jax.random.normal(kn, (B, encoding_size // 2), dtype=jnp.float32)

    fwd = jax.jit(black_box_autoencoder_forward)
    z_sample, mean, std = fwd(params, x, noise)
    jax.block_until_ready((z_sample, mean, std))
    assert z_sample.shape == (B, encoding_size // 2)
    assert mean.shape == (B, encoding_size // 2)
    assert std.shape == (B, encoding_size // 2)

    # Correctness check against the pure-JAX PyTorch-semantics reference.
    z_r, m_r, s_r = jax.jit(_reference_forward)(params, x, noise)
    jax.block_until_ready((z_r, m_r, s_r))
    for a, b in ((z_sample, z_r), (mean, m_r), (std, s_r)):
        err = float(jnp.max(jnp.abs(a - b)))
        assert err < 2e-3, f"mismatch vs reference: max abs err {err}"

    print("KERNEL_OK")
</pallas_src>

<mosaic_0001>
module attributes {stable_mosaic.version = 11 : i64} {
  func.func @kernel(%arg0: memref<2x16x128xf32, #tpu.memory_space<vmem>>, %arg1: memref<4x32x128xf32, #tpu.memory_space<vmem>>, %arg2: memref<2x32x256xf32, #tpu.memory_space<vmem>>, %arg3: memref<1x1x256xf32, #tpu.memory_space<vmem>>, %arg4: memref<4x32x8xf32, #tpu.memory_space<vmem>>, %arg5: memref<4x32x8xf32, #tpu.memory_space<vmem>>, %arg6: memref<1x8xf32, #tpu.memory_space<vmem>>, %arg7: memref<1x8xf32, #tpu.memory_space<vmem>>, %arg8: memref<2x8xf32, #tpu.memory_space<vmem>>, %arg9: memref<2x8xf32, #tpu.memory_space<vmem>>, %arg10: memref<2x8xf32, #tpu.memory_space<vmem>>, %arg11: memref<2x8xf32, #tpu.memory_space<vmem>>, %arg12: memref<2x16x32xf32, #tpu.memory_space<vmem>>, %arg13: memref<2x16x128xf32, #tpu.memory_space<vmem>>) attributes {dimension_semantics = [], scalar_prefetch = 0 : i64, scratch_operands = 2 : i64, tpu.core_type = #tpu.core_type<tc>} {
    %0 = tpu.iota {dimensions = array<i32: 1>} : vector<1x128xi32>
    %c96_i32 = arith.constant 96 : i32
    %1 = vector.broadcast %c96_i32 : i32 to vector<1x128xi32>
    %2 = arith.cmpi slt, %0, %1 : vector<1x128xi32>
    %cst = arith.constant 5.000000e-01 : f32
    %cst_0 = arith.constant 1.000000e+00 : f32
    %3 = vector.broadcast %cst : f32 to vector<1x128xf32>
    %4 = vector.broadcast %cst_0 : f32 to vector<1x128xf32>
    %5 = arith.select %2, %3, %4 : vector<1x128xi1>, vector<1x128xf32>
    %c0 = arith.constant 0 : index
    %c0_1 = arith.constant 0 : index
    %c0_2 = arith.constant 0 : index
    %6 = vector.load %arg1[%c0, %c0_1, %c0_2] : memref<4x32x128xf32, #tpu.memory_space<vmem>>, vector<1x32x128xf32>
    %7 = vector.shape_cast %6 : vector<1x32x128xf32> to vector<32x128xf32>
    %c1 = arith.constant 1 : index
    %c0_3 = arith.constant 0 : index
    %c0_4 = arith.constant 0 : index
    %8 = vector.load %arg1[%c1, %c0_3, %c0_4] : memref<4x32x128xf32, #tpu.memory_space<vmem>>, vector<1x32x128xf32>
    %9 = vector.shape_cast %8 : vector<1x32x128xf32> to vector<32x128xf32>
    %cst_5 = arith.constant 0.000000e+00 : f32
    %10 = vector.broadcast %cst_5 : f32 to vector<2x32xf32>
    %cst_6 = arith.constant 0.000000e+00 : f32
    %11 = vector.broadcast %cst_6 : f32 to vector<2x32xf32>
    %cst_7 = arith.constant 0.000000e+00 : f32
    %12 = vector.broadcast %cst_7 : f32 to vector<2x32xf32>
    %cst_8 = arith.constant 0.000000e+00 : f32
    %13 = vector.broadcast %cst_8 : f32 to vector<2x32xf32>
    %c0_9 = arith.constant 0 : index
    %c0_10 = arith.constant 0 : index
    %c0_11 = arith.constant 0 : index
    %14 = vector.load %arg0[%c0_9, %c0_10, %c0_11] : memref<2x16x128xf32, #tpu.memory_space<vmem>>, vector<1x2x128xf32>
    %15 = vector.shape_cast %14 : vector<1x2x128xf32> to vector<2x128xf32>
    %c1_12 = arith.constant 1 : index
    %c14 = arith.constant 14 : index
    %c0_13 = arith.constant 0 : index
    %16 = vector.load %arg0[%c1_12, %c14, %c0_13] : memref<2x16x128xf32, #tpu.memory_space<vmem>>, vector<1x2x128xf32>
    %17 = vector.shape_cast %16 : vector<1x2x128xf32> to vector<2x128xf32>
    %cst_14 = arith.constant dense<0.000000e+00> : vector<2x128xf32>
    %18 = tpu.matmul %10, %7, %cst_14 {dimension_numbers = #tpu.dot_dimension_numbers<[1], [0], [0], [1], [0, 0, 1, 1], [], []>} : vector<2x32xf32>, vector<32x128xf32>, vector<2x128xf32> -> vector<2x128xf32>
    %19 = arith.addf %15, %18 : vector<2x128xf32>
    %20 = vector.broadcast %5 : vector<1x128xf32> to vector<2x128xf32>
    %21 = arith.mulf %19, %20 : vector<2x128xf32>
    %22 = math.tanh %21 : vector<2x128xf32>
    %23 = vector.extract_strided_slice %22 {offsets = [0, 0], sizes = [2, 32], strides = [1, 1]} : vector<2x128xf32> to vector<2x32xf32>
    %cst_15 = arith.constant 1.000000e+00 : f32
    %24 = vector.broadcast %cst_15 : f32 to vector<2x32xf32>
    %25 = arith.addf %23, %24 : vector<2x32xf32>
    %cst_16 = arith.constant 5.000000e-01 : f32
    %26 = vector.broadcast %cst_16 : f32 to vector<2x32xf32>
    %27 = arith.mulf %26, %25 : vector<2x32xf32>
    %28 = vector.extract_strided_slice %22 {offsets = [0, 32], sizes = [2, 32], strides = [1, 1]} : vector<2x128xf32> to vector<2x32xf32>
    %cst_17 = arith.constant 1.000000e+00 : f32
    %29 = vector.broadcast %cst_17 : f32 to vector<2x32xf32>
    %30 = arith.addf %28, %29 : vector<2x32xf32>
    %cst_18 = arith.constant 5.000000e-01 : f32
    %31 = vector.broadcast %cst_18 : f32 to vector<2x32xf32>
    %32 = arith.mulf %31, %30 : vector<2x32xf32>
    %33 = vector.extract_strided_slice %22 {offsets = [0, 64], sizes = [2, 32], strides = [1, 1]} : vector<2x128xf32> to vector<2x32xf32>
    %cst_19 = arith.constant 1.000000e+00 : f32
    %34 = vector.broadcast %cst_19 : f32 to vector<2x32xf32>
    %35 = arith.addf %33, %34 : vector<2x32xf32>
    %cst_20 = arith.constant 5.000000e-01 : f32
    %36 = vector.broadcast %cst_20 : f32 to vector<2x32xf32>
    %37 = arith.mulf %36, %35 : vector<2x32xf32>
    %38 = vector.extract_strided_slice %22 {offsets = [0, 96], sizes = [2, 32], strides = [1, 1]} : vector<2x128xf32> to vector<2x32xf32>
    %39 = arith.mulf %32, %11 : vector<2x32xf32>
    %40 = arith.mulf %27, %38 : vector<2x32xf32>
    %41 = arith.addf %39, %40 : vector<2x32xf32>
    %42 = math.tanh %41 : vector<2x32xf32>
    %43 = arith.mulf %37, %42 : vector<2x32xf32>
    %cst_21 = arith.constant dense<0.000000e+00> : vector<2x128xf32>
    %44 = tpu.matmul %12, %9, %cst_21 {dimension_numbers = #tpu.dot_dimension_numbers<[1], [0], [0], [1], [0, 0, 1, 1], [], []>} : vector<2x32xf32>, vector<32x128xf32>, vector<2x128xf32> -> vector<2x128xf32>
    %45 = arith.addf %17, %44 : vector<2x128xf32>
    %46 = vector.broadcast %5 : vector<1x128xf32> to vector<2x128xf32>
    %47 = arith.mulf %45, %46 : vector<2x128xf32>
    %48 = math.tanh %47 : vector<2x128xf32>
    %49 = vector.extract_strided_slice %48 {offsets = [0, 0], sizes = [2, 32], strides = [1, 1]} : vector<2x128xf32> to vector<2x32xf32>
    %cst_22 = arith.constant 1.000000e+00 : f32
    %50 = vector.broadcast %cst_22 : f32 to vector<2x32xf32>
    %51 = arith.addf %49, %50 : vector<2x32xf32>
    %cst_23 = arith.constant 5.000000e-01 : f32
    %52 = vector.broadcast %cst_23 : f32 to vector<2x32xf32>
    %53 = arith.mulf %52, %51 : vector<2x32xf32>
    %54 = vector.extract_strided_slice %48 {offsets = [0, 32], sizes = [2, 32], strides = [1, 1]} : vector<2x128xf32> to vector<2x32xf32>
    %cst_24 = arith.constant 1.000000e+00 : f32
    %55 = vector.broadcast %cst_24 : f32 to vector<2x32xf32>
    %56 = arith.addf %54, %55 : vector<2x32xf32>
    %cst_25 = arith.constant 5.000000e-01 : f32
    %57 = vector.broadcast %cst_25 : f32 to vector<2x32xf32>
    %58 = arith.mulf %57, %56 : vector<2x32xf32>
    %59 = vector.extract_strided_slice %48 {offsets = [0, 64], sizes = [2, 32], strides = [1, 1]} : vector<2x128xf32> to vector<2x32xf32>
    %cst_26 = arith.constant 1.000000e+00 : f32
    %60 = vector.broadcast %cst_26 : f32 to vector<2x32xf32>
    %61 = arith.addf %59, %60 : vector<2x32xf32>
    %cst_27 = arith.constant 5.000000e-01 : f32
    %62 = vector.broadcast %cst_27 : f32 to vector<2x32xf32>
    %63 = arith.mulf %62, %61 : vector<2x32xf32>
    %64 = vector.extract_strided_slice %48 {offsets = [0, 96], sizes = [2, 32], strides = [1, 1]} : vector<2x128xf32> to vector<2x32xf32>
    %65 = arith.mulf %58, %13 : vector<2x32xf32>
    %66 = arith.mulf %53, %64 : vector<2x32xf32>
    %67 = arith.addf %65, %66 : vector<2x32xf32>
    %68 = math.tanh %67 : vector<2x32xf32>
    %69 = arith.mulf %63, %68 : vector<2x32xf32>
    %c0_28 = arith.constant 0 : index
    %c0_29 = arith.constant 0 : index
    %c0_30 = arith.constant 0 : index
    %70 = vector.load %arg12[%c0_28, %c0_29, %c0_30] : memref<2x16x32xf32, #tpu.memory_space<vmem>>, vector<1x2x32xf32>
    %71 = vector.shape_cast %70 : vector<1x2x32xf32> to vector<2x32xf32>
    %72 = vector.shape_cast %43 : vector<2x32xf32> to vector<1x2x32xf32>
    tpu.vector_store %arg12[%c0_28, %c0_29, %c0_30], %72 {strides = array<i32>} : memref<2x16x32xf32, #tpu.memory_space<vmem>>, vector<1x2x32xf32>,
    %c1_31 = arith.constant 1 : index
    %c14_32 = arith.constant 14 : index
    %c0_33 = arith.constant 0 : index
    %73 = vector.load %arg12[%c1_31, %c14_32, %c0_33] : memref<2x16x32xf32, #tpu.memory_space<vmem>>, vector<1x2x32xf32>
    %74 = vector.shape_cast %73 : vector<1x2x32xf32> to vector<2x32xf32>
    %75 = vector.shape_cast %69 : vector<2x32xf32> to vector<1x2x32xf32>
    tpu.vector_store %arg12[%c1_31, %c14_32, %c0_33], %75 {strides = array<i32>} : memref<2x16x32xf32, #tpu.memory_space<vmem>>, vector<1x2x32xf32>,
    %c0_34 = arith.constant 0 : index
    %c2 = arith.constant 2 : index
    %c0_35 = arith.constant 0 : index
    %76 = vector.load %arg0[%c0_34, %c2, %c0_35] : memref<2x16x128xf32, #tpu.memory_space<vmem>>, vector<1x2x128xf32>
    %77 = vector.shape_cast %76 : vector<1x2x128xf32> to vector<2x128xf32>
    %c1_36 = arith.constant 1 : index
    %c12 = arith.constant 12 : index
    %c0_37 = arith.constant 0 : index
    %78 = vector.load %arg0[%c1_36, %c12, %c0_37] : memref<2x16x128xf32, #tpu.memory_space<vmem>>, vector<1x2x128xf32>
    %79 = vector.shape_cast %78 : vector<1x2x128xf32> to vector<2x128xf32>
    %cst_38 = arith.constant dense<0.000000e+00> : vector<2x128xf32>
    %80 = tpu.matmul %43, %7, %cst_38 {dimension_numbers = #tpu.dot_dimension_numbers<[1], [0], [0], [1], [0, 0, 1, 1], [], []>} : vector<2x32xf32>, vector<32x128xf32>, vector<2x128xf32> -> vector<2x128xf32>
    %81 = arith.addf %77, %80 : vector<2x128xf32>
    %82 = vector.broadcast %5 : vector<1x128xf32> to vector<2x128xf32>
    %83 = arith.mulf %81, %82 : vector<2x128xf32>
    %84 = math.tanh %83 : vector<2x128xf32>
    %85 = vector.extract_strided_slice %84 {offsets = [0, 0], sizes = [2, 32], strides = [1, 1]} : vector<2x128xf32> to vector<2x32xf32>
    %cst_39 = arith.constant 1.000000e+00 : f32
    %86 = vector.broadcast %cst_39 : f32 to vector<2x32xf32>
    %87 = arith.addf %85, %86 : vector<2x32xf32>
    %cst_40 = arith.constant 5.000000e-01 : f32
    %88 = vector.broadcast %cst_40 : f32 to vector<2x32xf32>
    %89 = arith.mulf %88, %87 : vector<2x32xf32>
    %90 = vector.extract_strided_slice %84 {offsets = [0, 32], sizes = [2, 32], strides = [1, 1]} : vector<2x128xf32> to vector<2x32xf32>
    %cst_41 = arith.constant 1.000000e+00 : f32
    %91 = vector.broadcast %cst_41 : f32 to vector<2x32xf32>
    %92 = arith.addf %90, %91 : vector<2x32xf32>
    %cst_42 = arith.constant 5.000000e-01 : f32
    %93 = vector.broadcast %cst_42 : f32 to vector<2x32xf32>
    %94 = arith.mulf %93, %92 : vector<2x32xf32>
    %95 = vector.extract_strided_slice %84 {offsets = [0, 64], sizes = [2, 32], strides = [1, 1]} : vector<2x128xf32> to vector<2x32xf32>
    %cst_43 = arith.constant 1.000000e+00 : f32
    %96 = vector.broadcast %cst_43 : f32 to vector<2x32xf32>
    %97 = arith.addf %95, %96 : vector<2x32xf32>
    %cst_44 = arith.constant 5.000000e-01 : f32
    %98 = vector.broadcast %cst_44 : f32 to vector<2x32xf32>
    %99 = arith.mulf %98, %97 : vector<2x32xf32>
    %100 = vector.extract_strided_slice %84 {offsets = [0, 96], sizes = [2, 32], strides = [1, 1]} : vector<2x128xf32> to vector<2x32xf32>
    %101 = arith.mulf %94, %41 : vector<2x32xf32>
    %102 = arith.mulf %89, %100 : vector<2x32xf32>
    %103 = arith.addf %101, %102 : vector<2x32xf32>
    %104 = math.tanh %103 : vector<2x32xf32>
    %105 = arith.mulf %99, %104 : vector<2x32xf32>
    %cst_45 = arith.constant dense<0.000000e+00> : vector<2x128xf32>
    %106 = tpu.matmul %69, %9, %cst_45 {dimension_numbers = #tpu.dot_dimension_numbers<[1], [0], [0], [1], [0, 0, 1, 1], [], []>} : vector<2x32xf32>, vector<32x128xf32>, vector<2x128xf32> -> vector<2x128xf32>
    %107 = arith.addf %79, %106 : vector<2x128xf32>
    %108 = vector.broadcast %5 : vector<1x128xf32> to vector<2x128xf32>
    %109 = arith.mulf %107, %108 : vector<2x128xf32>
    %110 = math.tanh %109 : vector<2x128xf32>
    %111 = vector.extract_strided_slice %110 {offsets = [0, 0], sizes = [2, 32], strides = [1, 1]} : vector<2x128xf32> to vector<2x32xf32>
    %cst_46 = arith.constant 1.000000e+00 : f32
    %112 = vector.broadcast %cst_46 : f32 to vector<2x32xf32>
    %113 = arith.addf %111, %112 : vector<2x32xf32>
    %cst_47 = arith.constant 5.000000e-01 : f32
    %114 = vector.broadcast %cst_47 : f32 to vector<2x32xf32>
    %115 = arith.mulf %114, %113 : vector<2x32xf32>
    %116 = vector.extract_strided_slice %110 {offsets = [0, 32], sizes = [2, 32], strides = [1, 1]} : vector<2x128xf32> to vector<2x32xf32>
    %cst_48 = arith.constant 1.000000e+00 : f32
    %117 = vector.broadcast %cst_48 : f32 to vector<2x32xf32>
    %118 = arith.addf %116, %117 : vector<2x32xf32>
    %cst_49 = arith.constant 5.000000e-01 : f32
    %119 = vector.broadcast %cst_49 : f32 to vector<2x32xf32>
    %120 = arith.mulf %119, %118 : vector<2x32xf32>
    %121 = vector.extract_strided_slice %110 {offsets = [0, 64], sizes = [2, 32], strides = [1, 1]} : vector<2x128xf32> to vector<2x32xf32>
    %cst_50 = arith.constant 1.000000e+00 : f32
    %122 = vector.broadcast %cst_50 : f32 to vector<2x32xf32>
    %123 = arith.addf %121, %122 : vector<2x32xf32>
    %cst_51 = arith.constant 5.000000e-01 : f32
    %124 = vector.broadcast %cst_51 : f32 to vector<2x32xf32>
    %125 = arith.mulf %124, %123 : vector<2x32xf32>
    %126 = vector.extract_strided_slice %110 {offsets = [0, 96], sizes = [2, 32], strides = [1, 1]} : vector<2x128xf32> to vector<2x32xf32>
    %127 = arith.mulf %120, %67 : vector<2x32xf32>
    %128 = arith.mulf %115, %126 : vector<2x32xf32>
    %129 = arith.addf %127, %128 : vector<2x32xf32>
    %130 = math.tanh %129 : vector<2x32xf32>
    %131 = arith.mulf %125, %130 : vector<2x32xf32>
    %c0_52 = arith.constant 0 : index
    %c2_53 = arith.constant 2 : index
    %c0_54 = arith.constant 0 : index
    %132 = vector.load %arg12[%c0_52, %c2_53, %c0_54] : memref<2x16x32xf32, #tpu.memory_space<vmem>>, vector<1x2x32xf32>
    %133 = vector.shape_cast %132 : vector<1x2x32xf32> to vector<2x32xf32>
    %134 = vector.shape_cast %105 : vector<2x32xf32> to vector<1x2x32xf32>
    tpu.vector_store %arg12[%c0_52, %c2_53, %c0_54], %134 {strides = array<i32>} : memref<2x16x32xf32, #tpu.memory_space<vmem>>, vector<1x2x32xf32>,
    %c1_55 = arith.constant 1 : index
    %c12_56 = arith.constant 12 : index
    %c0_57 = arith.constant 0 : index
    %135 = vector.load %arg12[%c1_55, %c12_56, %c0_57] : memref<2x16x32xf32, #tpu.memory_space<vmem>>, vector<1x2x32xf32>
    %136 = vector.shape_cast %135 : vector<1x2x32xf32> to vector<2x32xf32>
    %137 = vector.shape_cast %131 : vector<2x32xf32> to vector<1x2x32xf32>
    tpu.vector_store %arg12[%c1_55, %c12_56, %c0_57], %137 {strides = array<i32>} : memref<2x16x32xf32, #tpu.memory_space<vmem>>, vector<1x2x32xf32>,
    %c0_58 = arith.constant 0 : index
    %c4 = arith.constant 4 : index
    %c0_59 = arith.constant 0 : index
    %138 = vector.load %arg0[%c0_58, %c4, %c0_59] : memref<2x16x128xf32, #tpu.memory_space<vmem>>, vector<1x2x128xf32>
    %139 = vector.shape_cast %138 : vector<1x2x128xf32> to vector<2x128xf32>
    %c1_60 = arith.constant 1 : index
    %c10 = arith.constant 10 : index
    %c0_61 = arith.constant 0 : index
    %140 = vector.load %arg0[%c1_60, %c10, %c0_61] : memref<2x16x128xf32, #tpu.memory_space<vmem>>, vector<1x2x128xf32>
    %141 = vector.shape_cast %140 : vector<1x2x128xf32> to vector<2x128xf32>
    %cst_62 = arith.constant dense<0.000000e+00> : vector<2x128xf32>
    %142 = tpu.matmul %105, %7, %cst_62 {dimension_numbers = #tpu.dot_dimension_numbers<[1], [0], [0], [1], [0, 0, 1, 1], [], []>} : vector<2x32xf32>, vector<32x128xf32>, vector<2x128xf32> -> vector<2x128xf32>
    %143 = arith.addf %139, %142 : vector<2x128xf32>
    %144 = vector.broadcast %5 : vector<1x128xf32> to vector<2x128xf32>
    %145 = arith.mulf %143, %144 : vector<2x128xf32>
    %146 = math.tanh %145 : vector<2x128xf32>
    %147 = vector.extract_strided_slice %146 {offsets = [0, 0], sizes = [2, 32], strides = [1, 1]} : vector<2x128xf32> to vector<2x32xf32>
    %cst_63 = arith.constant 1.000000e+00 : f32
    %148 = vector.broadcast %cst_63 : f32 to vector<2x32xf32>
    %149 = arith.addf %147, %148 : vector<2x32xf32>
    %cst_64 = arith.constant 5.000000e-01 : f32
    %150 = vector.broadcast %cst_64 : f32 to vector<2x32xf32>
    %151 = arith.mulf %150, %149 : vector<2x32xf32>
    %152 = vector.extract_strided_slice %146 {offsets = [0, 32], sizes = [2, 32], strides = [1, 1]} : vector<2x128xf32> to vector<2x32xf32>
    %cst_65 = arith.constant 1.000000e+00 : f32
    %153 = vector.broadcast %cst_65 : f32 to vector<2x32xf32>
    %154 = arith.addf %152, %153 : vector<2x32xf32>
    %cst_66 = arith.constant 5.000000e-01 : f32
    %155 = vector.broadcast %cst_66 : f32 to vector<2x32xf32>
    %156 = arith.mulf %155, %154 : vector<2x32xf32>
    %157 = vector.extract_strided_slice %146 {offsets = [0, 64], sizes = [2, 32], strides = [1, 1]} : vector<2x128xf32> to vector<2x32xf32>
    %cst_67 = arith.constant 1.000000e+00 : f32
    %158 = vector.broadcast %cst_67 : f32 to vector<2x32xf32>
    %159 = arith.addf %157, %158 : vector<2x32xf32>
    %cst_68 = arith.constant 5.000000e-01 : f32
    %160 = vector.broadcast %cst_68 : f32 to vector<2x32xf32>
    %161 = arith.mulf %160, %159 : vector<2x32xf32>
    %162 = vector.extract_strided_slice %146 {offsets = [0, 96], sizes = [2, 32], strides = [1, 1]} : vector<2x128xf32> to vector<2x32xf32>
    %163 = arith.mulf %156, %103 : vector<2x32xf32>
    %164 = arith.mulf %151, %162 : vector<2x32xf32>
    %165 = arith.addf %163, %164 : vector<2x32xf32>
    %166 = math.tanh %165 : vector<2x32xf32>
    %167 = arith.mulf %161, %166 : vector<2x32xf32>
    %cst_69 = arith.constant dense<0.000000e+00> : vector<2x128xf32>
    %168 = tpu.matmul %131, %9, %cst_69 {dimension_numbers = #tpu.dot_dimension_numbers<[1], [0], [0], [1], [0, 0, 1, 1], [], []>} : vector<2x32xf32>, vector<32x128xf32>, vector<2x128xf32> -> vector<2x128xf32>
    %169 = arith.addf %141, %168 : vector<2x128xf32>
    %170 = vector.broadcast %5 : vector<1x128xf32> to vector<2x128xf32>
    %171 = arith.mulf %169, %170 : vector<2x128xf32>
    %172 = math.tanh %171 : vector<2x128xf32>
    %173 = vector.extract_strided_slice %172 {offsets = [0, 0], sizes = [2, 32], strides = [1, 1]} : vector<2x128xf32> to vector<2x32xf32>
    %cst_70 = arith.constant 1.000000e+00 : f32
    %174 = vector.broadcast %cst_70 : f32 to vector<2x32xf32>
    %175 = arith.addf %173, %174 : vector<2x32xf32>
    %cst_71 = arith.constant 5.000000e-01 : f32
    %176 = vector.broadcast %cst_71 : f32 to vector<2x32xf32>
    %177 = arith.mulf %176, %175 : vector<2x32xf32>
    %178 = vector.extract_strided_slice %172 {offsets = [0, 32], sizes = [2, 32], strides = [1, 1]} : vector<2x128xf32> to vector<2x32xf32>
    %cst_72 = arith.constant 1.000000e+00 : f32
    %179 = vector.broadcast %cst_72 : f32 to vector<2x32xf32>
    %180 = arith.addf %178, %179 : vector<2x32xf32>
    %cst_73 = arith.constant 5.000000e-01 : f32
    %181 = vector.broadcast %cst_73 : f32 to vector<2x32xf32>
    %182 = arith.mulf %181, %180 : vector<2x32xf32>
    %183 = vector.extract_strided_slice %172 {offsets = [0, 64], sizes = [2, 32], strides = [1, 1]} : vector<2x128xf32> to vector<2x32xf32>
    %cst_74 = arith.constant 1.000000e+00 : f32
    %184 = vector.broadcast %cst_74 : f32 to vector<2x32xf32>
    %185 = arith.addf %183, %184 : vector<2x32xf32>
    %cst_75 = arith.constant 5.000000e-01 : f32
    %186 = vector.broadcast %cst_75 : f32 to vector<2x32xf32>
    %187 = arith.mulf %186, %185 : vector<2x32xf32>
    %188 = vector.extract_strided_slice %172 {offsets = [0, 96], sizes = [2, 32], strides = [1, 1]} : vector<2x128xf32> to vector<2x32xf32>
    %189 = arith.mulf %182, %129 : vector<2x32xf32>
    %190 = arith.mulf %177, %188 : vector<2x32xf32>
    %191 = arith.addf %189, %190 : vector<2x32xf32>
    %192 = math.tanh %191 : vector<2x32xf32>
    %193 = arith.mulf %187, %192 : vector<2x32xf32>
    %c0_76 = arith.constant 0 : index
    %c4_77 = arith.constant 4 : index
    %c0_78 = arith.constant 0 : index
    %194 = vector.load %arg12[%c0_76, %c4_77, %c0_78] : memref<2x16x32xf32, #tpu.memory_space<vmem>>, vector<1x2x32xf32>
    %195 = vector.shape_cast %194 : vector<1x2x32xf32> to vector<2x32xf32>
    %196 = vector.shape_cast %167 : vector<2x32xf32> to vector<1x2x32xf32>
    tpu.vector_store %arg12[%c0_76, %c4_77, %c0_78], %196 {strides = array<i32>} : memref<2x16x32xf32, #tpu.memory_space<vmem>>, vector<1x2x32xf32>,
    %c1_79 = arith.constant 1 : index
    %c10_80 = arith.constant 10 : index
    %c0_81 = arith.constant 0 : index
    %197 = vector.load %arg12[%c1_79, %c10_80, %c0_81] : memref<2x16x32xf32, #tpu.memory_space<vmem>>, vector<1x2x32xf32>
    %198 = vector.shape_cast %197 : vector<1x2x32xf32> to vector<2x32xf32>
    %199 = vector.shape_cast %193 : vector<2x32xf32> to vector<1x2x32xf32>
    tpu.vector_store %arg12[%c1_79, %c10_80, %c0_81], %199 {strides = array<i32>} : memref<2x16x32xf32, #tpu.memory_space<vmem>>, vector<1x2x32xf32>,
    %c0_82 = arith.constant 0 : index
    %c6 = arith.constant 6 : index
    %c0_83 = arith.constant 0 : index
    %200 = vector.load %arg0[%c0_82, %c6, %c0_83] : memref<2x16x128xf32, #tpu.memory_space<vmem>>, vector<1x2x128xf32>
    %201 = vector.shape_cast %200 : vector<1x2x128xf32> to vector<2x128xf32>
    %c1_84 = arith.constant 1 : index
    %c8 = arith.constant 8 : index
    %c0_85 = arith.constant 0 : index
    %202 = vector.load %arg0[%c1_84, %c8, %c0_85] : memref<2x16x128xf32, #tpu.memory_space<vmem>>, vector<1x2x128xf32>
    %203 = vector.shape_cast %202 : vector<1x2x128xf32> to vector<2x128xf32>
    %cst_86 = arith.constant dense<0.000000e+00> : vector<2x128xf32>
    %204 = tpu.matmul %167, %7, %cst_86 {dimension_numbers = #tpu.dot_dimension_numbers<[1], [0], [0], [1], [0, 0, 1, 1], [], []>} : vector<2x32xf32>, vector<32x128xf32>, vector<2x128xf32> -> vector<2x128xf32>
    %205 = arith.addf %201, %204 : vector<2x128xf32>
    %206 = vector.broadcast %5 : vector<1x128xf32> to vector<2x128xf32>
    %207 = arith.mulf %205, %206 : vector<2x128xf32>
    %208 = math.tanh %207 : vector<2x128xf32>
    %209 = vector.extract_strided_slice %208 {offsets = [0, 0], sizes = [2, 32], strides = [1, 1]} : vector<2x128xf32> to vector<2x32xf32>
    %cst_87 = arith.constant 1.000000e+00 : f32
    %210 = vector.broadcast %cst_87 : f32 to vector<2x32xf32>
    %211 = arith.addf %209, %210 : vector<2x32xf32>
    %cst_88 = arith.constant 5.000000e-01 : f32
    %212 = vector.broadcast %cst_88 : f32 to vector<2x32xf32>
    %213 = arith.mulf %212, %211 : vector<2x32xf32>
    %214 = vector.extract_strided_slice %208 {offsets = [0, 32], sizes = [2, 32], strides = [1, 1]} : vector<2x128xf32> to vector<2x32xf32>
    %cst_89 = arith.constant 1.000000e+00 : f32
    %215 = vector.broadcast %cst_89 : f32 to vector<2x32xf32>
    %216 = arith.addf %214, %215 : vector<2x32xf32>
    %cst_90 = arith.constant 5.000000e-01 : f32
    %217 = vector.broadcast %cst_90 : f32 to vector<2x32xf32>
    %218 = arith.mulf %217, %216 : vector<2x32xf32>
    %219 = vector.extract_strided_slice %208 {offsets = [0, 64], sizes = [2, 32], strides = [1, 1]} : vector<2x128xf32> to vector<2x32xf32>
    %cst_91 = arith.constant 1.000000e+00 : f32
    %220 = vector.broadcast %cst_91 : f32 to vector<2x32xf32>
    %221 = arith.addf %219, %220 : vector<2x32xf32>
    %cst_92 = arith.constant 5.000000e-01 : f32
    %222 = vector.broadcast %cst_92 : f32 to vector<2x32xf32>
    %223 = arith.mulf %222, %221 : vector<2x32xf32>
    %224 = vector.extract_strided_slice %208 {offsets = [0, 96], sizes = [2, 32], strides = [1, 1]} : vector<2x128xf32> to vector<2x32xf32>
    %225 = arith.mulf %218, %165 : vector<2x32xf32>
    %226 = arith.mulf %213, %224 : vector<2x32xf32>
    %227 = arith.addf %225, %226 : vector<2x32xf32>
    %228 = math.tanh %227 : vector<2x32xf32>
    %229 = arith.mulf %223, %228 : vector<2x32xf32>
    %cst_93 = arith.constant dense<0.000000e+00> : vector<2x128xf32>
    %230 = tpu.matmul %193, %9, %cst_93 {dimension_numbers = #tpu.dot_dimension_numbers<[1], [0], [0], [1], [0, 0, 1, 1], [], []>} : vector<2x32xf32>, vector<32x128xf32>, vector<2x128xf32> -> vector<2x128xf32>
    %231 = arith.addf %203, %230 : vector<2x128xf32>
    %232 = vector.broadcast %5 : vector<1x128xf32> to vector<2x128xf32>
    %233 = arith.mulf %231, %232 : vector<2x128xf32>
    %234 = math.tanh %233 : vector<2x128xf32>
    %235 = vector.extract_strided_slice %234 {offsets = [0, 0], sizes = [2, 32], strides = [1, 1]} : vector<2x128xf32> to vector<2x32xf32>
    %cst_94 = arith.constant 1.000000e+00 : f32
    %236 = vector.broadcast %cst_94 : f32 to vector<2x32xf32>
    %237 = arith.addf %235, %236 : vector<2x32xf32>
    %cst_95 = arith.constant 5.000000e-01 : f32
    %238 = vector.broadcast %cst_95 : f32 to vector<2x32xf32>
    %239 = arith.mulf %238, %237 : vector<2x32xf32>
    %240 = vector.extract_strided_slice %234 {offsets = [0, 32], sizes = [2, 32], strides = [1, 1]} : vector<2x128xf32> to vector<2x32xf32>
    %cst_96 = arith.constant 1.000000e+00 : f32
    %241 = vector.broadcast %cst_96 : f32 to vector<2x32xf32>
    %242 = arith.addf %240, %241 : vector<2x32xf32>
    %cst_97 = arith.constant 5.000000e-01 : f32
    %243 = vector.broadcast %cst_97 : f32 to vector<2x32xf32>
    %244 = arith.mulf %243, %242 : vector<2x32xf32>
    %245 = vector.extract_strided_slice %234 {offsets = [0, 64], sizes = [2, 32], strides = [1, 1]} : vector<2x128xf32> to vector<2x32xf32>
    %cst_98 = arith.constant 1.000000e+00 : f32
    %246 = vector.broadcast %cst_98 : f32 to vector<2x32xf32>
    %247 = arith.addf %245, %246 : vector<2x32xf32>
    %cst_99 = arith.constant 5.000000e-01 : f32
    %248 = vector.broadcast %cst_99 : f32 to vector<2x32xf32>
    %249 = arith.mulf %248, %247 : vector<2x32xf32>
    %250 = vector.extract_strided_slice %234 {offsets = [0, 96], sizes = [2, 32], strides = [1, 1]} : vector<2x128xf32> to vector<2x32xf32>
    %251 = arith.mulf %244, %191 : vector<2x32xf32>
    %252 = arith.mulf %239, %250 : vector<2x32xf32>
    %253 = arith.addf %251, %252 : vector<2x32xf32>
    %254 = math.tanh %253 : vector<2x32xf32>
    %255 = arith.mulf %249, %254 : vector<2x32xf32>
    %c0_100 = arith.constant 0 : index
    %c6_101 = arith.constant 6 : index
    %c0_102 = arith.constant 0 : index
    %256 = vector.load %arg12[%c0_100, %c6_101, %c0_102] : memref<2x16x32xf32, #tpu.memory_space<vmem>>, vector<1x2x32xf32>
    %257 = vector.shape_cast %256 : vector<1x2x32xf32> to vector<2x32xf32>
    %258 = vector.shape_cast %229 : vector<2x32xf32> to vector<1x2x32xf32>
    tpu.vector_store %arg12[%c0_100, %c6_101, %c0_102], %258 {strides = array<i32>} : memref<2x16x32xf32, #tpu.memory_space<vmem>>, vector<1x2x32xf32>,
    %c1_103 = arith.constant 1 : index
    %c8_104 = arith.constant 8 : index
    %c0_105 = arith.constant 0 : index
    %259 = vector.load %arg12[%c1_103, %c8_104, %c0_105] : memref<2x16x32xf32, #tpu.memory_space<vmem>>, vector<1x2x32xf32>
    %260 = vector.shape_cast %259 : vector<1x2x32xf32> to vector<2x32xf32>
    %261 = vector.shape_cast %255 : vector<2x32xf32> to vector<1x2x32xf32>
    tpu.vector_store %arg12[%c1_103, %c8_104, %c0_105], %261 {strides = array<i32>} : memref<2x16x32xf32, #tpu.memory_space<vmem>>, vector<1x2x32xf32>,
    %c0_106 = arith.constant 0 : index
    %c8_107 = arith.constant 8 : index
    %c0_108 = arith.constant 0 : index
    %262 = vector.load %arg0[%c0_106, %c8_107, %c0_108] : memref<2x16x128xf32, #tpu.memory_space<vmem>>, vector<1x2x128xf32>
    %263 = vector.shape_cast %262 : vector<1x2x128xf32> to vector<2x128xf32>
    %c1_109 = arith.constant 1 : index
    %c6_110 = arith.constant 6 : index
    %c0_111 = arith.constant 0 : index
    %264 = vector.load %arg0[%c1_109, %c6_110, %c0_111] : memref<2x16x128xf32, #tpu.memory_space<vmem>>, vector<1x2x128xf32>
    %265 = vector.shape_cast %264 : vector<1x2x128xf32> to vector<2x128xf32>
    %cst_112 = arith.constant dense<0.000000e+00> : vector<2x128xf32>
    %266 = tpu.matmul %229, %7, %cst_112 {dimension_numbers = #tpu.dot_dimension_numbers<[1], [0], [0], [1], [0, 0, 1, 1], [], []>} : vector<2x32xf32>, vector<32x128xf32>, vector<2x128xf32> -> vector<2x128xf32>
    %267 = arith.addf %263, %266 : vector<2x128xf32>
    %268 = vector.broadcast %5 : vector<1x128xf32> to vector<2x128xf32>
    %269 = arith.mulf %267, %268 : vector<2x128xf32>
    %270 = math.tanh %269 : vector<2x128xf32>
    %271 = vector.extract_strided_slice %270 {offsets = [0, 0], sizes = [2, 32], strides = [1, 1]} : vector<2x128xf32> to vector<2x32xf32>
    %cst_113 = arith.constant 1.000000e+00 : f32
    %272 = vector.broadcast %cst_113 : f32 to vector<2x32xf32>
    %273 = arith.addf %271, %272 : vector<2x32xf32>
    %cst_114 = arith.constant 5.000000e-01 : f32
    %274 = vector.broadcast %cst_114 : f32 to vector<2x32xf32>
    %275 = arith.mulf %274, %273 : vector<2x32xf32>
    %276 = vector.extract_strided_slice %270 {offsets = [0, 32], sizes = [2, 32], strides = [1, 1]} : vector<2x128xf32> to vector<2x32xf32>
    %cst_115 = arith.constant 1.000000e+00 : f32
    %277 = vector.broadcast %cst_115 : f32 to vector<2x32xf32>
    %278 = arith.addf %276, %277 : vector<2x32xf32>
    %cst_116 = arith.constant 5.000000e-01 : f32
    %279 = vector.broadcast %cst_116 : f32 to vector<2x32xf32>
    %280 = arith.mulf %279, %278 : vector<2x32xf32>
    %281 = vector.extract_strided_slice %270 {offsets = [0, 64], sizes = [2, 32], strides = [1, 1]} : vector<2x128xf32> to vector<2x32xf32>
    %cst_117 = arith.constant 1.000000e+00 : f32
    %282 = vector.broadcast %cst_117 : f32 to vector<2x32xf32>
    %283 = arith.addf %281, %282 : vector<2x32xf32>
    %cst_118 = arith.constant 5.000000e-01 : f32
    %284 = vector.broadcast %cst_118 : f32 to vector<2x32xf32>
    %285 = arith.mulf %284, %283 : vector<2x32xf32>
    %286 = vector.extract_strided_slice %270 {offsets = [0, 96], sizes = [2, 32], strides = [1, 1]} : vector<2x128xf32> to vector<2x32xf32>
    %287 = arith.mulf %280, %227 : vector<2x32xf32>
    %288 = arith.mulf %275, %286 : vector<2x32xf32>
    %289 = arith.addf %287, %288 : vector<2x32xf32>
    %290 = math.tanh %289 : vector<2x32xf32>
    %291 = arith.mulf %285, %290 : vector<2x32xf32>
    %cst_119 = arith.constant dense<0.000000e+00> : vector<2x128xf32>
    %292 = tpu.matmul %255, %9, %cst_119 {dimension_numbers = #tpu.dot_dimension_numbers<[1], [0], [0], [1], [0, 0, 1, 1], [], []>} : vector<2x32xf32>, vector<32x128xf32>, vector<2x128xf32> -> vector<2x128xf32>
    %293 = arith.addf %265, %292 : vector<2x128xf32>
    %294 = vector.broadcast %5 : vector<1x128xf32> to vector<2x128xf32>
    %295 = arith.mulf %293, %294 : vector<2x128xf32>
    %296 = math.tanh %295 : vector<2x128xf32>
    %297 = vector.extract_strided_slice %296 {offsets = [0, 0], sizes = [2, 32], strides = [1, 1]} : vector<2x128xf32> to vector<2x32xf32>
    %cst_120 = arith.constant 1.000000e+00 : f32
    %298 = vector.broadcast %cst_120 : f32 to vector<2x32xf32>
    %299 = arith.addf %297, %298 : vector<2x32xf32>
    %cst_121 = arith.constant 5.000000e-01 : f32
    %300 = vector.broadcast %cst_121 : f32 to vector<2x32xf32>
    %301 = arith.mulf %300, %299 : vector<2x32xf32>
    %302 = vector.extract_strided_slice %296 {offsets = [0, 32], sizes = [2, 32], strides = [1, 1]} : vector<2x128xf32> to vector<2x32xf32>
    %cst_122 = arith.constant 1.000000e+00 : f32
    %303 = vector.broadcast %cst_122 : f32 to vector<2x32xf32>
    %304 = arith.addf %302, %303 : vector<2x32xf32>
    %cst_123 = arith.constant 5.000000e-01 : f32
    %305 = vector.broadcast %cst_123 : f32 to vector<2x32xf32>
    %306 = arith.mulf %305, %304 : vector<2x32xf32>
    %307 = vector.extract_strided_slice %296 {offsets = [0, 64], sizes = [2, 32], strides = [1, 1]} : vector<2x128xf32> to vector<2x32xf32>
    %cst_124 = arith.constant 1.000000e+00 : f32
    %308 = vector.broadcast %cst_124 : f32 to vector<2x32xf32>
    %309 = arith.addf %307, %308 : vector<2x32xf32>
    %cst_125 = arith.constant 5.000000e-01 : f32
    %310 = vector.broadcast %cst_125 : f32 to vector<2x32xf32>
    %311 = arith.mulf %310, %309 : vector<2x32xf32>
    %312 = vector.extract_strided_slice %296 {offsets = [0, 96], sizes = [2, 32], strides = [1, 1]} : vector<2x128xf32> to vector<2x32xf32>
    %313 = arith.mulf %306, %253 : vector<2x32xf32>
    %314 = arith.mulf %301, %312 : vector<2x32xf32>
    %315 = arith.addf %313, %314 : vector<2x32xf32>
    %316 = math.tanh %315 : vector<2x32xf32>
    %317 = arith.mulf %311, %316 : vector<2x32xf32>
    %c0_126 = arith.constant 0 : index
    %c8_127 = arith.constant 8 : index
    %c0_128 = arith.constant 0 : index
    %318 = vector.load %arg12[%c0_126, %c8_127, %c0_128] : memref<2x16x32xf32, #tpu.memory_space<vmem>>, vector<1x2x32xf32>
    %319 = vector.shape_cast %318 : vector<1x2x32xf32> to vector<2x32xf32>
    %320 = vector.shape_cast %291 : vector<2x32xf32> to vector<1x2x32xf32>
    tpu.vector_store %arg12[%c0_126, %c8_127, %c0_128], %320 {strides = array<i32>} : memref<2x16x32xf32, #tpu.memory_space<vmem>>, vector<1x2x32xf32>,
    %c1_129 = arith.constant 1 : index
    %c6_130 = arith.constant 6 : index
    %c0_131 = arith.constant 0 : index
    %321 = vector.load %arg12[%c1_129, %c6_130, %c0_131] : memref<2x16x32xf32, #tpu.memory_space<vmem>>, vector<1x2x32xf32>
    %322 = vector.shape_cast %321 : vector<1x2x32xf32> to vector<2x32xf32>
    %323 = vector.shape_cast %317 : vector<2x32xf32> to vector<1x2x32xf32>
    tpu.vector_store %arg12[%c1_129, %c6_130, %c0_131], %323 {strides = array<i32>} : memref<2x16x32xf32, #tpu.memory_space<vmem>>, vector<1x2x32xf32>,
    %c0_132 = arith.constant 0 : index
    %c10_133 = arith.constant 10 : index
    %c0_134 = arith.constant 0 : index
    %324 = vector.load %arg0[%c0_132, %c10_133, %c0_134] : memref<2x16x128xf32, #tpu.memory_space<vmem>>, vector<1x2x128xf32>
    %325 = vector.shape_cast %324 : vector<1x2x128xf32> to vector<2x128xf32>
    %c1_135 = arith.constant 1 : index
    %c4_136 = arith.constant 4 : index
    %c0_137 = arith.constant 0 : index
    %326 = vector.load %arg0[%c1_135, %c4_136, %c0_137] : memref<2x16x128xf32, #tpu.memory_space<vmem>>, vector<1x2x128xf32>
    %327 = vector.shape_cast %326 : vector<1x2x128xf32> to vector<2x128xf32>
    %cst_138 = arith.constant dense<0.000000e+00> : vector<2x128xf32>
    %328 = tpu.matmul %291, %7, %cst_138 {dimension_numbers = #tpu.dot_dimension_numbers<[1], [0], [0], [1], [0, 0, 1, 1], [], []>} : vector<2x32xf32>, vector<32x128xf32>, vector<2x128xf32> -> vector<2x128xf32>
    %329 = arith.addf %325, %328 : vector<2x128xf32>
    %330 = vector.broadcast %5 : vector<1x128xf32> to vector<2x128xf32>
    %331 = arith.mulf %329, %330 : vector<2x128xf32>
    %332 = math.tanh %331 : vector<2x128xf32>
    %333 = vector.extract_strided_slice %332 {offsets = [0, 0], sizes = [2, 32], strides = [1, 1]} : vector<2x128xf32> to vector<2x32xf32>
    %cst_139 = arith.constant 1.000000e+00 : f32
    %334 = vector.broadcast %cst_139 : f32 to vector<2x32xf32>
    %335 = arith.addf %333, %334 : vector<2x32xf32>
    %cst_140 = arith.constant 5.000000e-01 : f32
    %336 = vector.broadcast %cst_140 : f32 to vector<2x32xf32>
    %337 = arith.mulf %336, %335 : vector<2x32xf32>
    %338 = vector.extract_strided_slice %332 {offsets = [0, 32], sizes = [2, 32], strides = [1, 1]} : vector<2x128xf32> to vector<2x32xf32>
    %cst_141 = arith.constant 1.000000e+00 : f32
    %339 = vector.broadcast %cst_141 : f32 to vector<2x32xf32>
    %340 = arith.addf %338, %339 : vector<2x32xf32>
    %cst_142 = arith.constant 5.000000e-01 : f32
    %341 = vector.broadcast %cst_142 : f32 to vector<2x32xf32>
    %342 = arith.mulf %341, %340 : vector<2x32xf32>
    %343 = vector.extract_strided_slice %332 {offsets = [0, 64], sizes = [2, 32], strides = [1, 1]} : vector<2x128xf32> to vector<2x32xf32>
    %cst_143 = arith.constant 1.000000e+00 : f32
    %344 = vector.broadcast %cst_143 : f32 to vector<2x32xf32>
    %345 = arith.addf %343, %344 : vector<2x32xf32>
    %cst_144 = arith.constant 5.000000e-01 : f32
    %346 = vector.broadcast %cst_144 : f32 to vector<2x32xf32>
    %347 = arith.mulf %346, %345 : vector<2x32xf32>
    %348 = vector.extract_strided_slice %332 {offsets = [0, 96], sizes = [2, 32], strides = [1, 1]} : vector<2x128xf32> to vector<2x32xf32>
    %349 = arith.mulf %342, %289 : vector<2x32xf32>
    %350 = arith.mulf %337, %348 : vector<2x32xf32>
    %351 = arith.addf %349, %350 : vector<2x32xf32>
    %352 = math.tanh %351 : vector<2x32xf32>
    %353 = arith.mulf %347, %352 : vector<2x32xf32>
    %cst_145 = arith.constant dense<0.000000e+00> : vector<2x128xf32>
    %354 = tpu.matmul %317, %9, %cst_145 {dimension_numbers = #tpu.dot_dimension_numbers<[1], [0], [0], [1], [0, 0, 1, 1], [], []>} : vector<2x32xf32>, vector<32x128xf32>, vector<2x128xf32> -> vector<2x128xf32>
    %355 = arith.addf %327, %354 : vector<2x128xf32>
    %356 = vector.broadcast %5 : vector<1x128xf32> to vector<2x128xf32>
    %357 = arith.mulf %355, %356 : vector<2x128xf32>
    %358 = math.tanh %357 : vector<2x128xf32>
    %359 = vector.extract_strided_slice %358 {offsets = [0, 0], sizes = [2, 32], strides = [1, 1]} : vector<2x128xf32> to vector<2x32xf32>
    %cst_146 = arith.constant 1.000000e+00 : f32
    %360 = vector.broadcast %cst_146 : f32 to vector<2x32xf32>
    %361 = arith.addf %359, %360 : vector<2x32xf32>
    %cst_147 = arith.constant 5.000000e-01 : f32
    %362 = vector.broadcast %cst_147 : f32 to vector<2x32xf32>
    %363 = arith.mulf %362, %361 : vector<2x32xf32>
    %364 = vector.extract_strided_slice %358 {offsets = [0, 32], sizes = [2, 32], strides = [1, 1]} : vector<2x128xf32> to vector<2x32xf32>
    %cst_148 = arith.constant 1.000000e+00 : f32
    %365 = vector.broadcast %cst_148 : f32 to vector<2x32xf32>
    %366 = arith.addf %364, %365 : vector<2x32xf32>
    %cst_149 = arith.constant 5.000000e-01 : f32
    %367 = vector.broadcast %cst_149 : f32 to vector<2x32xf32>
    %368 = arith.mulf %367, %366 : vector<2x32xf32>
    %369 = vector.extract_strided_slice %358 {offsets = [0, 64], sizes = [2, 32], strides = [1, 1]} : vector<2x128xf32> to vector<2x32xf32>
    %cst_150 = arith.constant 1.000000e+00 : f32
    %370 = vector.broadcast %cst_150 : f32 to vector<2x32xf32>
    %371 = arith.addf %369, %370 : vector<2x32xf32>
    %cst_151 = arith.constant 5.000000e-01 : f32
    %372 = vector.broadcast %cst_151 : f32 to vector<2x32xf32>
    %373 = arith.mulf %372, %371 : vector<2x32xf32>
    %374 = vector.extract_strided_slice %358 {offsets = [0, 96], sizes = [2, 32], strides = [1, 1]} : vector<2x128xf32> to vector<2x32xf32>
    %375 = arith.mulf %368, %315 : vector<2x32xf32>
    %376 = arith.mulf %363, %374 : vector<2x32xf32>
    %377 = arith.addf %375, %376 : vector<2x32xf32>
    %378 = math.tanh %377 : vector<2x32xf32>
    %379 = arith.mulf %373, %378 : vector<2x32xf32>
    %c0_152 = arith.constant 0 : index
    %c10_153 = arith.constant 10 : index
    %c0_154 = arith.constant 0 : index
    %380 = vector.load %arg12[%c0_152, %c10_153, %c0_154] : memref<2x16x32xf32, #tpu.memory_space<vmem>>, vector<1x2x32xf32>
    %381 = vector.shape_cast %380 : vector<1x2x32xf32> to vector<2x32xf32>
    %382 = vector.shape_cast %353 : vector<2x32xf32> to vector<1x2x32xf32>
    tpu.vector_store %arg12[%c0_152, %c10_153, %c0_154], %382 {strides = array<i32>} : memref<2x16x32xf32, #tpu.memory_space<vmem>>, vector<1x2x32xf32>,
    %c1_155 = arith.constant 1 : index
    %c4_156 = arith.constant 4 : index
    %c0_157 = arith.constant 0 : index
    %383 = vector.load %arg12[%c1_155, %c4_156, %c0_157] : memref<2x16x32xf32, #tpu.memory_space<vmem>>, vector<1x2x32xf32>
    %384 = vector.shape_cast %383 : vector<1x2x32xf32> to vector<2x32xf32>
    %385 = vector.shape_cast %379 : vector<2x32xf32> to vector<1x2x32xf32>
    tpu.vector_store %arg12[%c1_155, %c4_156, %c0_157], %385 {strides = array<i32>} : memref<2x16x32xf32, #tpu.memory_space<vmem>>, vector<1x2x32xf32>,
    %c0_158 = arith.constant 0 : index
    %c12_159 = arith.constant 12 : index
    %c0_160 = arith.constant 0 : index
    %386 = vector.load %arg0[%c0_158, %c12_159, %c0_160] : memref<2x16x128xf32, #tpu.memory_space<vmem>>, vector<1x2x128xf32>
    %387 = vector.shape_cast %386 : vector<1x2x128xf32> to vector<2x128xf32>
    %c1_161 = arith.constant 1 : index
    %c2_162 = arith.constant 2 : index
    %c0_163 = arith.constant 0 : index
    %388 = vector.load %arg0[%c1_161, %c2_162, %c0_163] : memref<2x16x128xf32, #tpu.memory_space<vmem>>, vector<1x2x128xf32>
    %389 = vector.shape_cast %388 : vector<1x2x128xf32> to vector<2x128xf32>
    %cst_164 = arith.constant dense<0.000000e+00> : vector<2x128xf32>
    %390 = tpu.matmul %353, %7, %cst_164 {dimension_numbers = #tpu.dot_dimension_numbers<[1], [0], [0], [1], [0, 0, 1, 1], [], []>} : vector<2x32xf32>, vector<32x128xf32>, vector<2x128xf32> -> vector<2x128xf32>
    %391 = arith.addf %387, %390 : vector<2x128xf32>
    %392 = vector.broadcast %5 : vector<1x128xf32> to vector<2x128xf32>
    %393 = arith.mulf %391, %392 : vector<2x128xf32>
    %394 = math.tanh %393 : vector<2x128xf32>
    %395 = vector.extract_strided_slice %394 {offsets = [0, 0], sizes = [2, 32], strides = [1, 1]} : vector<2x128xf32> to vector<2x32xf32>
    %cst_165 = arith.constant 1.000000e+00 : f32
    %396 = vector.broadcast %cst_165 : f32 to vector<2x32xf32>
    %397 = arith.addf %395, %396 : vector<2x32xf32>
    %cst_166 = arith.constant 5.000000e-01 : f32
    %398 = vector.broadcast %cst_166 : f32 to vector<2x32xf32>
    %399 = arith.mulf %398, %397 : vector<2x32xf32>
    %400 = vector.extract_strided_slice %394 {offsets = [0, 32], sizes = [2, 32], strides = [1, 1]} : vector<2x128xf32> to vector<2x32xf32>
    %cst_167 = arith.constant 1.000000e+00 : f32
    %401 = vector.broadcast %cst_167 : f32 to vector<2x32xf32>
    %402 = arith.addf %400, %401 : vector<2x32xf32>
    %cst_168 = arith.constant 5.000000e-01 : f32
    %403 = vector.broadcast %cst_168 : f32 to vector<2x32xf32>
    %404 = arith.mulf %403, %402 : vector<2x32xf32>
    %405 = vector.extract_strided_slice %394 {offsets = [0, 64], sizes = [2, 32], strides = [1, 1]} : vector<2x128xf32> to vector<2x32xf32>
    %cst_169 = arith.constant 1.000000e+00 : f32
    %406 = vector.broadcast %cst_169 : f32 to vector<2x32xf32>
    %407 = arith.addf %405, %406 : vector<2x32xf32>
    %cst_170 = arith.constant 5.000000e-01 : f32
    %408 = vector.broadcast %cst_170 : f32 to vector<2x32xf32>
    %409 = arith.mulf %408, %407 : vector<2x32xf32>
    %410 = vector.extract_strided_slice %394 {offsets = [0, 96], sizes = [2, 32], strides = [1, 1]} : vector<2x128xf32> to vector<2x32xf32>
    %411 = arith.mulf %404, %351 : vector<2x32xf32>
    %412 = arith.mulf %399, %410 : vector<2x32xf32>
    %413 = arith.addf %411, %412 : vector<2x32xf32>
    %414 = math.tanh %413 : vector<2x32xf32>
    %415 = arith.mulf %409, %414 : vector<2x32xf32>
    %cst_171 = arith.constant dense<0.000000e+00> : vector<2x128xf32>
    %416 = tpu.matmul %379, %9, %cst_171 {dimension_numbers = #tpu.dot_dimension_numbers<[1], [0], [0], [1], [0, 0, 1, 1], [], []>} : vector<2x32xf32>, vector<32x128xf32>, vector<2x128xf32> -> vector<2x128xf32>
    %417 = arith.addf %389, %416 : vector<2x128xf32>
    %418 = vector.broadcast %5 : vector<1x128xf32> to vector<2x128xf32>
    %419 = arith.mulf %417, %418 : vector<2x128xf32>
    %420 = math.tanh %419 : vector<2x128xf32>
    %421 = vector.extract_strided_slice %420 {offsets = [0, 0], sizes = [2, 32], strides = [1, 1]} : vector<2x128xf32> to vector<2x32xf32>
    %cst_172 = arith.constant 1.000000e+00 : f32
    %422 = vector.broadcast %cst_172 : f32 to vector<2x32xf32>
    %423 = arith.addf %421, %422 : vector<2x32xf32>
    %cst_173 = arith.constant 5.000000e-01 : f32
    %424 = vector.broadcast %cst_173 : f32 to vector<2x32xf32>
    %425 = arith.mulf %424, %423 : vector<2x32xf32>
    %426 = vector.extract_strided_slice %420 {offsets = [0, 32], sizes = [2, 32], strides = [1, 1]} : vector<2x128xf32> to vector<2x32xf32>
    %cst_174 = arith.constant 1.000000e+00 : f32
    %427 = vector.broadcast %cst_174 : f32 to vector<2x32xf32>
    %428 = arith.addf %426, %427 : vector<2x32xf32>
    %cst_175 = arith.constant 5.000000e-01 : f32
    %429 = vector.broadcast %cst_175 : f32 to vector<2x32xf32>
    %430 = arith.mulf %429, %428 : vector<2x32xf32>
    %431 = vector.extract_strided_slice %420 {offsets = [0, 64], sizes = [2, 32], strides = [1, 1]} : vector<2x128xf32> to vector<2x32xf32>
    %cst_176 = arith.constant 1.000000e+00 : f32
    %432 = vector.broadcast %cst_176 : f32 to vector<2x32xf32>
    %433 = arith.addf %431, %432 : vector<2x32xf32>
    %cst_177 = arith.constant 5.000000e-01 : f32
    %434 = vector.broadcast %cst_177 : f32 to vector<2x32xf32>
    %435 = arith.mulf %434, %433 : vector<2x32xf32>
    %436 = vector.extract_strided_slice %420 {offsets = [0, 96], sizes = [2, 32], strides = [1, 1]} : vector<2x128xf32> to vector<2x32xf32>
    %437 = arith.mulf %430, %377 : vector<2x32xf32>
    %438 = arith.mulf %425, %436 : vector<2x32xf32>
    %439 = arith.addf %437, %438 : vector<2x32xf32>
    %440 = math.tanh %439 : vector<2x32xf32>
    %441 = arith.mulf %435, %440 : vector<2x32xf32>
    %c0_178 = arith.constant 0 : index
    %c12_179 = arith.constant 12 : index
    %c0_180 = arith.constant 0 : index
    %442 = vector.load %arg12[%c0_178, %c12_179, %c0_180] : memref<2x16x32xf32, #tpu.memory_space<vmem>>, vector<1x2x32xf32>
    %443 = vector.shape_cast %442 : vector<1x2x32xf32> to vector<2x32xf32>
    %444 = vector.shape_cast %415 : vector<2x32xf32> to vector<1x2x32xf32>
    tpu.vector_store %arg12[%c0_178, %c12_179, %c0_180], %444 {strides = array<i32>} : memref<2x16x32xf32, #tpu.memory_space<vmem>>, vector<1x2x32xf32>,
    %c1_181 = arith.constant 1 : index
    %c2_182 = arith.constant 2 : index
    %c0_183 = arith.constant 0 : index
    %445 = vector.load %arg12[%c1_181, %c2_182, %c0_183] : memref<2x16x32xf32, #tpu.memory_space<vmem>>, vector<1x2x32xf32>
    %446 = vector.shape_cast %445 : vector<1x2x32xf32> to vector<2x32xf32>
    %447 = vector.shape_cast %441 : vector<2x32xf32> to vector<1x2x32xf32>
    tpu.vector_store %arg12[%c1_181, %c2_182, %c0_183], %447 {strides = array<i32>} : memref<2x16x32xf32, #tpu.memory_space<vmem>>, vector<1x2x32xf32>,
    %c0_184 = arith.constant 0 : index
    %c14_185 = arith.constant 14 : index
    %c0_186 = arith.constant 0 : index
    %448 = vector.load %arg0[%c0_184, %c14_185, %c0_186] : memref<2x16x128xf32, #tpu.memory_space<vmem>>, vector<1x2x128xf32>
    %449 = vector.shape_cast %448 : vector<1x2x128xf32> to vector<2x128xf32>
    %c1_187 = arith.constant 1 : index
    %c0_188 = arith.constant 0 : index
    %c0_189 = arith.constant 0 : index
    %450 = vector.load %arg0[%c1_187, %c0_188, %c0_189] : memref<2x16x128xf32, #tpu.memory_space<vmem>>, vector<1x2x128xf32>
    %451 = vector.shape_cast %450 : vector<1x2x128xf32> to vector<2x128xf32>
    %cst_190 = arith.constant dense<0.000000e+00> : vector<2x128xf32>
    %452 = tpu.matmul %415, %7, %cst_190 {dimension_numbers = #tpu.dot_dimension_numbers<[1], [0], [0], [1], [0, 0, 1, 1], [], []>} : vector<2x32xf32>, vector<32x128xf32>, vector<2x128xf32> -> vector<2x128xf32>
    %453 = arith.addf %449, %452 : vector<2x128xf32>
    %454 = vector.broadcast %5 : vector<1x128xf32> to vector<2x128xf32>
    %455 = arith.mulf %453, %454 : vector<2x128xf32>
    %456 = math.tanh %455 : vector<2x128xf32>
    %457 = vector.extract_strided_slice %456 {offsets = [0, 0], sizes = [2, 32], strides = [1, 1]} : vector<2x128xf32> to vector<2x32xf32>
    %cst_191 = arith.constant 1.000000e+00 : f32
    %458 = vector.broadcast %cst_191 : f32 to vector<2x32xf32>
    %459 = arith.addf %457, %458 : vector<2x32xf32>
    %cst_192 = arith.constant 5.000000e-01 : f32
    %460 = vector.broadcast %cst_192 : f32 to vector<2x32xf32>
    %461 = arith.mulf %460, %459 : vector<2x32xf32>
    %462 = vector.extract_strided_slice %456 {offsets = [0, 32], sizes = [2, 32], strides = [1, 1]} : vector<2x128xf32> to vector<2x32xf32>
    %cst_193 = arith.constant 1.000000e+00 : f32
    %463 = vector.broadcast %cst_193 : f32 to vector<2x32xf32>
    %464 = arith.addf %462, %463 : vector<2x32xf32>
    %cst_194 = arith.constant 5.000000e-01 : f32
    %465 = vector.broadcast %cst_194 : f32 to vector<2x32xf32>
    %466 = arith.mulf %465, %464 : vector<2x32xf32>
    %467 = vector.extract_strided_slice %456 {offsets = [0, 64], sizes = [2, 32], strides = [1, 1]} : vector<2x128xf32> to vector<2x32xf32>
    %cst_195 = arith.constant 1.000000e+00 : f32
    %468 = vector.broadcast %cst_195 : f32 to vector<2x32xf32>
    %469 = arith.addf %467, %468 : vector<2x32xf32>
    %cst_196 = arith.constant 5.000000e-01 : f32
    %470 = vector.broadcast %cst_196 : f32 to vector<2x32xf32>
    %471 = arith.mulf %470, %469 : vector<2x32xf32>
    %472 = vector.extract_strided_slice %456 {offsets = [0, 96], sizes = [2, 32], strides = [1, 1]} : vector<2x128xf32> to vector<2x32xf32>
    %473 = arith.mulf %466, %413 : vector<2x32xf32>
    %474 = arith.mulf %461, %472 : vector<2x32xf32>
    %475 = arith.addf %473, %474 : vector<2x32xf32>
    %476 = math.tanh %475 : vector<2x32xf32>
    %477 = arith.mulf %471, %476 : vector<2x32xf32>
    %cst_197 = arith.constant dense<0.000000e+00> : vector<2x128xf32>
    %478 = tpu.matmul %441, %9, %cst_197 {dimension_numbers = #tpu.dot_dimension_numbers<[1], [0], [0], [1], [0, 0, 1, 1], [], []>} : vector<2x32xf32>, vector<32x128xf32>, vector<2x128xf32> -> vector<2x128xf32>
    %479 = arith.addf %451, %478 : vector<2x128xf32>
    %480 = vector.broadcast %5 : vector<1x128xf32> to vector<2x128xf32>
    %481 = arith.mulf %479, %480 : vector<2x128xf32>
    %482 = math.tanh %481 : vector<2x128xf32>
    %483 = vector.extract_strided_slice %482 {offsets = [0, 0], sizes = [2, 32], strides = [1, 1]} : vector<2x128xf32> to vector<2x32xf32>
    %cst_198 = arith.constant 1.000000e+00 : f32
    %484 = vector.broadcast %cst_198 : f32 to vector<2x32xf32>
    %485 = arith.addf %483, %484 : vector<2x32xf32>
    %cst_199 = arith.constant 5.000000e-01 : f32
    %486 = vector.broadcast %cst_199 : f32 to vector<2x32xf32>
    %487 = arith.mulf %486, %485 : vector<2x32xf32>
    %488 = vector.extract_strided_slice %482 {offsets = [0, 32], sizes = [2, 32], strides = [1, 1]} : vector<2x128xf32> to vector<2x32xf32>
    %cst_200 = arith.constant 1.000000e+00 : f32
    %489 = vector.broadcast %cst_200 : f32 to vector<2x32xf32>
    %490 = arith.addf %488, %489 : vector<2x32xf32>
    %cst_201 = arith.constant 5.000000e-01 : f32
    %491 = vector.broadcast %cst_201 : f32 to vector<2x32xf32>
    %492 = arith.mulf %491, %490 : vector<2x32xf32>
    %493 = vector.extract_strided_slice %482 {offsets = [0, 64], sizes = [2, 32], strides = [1, 1]} : vector<2x128xf32> to vector<2x32xf32>
    %cst_202 = arith.constant 1.000000e+00 : f32
    %494 = vector.broadcast %cst_202 : f32 to vector<2x32xf32>
    %495 = arith.addf %493, %494 : vector<2x32xf32>
    %cst_203 = arith.constant 5.000000e-01 : f32
    %496 = vector.broadcast %cst_203 : f32 to vector<2x32xf32>
    %497 = arith.mulf %496, %495 : vector<2x32xf32>
    %498 = vector.extract_strided_slice %482 {offsets = [0, 96], sizes = [2, 32], strides = [1, 1]} : vector<2x128xf32> to vector<2x32xf32>
    %499 = arith.mulf %492, %439 : vector<2x32xf32>
    %500 = arith.mulf %487, %498 : vector<2x32xf32>
    %501 = arith.addf %499, %500 : vector<2x32xf32>
    %502 = math.tanh %501 : vector<2x32xf32>
    %503 = arith.mulf %497, %502 : vector<2x32xf32>
    %c0_204 = arith.constant 0 : index
    %c14_205 = arith.constant 14 : index
    %c0_206 = arith.constant 0 : index
    %504 = vector.load %arg12[%c0_204, %c14_205, %c0_206] : memref<2x16x32xf32, #tpu.memory_space<vmem>>, vector<1x2x32xf32>
    %505 = vector.shape_cast %504 : vector<1x2x32xf32> to vector<2x32xf32>
    %506 = vector.shape_cast %477 : vector<2x32xf32> to vector<1x2x32xf32>
    tpu.vector_store %arg12[%c0_204, %c14_205, %c0_206], %506 {strides = array<i32>} : memref<2x16x32xf32, #tpu.memory_space<vmem>>, vector<1x2x32xf32>,
    %c1_207 = arith.constant 1 : index
    %c0_208 = arith.constant 0 : index
    %c0_209 = arith.constant 0 : index
    %507 = vector.load %arg12[%c1_207, %c0_208, %c0_209] : memref<2x16x32xf32, #tpu.memory_space<vmem>>, vector<1x2x32xf32>
    %508 = vector.shape_cast %507 : vector<1x2x32xf32> to vector<2x32xf32>
    %509 = vector.shape_cast %503 : vector<2x32xf32> to vector<1x2x32xf32>
    tpu.vector_store %arg12[%c1_207, %c0_208, %c0_209], %509 {strides = array<i32>} : memref<2x16x32xf32, #tpu.memory_space<vmem>>, vector<1x2x32xf32>,
    %c0_210 = arith.constant 0 : index
    %c0_211 = arith.constant 0 : index
    %c0_212 = arith.constant 0 : index
    %510 = vector.load %arg12[%c0_210, %c0_211, %c0_212] : memref<2x16x32xf32, #tpu.memory_space<vmem>>, vector<1x16x32xf32>
    %511 = vector.shape_cast %510 : vector<1x16x32xf32> to vector<16x32xf32>
    %c1_213 = arith.constant 1 : index
    %c0_214 = arith.constant 0 : index
    %c0_215 = arith.constant 0 : index
    %512 = vector.load %arg12[%c1_213, %c0_214, %c0_215] : memref<2x16x32xf32, #tpu.memory_space<vmem>>, vector<1x16x32xf32>
    %513 = vector.shape_cast %512 : vector<1x16x32xf32> to vector<16x32xf32>
    %c0_216 = arith.constant 0 : index
    %c0_217 = arith.constant 0 : index
    %c0_218 = arith.constant 0 : index
    %514 = vector.load %arg2[%c0_216, %c0_217, %c0_218] : memref<2x32x256xf32, #tpu.memory_space<vmem>>, vector<1x32x256xf32>
    %515 = vector.shape_cast %514 : vector<1x32x256xf32> to vector<32x256xf32>
    %cst_219 = arith.constant dense<0.000000e+00> : vector<16x256xf32>
    %516 = tpu.matmul %511, %515, %cst_219 {dimension_numbers = #tpu.dot_dimension_numbers<[1], [0], [0], [1], [0, 0, 1, 1], [], []>} : vector<16x32xf32>, vector<32x256xf32>, vector<16x256xf32> -> vector<16x256xf32>
    %c1_220 = arith.constant 1 : index
    %c0_221 = arith.constant 0 : index
    %c0_222 = arith.constant 0 : index
    %517 = vector.load %arg2[%c1_220, %c0_221, %c0_222] : memref<2x32x256xf32, #tpu.memory_space<vmem>>, vector<1x32x256xf32>
    %518 = vector.shape_cast %517 : vector<1x32x256xf32> to vector<32x256xf32>
    %cst_223 = arith.constant dense<0.000000e+00> : vector<16x256xf32>
    %519 = tpu.matmul %513, %518, %cst_223 {dimension_numbers = #tpu.dot_dimension_numbers<[1], [0], [0], [1], [0, 0, 1, 1], [], []>} : vector<16x32xf32>, vector<32x256xf32>, vector<16x256xf32> -> vector<16x256xf32>
    %520 = arith.addf %516, %519 : vector<16x256xf32>
    %c0_224 = arith.constant 0 : index
    %c0_225 = arith.constant 0 : index
    %c0_226 = arith.constant 0 : index
    %521 = vector.load %arg3[%c0_224, %c0_225, %c0_226] : memref<1x1x256xf32, #tpu.memory_space<vmem>>, vector<1x1x256xf32>
    %522 = vector.shape_cast %521 : vector<1x1x256xf32> to vector<1x256xf32>
    %523 = vector.broadcast %522 : vector<1x256xf32> to vector<16x256xf32>
    %524 = arith.addf %520, %523 : vector<16x256xf32>
    %525 = vector.extract_strided_slice %524 {offsets = [0, 0], sizes = [16, 128], strides = [1, 1]} : vector<16x256xf32> to vector<16x128xf32>
    %c0_227 = arith.constant 0 : index
    %c0_228 = arith.constant 0 : index
    %c0_229 = arith.constant 0 : index
    %526 = vector.load %arg13[%c0_227, %c0_228, %c0_229] : memref<2x16x128xf32, #tpu.memory_space<vmem>>, vector<1x16x128xf32>
    %527 = vector.shape_cast %526 : vector<1x16x128xf32> to vector<16x128xf32>
    %528 = vector.shape_cast %525 : vector<16x128xf32> to vector<1x16x128xf32>
    tpu.vector_store %arg13[%c0_227, %c0_228, %c0_229], %528 {strides = array<i32>} : memref<2x16x128xf32, #tpu.memory_space<vmem>>, vector<1x16x128xf32>,
    %529 = vector.extract_strided_slice %524 {offsets = [0, 128], sizes = [16, 128], strides = [1, 1]} : vector<16x256xf32> to vector<16x128xf32>
    %c1_230 = arith.constant 1 : index
    %c0_231 = arith.constant 0 : index
    %c0_232 = arith.constant 0 : index
    %530 = vector.load %arg13[%c1_230, %c0_231, %c0_232] : memref<2x16x128xf32, #tpu.memory_space<vmem>>, vector<1x16x128xf32>
    %531 = vector.shape_cast %530 : vector<1x16x128xf32> to vector<16x128xf32>
    %532 = vector.shape_cast %529 : vector<16x128xf32> to vector<1x16x128xf32>
    tpu.vector_store %arg13[%c1_230, %c0_231, %c0_232], %532 {strides = array<i32>} : memref<2x16x128xf32, #tpu.memory_space<vmem>>, vector<1x16x128xf32>,
    %c2_233 = arith.constant 2 : index
    %c0_234 = arith.constant 0 : index
    %c0_235 = arith.constant 0 : index
    %533 = vector.load %arg1[%c2_233, %c0_234, %c0_235] : memref<4x32x128xf32, #tpu.memory_space<vmem>>, vector<1x32x128xf32>
    %534 = vector.shape_cast %533 : vector<1x32x128xf32> to vector<32x128xf32>
    %c3 = arith.constant 3 : index
    %c0_236 = arith.constant 0 : index
    %c0_237 = arith.constant 0 : index
    %535 = vector.load %arg1[%c3, %c0_236, %c0_237] : memref<4x32x128xf32, #tpu.memory_space<vmem>>, vector<1x32x128xf32>
    %536 = vector.shape_cast %535 : vector<1x32x128xf32> to vector<32x128xf32>
    %cst_238 = arith.constant 0.000000e+00 : f32
    %537 = vector.broadcast %cst_238 : f32 to vector<2x32xf32>
    %cst_239 = arith.constant 0.000000e+00 : f32
    %538 = vector.broadcast %cst_239 : f32 to vector<2x32xf32>
    %cst_240 = arith.constant 0.000000e+00 : f32
    %539 = vector.broadcast %cst_240 : f32 to vector<2x32xf32>
    %cst_241 = arith.constant 0.000000e+00 : f32
    %540 = vector.broadcast %cst_241 : f32 to vector<2x32xf32>
    %c0_242 = arith.constant 0 : index
    %c0_243 = arith.constant 0 : index
    %c0_244 = arith.constant 0 : index
    %541 = vector.load %arg13[%c0_242, %c0_243, %c0_244] : memref<2x16x128xf32, #tpu.memory_space<vmem>>, vector<1x2x128xf32>
    %542 = vector.shape_cast %541 : vector<1x2x128xf32> to vector<2x128xf32>
    %c1_245 = arith.constant 1 : index
    %c14_246 = arith.constant 14 : index
    %c0_247 = arith.constant 0 : index
    %543 = vector.load %arg13[%c1_245, %c14_246, %c0_247] : memref<2x16x128xf32, #tpu.memory_space<vmem>>, vector<1x2x128xf32>
    %544 = vector.shape_cast %543 : vector<1x2x128xf32> to vector<2x128xf32>
    %cst_248 = arith.constant dense<0.000000e+00> : vector<2x128xf32>
    %545 = tpu.matmul %537, %534, %cst_248 {dimension_numbers = #tpu.dot_dimension_numbers<[1], [0], [0], [1], [0, 0, 1, 1], [], []>} : vector<2x32xf32>, vector<32x128xf32>, vector<2x128xf32> -> vector<2x128xf32>
    %546 = arith.addf %542, %545 : vector<2x128xf32>
    %547 = vector.broadcast %5 : vector<1x128xf32> to vector<2x128xf32>
    %548 = arith.mulf %546, %547 : vector<2x128xf32>
    %549 = math.tanh %548 : vector<2x128xf32>
    %550 = vector.extract_strided_slice %549 {offsets = [0, 0], sizes = [2, 32], strides = [1, 1]} : vector<2x128xf32> to vector<2x32xf32>
    %cst_249 = arith.constant 1.000000e+00 : f32
    %551 = vector.broadcast %cst_249 : f32 to vector<2x32xf32>
    %552 = arith.addf %550, %551 : vector<2x32xf32>
    %cst_250 = arith.constant 5.000000e-01 : f32
    %553 = vector.broadcast %cst_250 : f32 to vector<2x32xf32>
    %554 = arith.mulf %553, %552 : vector<2x32xf32>
    %555 = vector.extract_strided_slice %549 {offsets = [0, 32], sizes = [2, 32], strides = [1, 1]} : vector<2x128xf32> to vector<2x32xf32>
    %cst_251 = arith.constant 1.000000e+00 : f32
    %556 = vector.broadcast %cst_251 : f32 to vector<2x32xf32>
    %557 = arith.addf %555, %556 : vector<2x32xf32>
    %cst_252 = arith.constant 5.000000e-01 : f32
    %558 = vector.broadcast %cst_252 : f32 to vector<2x32xf32>
    %559 = arith.mulf %558, %557 : vector<2x32xf32>
    %560 = vector.extract_strided_slice %549 {offsets = [0, 64], sizes = [2, 32], strides = [1, 1]} : vector<2x128xf32> to vector<2x32xf32>
    %cst_253 = arith.constant 1.000000e+00 : f32
    %561 = vector.broadcast %cst_253 : f32 to vector<2x32xf32>
    %562 = arith.addf %560, %561 : vector<2x32xf32>
    %cst_254 = arith.constant 5.000000e-01 : f32
    %563 = vector.broadcast %cst_254 : f32 to vector<2x32xf32>
    %564 = arith.mulf %563, %562 : vector<2x32xf32>
    %565 = vector.extract_strided_slice %549 {offsets = [0, 96], sizes = [2, 32], strides = [1, 1]} : vector<2x128xf32> to vector<2x32xf32>
    %566 = arith.mulf %559, %538 : vector<2x32xf32>
    %567 = arith.mulf %554, %565 : vector<2x32xf32>
    %568 = arith.addf %566, %567 : vector<2x32xf32>
    %569 = math.tanh %568 : vector<2x32xf32>
    %570 = arith.mulf %564, %569 : vector<2x32xf32>
    %cst_255 = arith.constant dense<0.000000e+00> : vector<2x128xf32>
    %571 = tpu.matmul %539, %536, %cst_255 {dimension_numbers = #tpu.dot_dimension_numbers<[1], [0], [0], [1], [0, 0, 1, 1], [], []>} : vector<2x32xf32>, vector<32x128xf32>, vector<2x128xf32> -> vector<2x128xf32>
    %572 = arith.addf %544, %571 : vector<2x128xf32>
    %573 = vector.broadcast %5 : vector<1x128xf32> to vector<2x128xf32>
    %574 = arith.mulf %572, %573 : vector<2x128xf32>
    %575 = math.tanh %574 : vector<2x128xf32>
    %576 = vector.extract_strided_slice %575 {offsets = [0, 0], sizes = [2, 32], strides = [1, 1]} : vector<2x128xf32> to vector<2x32xf32>
    %cst_256 = arith.constant 1.000000e+00 : f32
    %577 = vector.broadcast %cst_256 : f32 to vector<2x32xf32>
    %578 = arith.addf %576, %577 : vector<2x32xf32>
    %cst_257 = arith.constant 5.000000e-01 : f32
    %579 = vector.broadcast %cst_257 : f32 to vector<2x32xf32>
    %580 = arith.mulf %579, %578 : vector<2x32xf32>
    %581 = vector.extract_strided_slice %575 {offsets = [0, 32], sizes = [2, 32], strides = [1, 1]} : vector<2x128xf32> to vector<2x32xf32>
    %cst_258 = arith.constant 1.000000e+00 : f32
    %582 = vector.broadcast %cst_258 : f32 to vector<2x32xf32>
    %583 = arith.addf %581, %582 : vector<2x32xf32>
    %cst_259 = arith.constant 5.000000e-01 : f32
    %584 = vector.broadcast %cst_259 : f32 to vector<2x32xf32>
    %585 = arith.mulf %584, %583 : vector<2x32xf32>
    %586 = vector.extract_strided_slice %575 {offsets = [0, 64], sizes = [2, 32], strides = [1, 1]} : vector<2x128xf32> to vector<2x32xf32>
    %cst_260 = arith.constant 1.000000e+00 : f32
    %587 = vector.broadcast %cst_260 : f32 to vector<2x32xf32>
    %588 = arith.addf %586, %587 : vector<2x32xf32>
    %cst_261 = arith.constant 5.000000e-01 : f32
    %589 = vector.broadcast %cst_261 : f32 to vector<2x32xf32>
    %590 = arith.mulf %589, %588 : vector<2x32xf32>
    %591 = vector.extract_strided_slice %575 {offsets = [0, 96], sizes = [2, 32], strides = [1, 1]} : vector<2x128xf32> to vector<2x32xf32>
    %592 = arith.mulf %585, %540 : vector<2x32xf32>
    %593 = arith.mulf %580, %591 : vector<2x32xf32>
    %594 = arith.addf %592, %593 : vector<2x32xf32>
    %595 = math.tanh %594 : vector<2x32xf32>
    %596 = arith.mulf %590, %595 : vector<2x32xf32>
    %c0_262 = arith.constant 0 : index
    %c2_263 = arith.constant 2 : index
    %c0_264 = arith.constant 0 : index
    %597 = vector.load %arg13[%c0_262, %c2_263, %c0_264] : memref<2x16x128xf32, #tpu.memory_space<vmem>>, vector<1x2x128xf32>
    %598 = vector.shape_cast %597 : vector<1x2x128xf32> to vector<2x128xf32>
    %c1_265 = arith.constant 1 : index
    %c12_266 = arith.constant 12 : index
    %c0_267 = arith.constant 0 : index
    %599 = vector.load %arg13[%c1_265, %c12_266, %c0_267] : memref<2x16x128xf32, #tpu.memory_space<vmem>>, vector<1x2x128xf32>
    %600 = vector.shape_cast %599 : vector<1x2x128xf32> to vector<2x128xf32>
    %cst_268 = arith.constant dense<0.000000e+00> : vector<2x128xf32>
    %601 = tpu.matmul %570, %534, %cst_268 {dimension_numbers = #tpu.dot_dimension_numbers<[1], [0], [0], [1], [0, 0, 1, 1], [], []>} : vector<2x32xf32>, vector<32x128xf32>, vector<2x128xf32> -> vector<2x128xf32>
    %602 = arith.addf %598, %601 : vector<2x128xf32>
    %603 = vector.broadcast %5 : vector<1x128xf32> to vector<2x128xf32>
    %604 = arith.mulf %602, %603 : vector<2x128xf32>
    %605 = math.tanh %604 : vector<2x128xf32>
    %606 = vector.extract_strided_slice %605 {offsets = [0, 0], sizes = [2, 32], strides = [1, 1]} : vector<2x128xf32> to vector<2x32xf32>
    %cst_269 = arith.constant 1.000000e+00 : f32
    %607 = vector.broadcast %cst_269 : f32 to vector<2x32xf32>
    %608 = arith.addf %606, %607 : vector<2x32xf32>
    %cst_270 = arith.constant 5.000000e-01 : f32
    %609 = vector.broadcast %cst_270 : f32 to vector<2x32xf32>
    %610 = arith.mulf %609, %608 : vector<2x32xf32>
    %611 = vector.extract_strided_slice %605 {offsets = [0, 32], sizes = [2, 32], strides = [1, 1]} : vector<2x128xf32> to vector<2x32xf32>
    %cst_271 = arith.constant 1.000000e+00 : f32
    %612 = vector.broadcast %cst_271 : f32 to vector<2x32xf32>
    %613 = arith.addf %611, %612 : vector<2x32xf32>
    %cst_272 = arith.constant 5.000000e-01 : f32
    %614 = vector.broadcast %cst_272 : f32 to vector<2x32xf32>
    %615 = arith.mulf %614, %613 : vector<2x32xf32>
    %616 = vector.extract_strided_slice %605 {offsets = [0, 64], sizes = [2, 32], strides = [1, 1]} : vector<2x128xf32> to vector<2x32xf32>
    %cst_273 = arith.constant 1.000000e+00 : f32
    %617 = vector.broadcast %cst_273 : f32 to vector<2x32xf32>
    %618 = arith.addf %616, %617 : vector<2x32xf32>
    %cst_274 = arith.constant 5.000000e-01 : f32
    %619 = vector.broadcast %cst_274 : f32 to vector<2x32xf32>
    %620 = arith.mulf %619, %618 : vector<2x32xf32>
    %621 = vector.extract_strided_slice %605 {offsets = [0, 96], sizes = [2, 32], strides = [1, 1]} : vector<2x128xf32> to vector<2x32xf32>
    %622 = arith.mulf %615, %568 : vector<2x32xf32>
    %623 = arith.mulf %610, %621 : vector<2x32xf32>
    %624 = arith.addf %622, %623 : vector<2x32xf32>
    %625 = math.tanh %624 : vector<2x32xf32>
    %626 = arith.mulf %620, %625 : vector<2x32xf32>
    %cst_275 = arith.constant dense<0.000000e+00> : vector<2x128xf32>
    %627 = tpu.matmul %596, %536, %cst_275 {dimension_numbers = #tpu.dot_dimension_numbers<[1], [0], [0], [1], [0, 0, 1, 1], [], []>} : vector<2x32xf32>, vector<32x128xf32>, vector<2x128xf32> -> vector<2x128xf32>
    %628 = arith.addf %600, %627 : vector<2x128xf32>
    %629 = vector.broadcast %5 : vector<1x128xf32> to vector<2x128xf32>
    %630 = arith.mulf %628, %629 : vector<2x128xf32>
    %631 = math.tanh %630 : vector<2x128xf32>
    %632 = vector.extract_strided_slice %631 {offsets = [0, 0], sizes = [2, 32], strides = [1, 1]} : vector<2x128xf32> to vector<2x32xf32>
    %cst_276 = arith.constant 1.000000e+00 : f32
    %633 = vector.broadcast %cst_276 : f32 to vector<2x32xf32>
    %634 = arith.addf %632, %633 : vector<2x32xf32>
    %cst_277 = arith.constant 5.000000e-01 : f32
    %635 = vector.broadcast %cst_277 : f32 to vector<2x32xf32>
    %636 = arith.mulf %635, %634 : vector<2x32xf32>
    %637 = vector.extract_strided_slice %631 {offsets = [0, 32], sizes = [2, 32], strides = [1, 1]} : vector<2x128xf32> to vector<2x32xf32>
    %cst_278 = arith.constant 1.000000e+00 : f32
    %638 = vector.broadcast %cst_278 : f32 to vector<2x32xf32>
    %639 = arith.addf %637, %638 : vector<2x32xf32>
    %cst_279 = arith.constant 5.000000e-01 : f32
    %640 = vector.broadcast %cst_279 : f32 to vector<2x32xf32>
    %641 = arith.mulf %640, %639 : vector<2x32xf32>
    %642 = vector.extract_strided_slice %631 {offsets = [0, 64], sizes = [2, 32], strides = [1, 1]} : vector<2x128xf32> to vector<2x32xf32>
    %cst_280 = arith.constant 1.000000e+00 : f32
    %643 = vector.broadcast %cst_280 : f32 to vector<2x32xf32>
    %644 = arith.addf %642, %643 : vector<2x32xf32>
    %cst_281 = arith.constant 5.000000e-01 : f32
    %645 = vector.broadcast %cst_281 : f32 to vector<2x32xf32>
    %646 = arith.mulf %645, %644 : vector<2x32xf32>
    %647 = vector.extract_strided_slice %631 {offsets = [0, 96], sizes = [2, 32], strides = [1, 1]} : vector<2x128xf32> to vector<2x32xf32>
    %648 = arith.mulf %641, %594 : vector<2x32xf32>
    %649 = arith.mulf %636, %647 : vector<2x32xf32>
    %650 = arith.addf %648, %649 : vector<2x32xf32>
    %651 = math.tanh %650 : vector<2x32xf32>
    %652 = arith.mulf %646, %651 : vector<2x32xf32>
    %c0_282 = arith.constant 0 : index
    %c4_283 = arith.constant 4 : index
    %c0_284 = arith.constant 0 : index
    %653 = vector.load %arg13[%c0_282, %c4_283, %c0_284] : memref<2x16x128xf32, #tpu.memory_space<vmem>>, vector<1x2x128xf32>
    %654 = vector.shape_cast %653 : vector<1x2x128xf32> to vector<2x128xf32>
    %c1_285 = arith.constant 1 : index
    %c10_286 = arith.constant 10 : index
    %c0_287 = arith.constant 0 : index
    %655 = vector.load %arg13[%c1_285, %c10_286, %c0_287] : memref<2x16x128xf32, #tpu.memory_space<vmem>>, vector<1x2x128xf32>
    %656 = vector.shape_cast %655 : vector<1x2x128xf32> to vector<2x128xf32>
    %cst_288 = arith.constant dense<0.000000e+00> : vector<2x128xf32>
    %657 = tpu.matmul %626, %534, %cst_288 {dimension_numbers = #tpu.dot_dimension_numbers<[1], [0], [0], [1], [0, 0, 1, 1], [], []>} : vector<2x32xf32>, vector<32x128xf32>, vector<2x128xf32> -> vector<2x128xf32>
    %658 = arith.addf %654, %657 : vector<2x128xf32>
    %659 = vector.broadcast %5 : vector<1x128xf32> to vector<2x128xf32>
    %660 = arith.mulf %658, %659 : vector<2x128xf32>
    %661 = math.tanh %660 : vector<2x128xf32>
    %662 = vector.extract_strided_slice %661 {offsets = [0, 0], sizes = [2, 32], strides = [1, 1]} : vector<2x128xf32> to vector<2x32xf32>
    %cst_289 = arith.constant 1.000000e+00 : f32
    %663 = vector.broadcast %cst_289 : f32 to vector<2x32xf32>
    %664 = arith.addf %662, %663 : vector<2x32xf32>
    %cst_290 = arith.constant 5.000000e-01 : f32
    %665 = vector.broadcast %cst_290 : f32 to vector<2x32xf32>
    %666 = arith.mulf %665, %664 : vector<2x32xf32>
    %667 = vector.extract_strided_slice %661 {offsets = [0, 32], sizes = [2, 32], strides = [1, 1]} : vector<2x128xf32> to vector<2x32xf32>
    %cst_291 = arith.constant 1.000000e+00 : f32
    %668 = vector.broadcast %cst_291 : f32 to vector<2x32xf32>
    %669 = arith.addf %667, %668 : vector<2x32xf32>
    %cst_292 = arith.constant 5.000000e-01 : f32
    %670 = vector.broadcast %cst_292 : f32 to vector<2x32xf32>
    %671 = arith.mulf %670, %669 : vector<2x32xf32>
    %672 = vector.extract_strided_slice %661 {offsets = [0, 64], sizes = [2, 32], strides = [1, 1]} : vector<2x128xf32> to vector<2x32xf32>
    %cst_293 = arith.constant 1.000000e+00 : f32
    %673 = vector.broadcast %cst_293 : f32 to vector<2x32xf32>
    %674 = arith.addf %672, %673 : vector<2x32xf32>
    %cst_294 = arith.constant 5.000000e-01 : f32
    %675 = vector.broadcast %cst_294 : f32 to vector<2x32xf32>
    %676 = arith.mulf %675, %674 : vector<2x32xf32>
    %677 = vector.extract_strided_slice %661 {offsets = [0, 96], sizes = [2, 32], strides = [1, 1]} : vector<2x128xf32> to vector<2x32xf32>
    %678 = arith.mulf %671, %624 : vector<2x32xf32>
    %679 = arith.mulf %666, %677 : vector<2x32xf32>
    %680 = arith.addf %678, %679 : vector<2x32xf32>
    %681 = math.tanh %680 : vector<2x32xf32>
    %682 = arith.mulf %676, %681 : vector<2x32xf32>
    %cst_295 = arith.constant dense<0.000000e+00> : vector<2x128xf32>
    %683 = tpu.matmul %652, %536, %cst_295 {dimension_numbers = #tpu.dot_dimension_numbers<[1], [0], [0], [1], [0, 0, 1, 1], [], []>} : vector<2x32xf32>, vector<32x128xf32>, vector<2x128xf32> -> vector<2x128xf32>
    %684 = arith.addf %656, %683 : vector<2x128xf32>
    %685 = vector.broadcast %5 : vector<1x128xf32> to vector<2x128xf32>
    %686 = arith.mulf %684, %685 : vector<2x128xf32>
    %687 = math.tanh %686 : vector<2x128xf32>
    %688 = vector.extract_strided_slice %687 {offsets = [0, 0], sizes = [2, 32], strides = [1, 1]} : vector<2x128xf32> to vector<2x32xf32>
    %cst_296 = arith.constant 1.000000e+00 : f32
    %689 = vector.broadcast %cst_296 : f32 to vector<2x32xf32>
    %690 = arith.addf %688, %689 : vector<2x32xf32>
    %cst_297 = arith.constant 5.000000e-01 : f32
    %691 = vector.broadcast %cst_297 : f32 to vector<2x32xf32>
    %692 = arith.mulf %691, %690 : vector<2x32xf32>
    %693 = vector.extract_strided_slice %687 {offsets = [0, 32], sizes = [2, 32], strides = [1, 1]} : vector<2x128xf32> to vector<2x32xf32>
    %cst_298 = arith.constant 1.000000e+00 : f32
    %694 = vector.broadcast %cst_298 : f32 to vector<2x32xf32>
    %695 = arith.addf %693, %694 : vector<2x32xf32>
    %cst_299 = arith.constant 5.000000e-01 : f32
    %696 = vector.broadcast %cst_299 : f32 to vector<2x32xf32>
    %697 = arith.mulf %696, %695 : vector<2x32xf32>
    %698 = vector.extract_strided_slice %687 {offsets = [0, 64], sizes = [2, 32], strides = [1, 1]} : vector<2x128xf32> to vector<2x32xf32>
    %cst_300 = arith.constant 1.000000e+00 : f32
    %699 = vector.broadcast %cst_300 : f32 to vector<2x32xf32>
    %700 = arith.addf %698, %699 : vector<2x32xf32>
    %cst_301 = arith.constant 5.000000e-01 : f32
    %701 = vector.broadcast %cst_301 : f32 to vector<2x32xf32>
    %702 = arith.mulf %701, %700 : vector<2x32xf32>
    %703 = vector.extract_strided_slice %687 {offsets = [0, 96], sizes = [2, 32], strides = [1, 1]} : vector<2x128xf32> to vector<2x32xf32>
    %704 = arith.mulf %697, %650 : vector<2x32xf32>
    %705 = arith.mulf %692, %703 : vector<2x32xf32>
    %706 = arith.addf %704, %705 : vector<2x32xf32>
    %707 = math.tanh %706 : vector<2x32xf32>
    %708 = arith.mulf %702, %707 : vector<2x32xf32>
    %c0_302 = arith.constant 0 : index
    %c6_303 = arith.constant 6 : index
    %c0_304 = arith.constant 0 : index
    %709 = vector.load %arg13[%c0_302, %c6_303, %c0_304] : memref<2x16x128xf32, #tpu.memory_space<vmem>>, vector<1x2x128xf32>
    %710 = vector.shape_cast %709 : vector<1x2x128xf32> to vector<2x128xf32>
    %c1_305 = arith.constant 1 : index
    %c8_306 = arith.constant 8 : index
    %c0_307 = arith.constant 0 : index
    %711 = vector.load %arg13[%c1_305, %c8_306, %c0_307] : memref<2x16x128xf32, #tpu.memory_space<vmem>>, vector<1x2x128xf32>
    %712 = vector.shape_cast %711 : vector<1x2x128xf32> to vector<2x128xf32>
    %cst_308 = arith.constant dense<0.000000e+00> : vector<2x128xf32>
    %713 = tpu.matmul %682, %534, %cst_308 {dimension_numbers = #tpu.dot_dimension_numbers<[1], [0], [0], [1], [0, 0, 1, 1], [], []>} : vector<2x32xf32>, vector<32x128xf32>, vector<2x128xf32> -> vector<2x128xf32>
    %714 = arith.addf %710, %713 : vector<2x128xf32>
    %715 = vector.broadcast %5 : vector<1x128xf32> to vector<2x128xf32>
    %716 = arith.mulf %714, %715 : vector<2x128xf32>
    %717 = math.tanh %716 : vector<2x128xf32>
    %718 = vector.extract_strided_slice %717 {offsets = [0, 0], sizes = [2, 32], strides = [1, 1]} : vector<2x128xf32> to vector<2x32xf32>
    %cst_309 = arith.constant 1.000000e+00 : f32
    %719 = vector.broadcast %cst_309 : f32 to vector<2x32xf32>
    %720 = arith.addf %718, %719 : vector<2x32xf32>
    %cst_310 = arith.constant 5.000000e-01 : f32
    %721 = vector.broadcast %cst_310 : f32 to vector<2x32xf32>
    %722 = arith.mulf %721, %720 : vector<2x32xf32>
    %723 = vector.extract_strided_slice %717 {offsets = [0, 32], sizes = [2, 32], strides = [1, 1]} : vector<2x128xf32> to vector<2x32xf32>
    %cst_311 = arith.constant 1.000000e+00 : f32
    %724 = vector.broadcast %cst_311 : f32 to vector<2x32xf32>
    %725 = arith.addf %723, %724 : vector<2x32xf32>
    %cst_312 = arith.constant 5.000000e-01 : f32
    %726 = vector.broadcast %cst_312 : f32 to vector<2x32xf32>
    %727 = arith.mulf %726, %725 : vector<2x32xf32>
    %728 = vector.extract_strided_slice %717 {offsets = [0, 64], sizes = [2, 32], strides = [1, 1]} : vector<2x128xf32> to vector<2x32xf32>
    %cst_313 = arith.constant 1.000000e+00 : f32
    %729 = vector.broadcast %cst_313 : f32 to vector<2x32xf32>
    %730 = arith.addf %728, %729 : vector<2x32xf32>
    %cst_314 = arith.constant 5.000000e-01 : f32
    %731 = vector.broadcast %cst_314 : f32 to vector<2x32xf32>
    %732 = arith.mulf %731, %730 : vector<2x32xf32>
    %733 = vector.extract_strided_slice %717 {offsets = [0, 96], sizes = [2, 32], strides = [1, 1]} : vector<2x128xf32> to vector<2x32xf32>
    %734 = arith.mulf %727, %680 : vector<2x32xf32>
    %735 = arith.mulf %722, %733 : vector<2x32xf32>
    %736 = arith.addf %734, %735 : vector<2x32xf32>
    %737 = math.tanh %736 : vector<2x32xf32>
    %738 = arith.mulf %732, %737 : vector<2x32xf32>
    %cst_315 = arith.constant dense<0.000000e+00> : vector<2x128xf32>
    %739 = tpu.matmul %708, %536, %cst_315 {dimension_numbers = #tpu.dot_dimension_numbers<[1], [0], [0], [1], [0, 0, 1, 1], [], []>} : vector<2x32xf32>, vector<32x128xf32>, vector<2x128xf32> -> vector<2x128xf32>
    %740 = arith.addf %712, %739 : vector<2x128xf32>
    %741 = vector.broadcast %5 : vector<1x128xf32> to vector<2x128xf32>
    %742 = arith.mulf %740, %741 : vector<2x128xf32>
    %743 = math.tanh %742 : vector<2x128xf32>
    %744 = vector.extract_strided_slice %743 {offsets = [0, 0], sizes = [2, 32], strides = [1, 1]} : vector<2x128xf32> to vector<2x32xf32>
    %cst_316 = arith.constant 1.000000e+00 : f32
    %745 = vector.broadcast %cst_316 : f32 to vector<2x32xf32>
    %746 = arith.addf %744, %745 : vector<2x32xf32>
    %cst_317 = arith.constant 5.000000e-01 : f32
    %747 = vector.broadcast %cst_317 : f32 to vector<2x32xf32>
    %748 = arith.mulf %747, %746 : vector<2x32xf32>
    %749 = vector.extract_strided_slice %743 {offsets = [0, 32], sizes = [2, 32], strides = [1, 1]} : vector<2x128xf32> to vector<2x32xf32>
    %cst_318 = arith.constant 1.000000e+00 : f32
    %750 = vector.broadcast %cst_318 : f32 to vector<2x32xf32>
    %751 = arith.addf %749, %750 : vector<2x32xf32>
    %cst_319 = arith.constant 5.000000e-01 : f32
    %752 = vector.broadcast %cst_319 : f32 to vector<2x32xf32>
    %753 = arith.mulf %752, %751 : vector<2x32xf32>
    %754 = vector.extract_strided_slice %743 {offsets = [0, 64], sizes = [2, 32], strides = [1, 1]} : vector<2x128xf32> to vector<2x32xf32>
    %cst_320 = arith.constant 1.000000e+00 : f32
    %755 = vector.broadcast %cst_320 : f32 to vector<2x32xf32>
    %756 = arith.addf %754, %755 : vector<2x32xf32>
    %cst_321 = arith.constant 5.000000e-01 : f32
    %757 = vector.broadcast %cst_321 : f32 to vector<2x32xf32>
    %758 = arith.mulf %757, %756 : vector<2x32xf32>
    %759 = vector.extract_strided_slice %743 {offsets = [0, 96], sizes = [2, 32], strides = [1, 1]} : vector<2x128xf32> to vector<2x32xf32>
    %760 = arith.mulf %753, %706 : vector<2x32xf32>
    %761 = arith.mulf %748, %759 : vector<2x32xf32>
    %762 = arith.addf %760, %761 : vector<2x32xf32>
    %763 = math.tanh %762 : vector<2x32xf32>
    %764 = arith.mulf %758, %763 : vector<2x32xf32>
    %c0_322 = arith.constant 0 : index
    %c8_323 = arith.constant 8 : index
    %c0_324 = arith.constant 0 : index
    %765 = vector.load %arg13[%c0_322, %c8_323, %c0_324] : memref<2x16x128xf32, #tpu.memory_space<vmem>>, vector<1x2x128xf32>
    %766 = vector.shape_cast %765 : vector<1x2x128xf32> to vector<2x128xf32>
    %c1_325 = arith.constant 1 : index
    %c6_326 = arith.constant 6 : index
    %c0_327 = arith.constant 0 : index
    %767 = vector.load %arg13[%c1_325, %c6_326, %c0_327] : memref<2x16x128xf32, #tpu.memory_space<vmem>>, vector<1x2x128xf32>
    %768 = vector.shape_cast %767 : vector<1x2x128xf32> to vector<2x128xf32>
    %cst_328 = arith.constant dense<0.000000e+00> : vector<2x128xf32>
    %769 = tpu.matmul %738, %534, %cst_328 {dimension_numbers = #tpu.dot_dimension_numbers<[1], [0], [0], [1], [0, 0, 1, 1], [], []>} : vector<2x32xf32>, vector<32x128xf32>, vector<2x128xf32> -> vector<2x128xf32>
    %770 = arith.addf %766, %769 : vector<2x128xf32>
    %771 = vector.broadcast %5 : vector<1x128xf32> to vector<2x128xf32>
    %772 = arith.mulf %770, %771 : vector<2x128xf32>
    %773 = math.tanh %772 : vector<2x128xf32>
    %774 = vector.extract_strided_slice %773 {offsets = [0, 0], sizes = [2, 32], strides = [1, 1]} : vector<2x128xf32> to vector<2x32xf32>
    %cst_329 = arith.constant 1.000000e+00 : f32
    %775 = vector.broadcast %cst_329 : f32 to vector<2x32xf32>
    %776 = arith.addf %774, %775 : vector<2x32xf32>
    %cst_330 = arith.constant 5.000000e-01 : f32
    %777 = vector.broadcast %cst_330 : f32 to vector<2x32xf32>
    %778 = arith.mulf %777, %776 : vector<2x32xf32>
    %779 = vector.extract_strided_slice %773 {offsets = [0, 32], sizes = [2, 32], strides = [1, 1]} : vector<2x128xf32> to vector<2x32xf32>
    %cst_331 = arith.constant 1.000000e+00 : f32
    %780 = vector.broadcast %cst_331 : f32 to vector<2x32xf32>
    %781 = arith.addf %779, %780 : vector<2x32xf32>
    %cst_332 = arith.constant 5.000000e-01 : f32
    %782 = vector.broadcast %cst_332 : f32 to vector<2x32xf32>
    %783 = arith.mulf %782, %781 : vector<2x32xf32>
    %784 = vector.extract_strided_slice %773 {offsets = [0, 64], sizes = [2, 32], strides = [1, 1]} : vector<2x128xf32> to vector<2x32xf32>
    %cst_333 = arith.constant 1.000000e+00 : f32
    %785 = vector.broadcast %cst_333 : f32 to vector<2x32xf32>
    %786 = arith.addf %784, %785 : vector<2x32xf32>
    %cst_334 = arith.constant 5.000000e-01 : f32
    %787 = vector.broadcast %cst_334 : f32 to vector<2x32xf32>
    %788 = arith.mulf %787, %786 : vector<2x32xf32>
    %789 = vector.extract_strided_slice %773 {offsets = [0, 96], sizes = [2, 32], strides = [1, 1]} : vector<2x128xf32> to vector<2x32xf32>
    %790 = arith.mulf %783, %736 : vector<2x32xf32>
    %791 = arith.mulf %778, %789 : vector<2x32xf32>
    %792 = arith.addf %790, %791 : vector<2x32xf32>
    %793 = math.tanh %792 : vector<2x32xf32>
    %794 = arith.mulf %788, %793 : vector<2x32xf32>
    %cst_335 = arith.constant dense<0.000000e+00> : vector<2x128xf32>
    %795 = tpu.matmul %764, %536, %cst_335 {dimension_numbers = #tpu.dot_dimension_numbers<[1], [0], [0], [1], [0, 0, 1, 1], [], []>} : vector<2x32xf32>, vector<32x128xf32>, vector<2x128xf32> -> vector<2x128xf32>
    %796 = arith.addf %768, %795 : vector<2x128xf32>
    %797 = vector.broadcast %5 : vector<1x128xf32> to vector<2x128xf32>
    %798 = arith.mulf %796, %797 : vector<2x128xf32>
    %799 = math.tanh %798 : vector<2x128xf32>
    %800 = vector.extract_strided_slice %799 {offsets = [0, 0], sizes = [2, 32], strides = [1, 1]} : vector<2x128xf32> to vector<2x32xf32>
    %cst_336 = arith.constant 1.000000e+00 : f32
    %801 = vector.broadcast %cst_336 : f32 to vector<2x32xf32>
    %802 = arith.addf %800, %801 : vector<2x32xf32>
    %cst_337 = arith.constant 5.000000e-01 : f32
    %803 = vector.broadcast %cst_337 : f32 to vector<2x32xf32>
    %804 = arith.mulf %803, %802 : vector<2x32xf32>
    %805 = vector.extract_strided_slice %799 {offsets = [0, 32], sizes = [2, 32], strides = [1, 1]} : vector<2x128xf32> to vector<2x32xf32>
    %cst_338 = arith.constant 1.000000e+00 : f32
    %806 = vector.broadcast %cst_338 : f32 to vector<2x32xf32>
    %807 = arith.addf %805, %806 : vector<2x32xf32>
    %cst_339 = arith.constant 5.000000e-01 : f32
    %808 = vector.broadcast %cst_339 : f32 to vector<2x32xf32>
    %809 = arith.mulf %808, %807 : vector<2x32xf32>
    %810 = vector.extract_strided_slice %799 {offsets = [0, 64], sizes = [2, 32], strides = [1, 1]} : vector<2x128xf32> to vector<2x32xf32>
    %cst_340 = arith.constant 1.000000e+00 : f32
    %811 = vector.broadcast %cst_340 : f32 to vector<2x32xf32>
    %812 = arith.addf %810, %811 : vector<2x32xf32>
    %cst_341 = arith.constant 5.000000e-01 : f32
    %813 = vector.broadcast %cst_341 : f32 to vector<2x32xf32>
    %814 = arith.mulf %813, %812 : vector<2x32xf32>
    %815 = vector.extract_strided_slice %799 {offsets = [0, 96], sizes = [2, 32], strides = [1, 1]} : vector<2x128xf32> to vector<2x32xf32>
    %816 = arith.mulf %809, %762 : vector<2x32xf32>
    %817 = arith.mulf %804, %815 : vector<2x32xf32>
    %818 = arith.addf %816, %817 : vector<2x32xf32>
    %819 = math.tanh %818 : vector<2x32xf32>
    %820 = arith.mulf %814, %819 : vector<2x32xf32>
    %c0_342 = arith.constant 0 : index
    %c10_343 = arith.constant 10 : index
    %c0_344 = arith.constant 0 : index
    %821 = vector.load %arg13[%c0_342, %c10_343, %c0_344] : memref<2x16x128xf32, #tpu.memory_space<vmem>>, vector<1x2x128xf32>
    %822 = vector.shape_cast %821 : vector<1x2x128xf32> to vector<2x128xf32>
    %c1_345 = arith.constant 1 : index
    %c4_346 = arith.constant 4 : index
    %c0_347 = arith.constant 0 : index
    %823 = vector.load %arg13[%c1_345, %c4_346, %c0_347] : memref<2x16x128xf32, #tpu.memory_space<vmem>>, vector<1x2x128xf32>
    %824 = vector.shape_cast %823 : vector<1x2x128xf32> to vector<2x128xf32>
    %cst_348 = arith.constant dense<0.000000e+00> : vector<2x128xf32>
    %825 = tpu.matmul %794, %534, %cst_348 {dimension_numbers = #tpu.dot_dimension_numbers<[1], [0], [0], [1], [0, 0, 1, 1], [], []>} : vector<2x32xf32>, vector<32x128xf32>, vector<2x128xf32> -> vector<2x128xf32>
    %826 = arith.addf %822, %825 : vector<2x128xf32>
    %827 = vector.broadcast %5 : vector<1x128xf32> to vector<2x128xf32>
    %828 = arith.mulf %826, %827 : vector<2x128xf32>
    %829 = math.tanh %828 : vector<2x128xf32>
    %830 = vector.extract_strided_slice %829 {offsets = [0, 0], sizes = [2, 32], strides = [1, 1]} : vector<2x128xf32> to vector<2x32xf32>
    %cst_349 = arith.constant 1.000000e+00 : f32
    %831 = vector.broadcast %cst_349 : f32 to vector<2x32xf32>
    %832 = arith.addf %830, %831 : vector<2x32xf32>
    %cst_350 = arith.constant 5.000000e-01 : f32
    %833 = vector.broadcast %cst_350 : f32 to vector<2x32xf32>
    %834 = arith.mulf %833, %832 : vector<2x32xf32>
    %835 = vector.extract_strided_slice %829 {offsets = [0, 32], sizes = [2, 32], strides = [1, 1]} : vector<2x128xf32> to vector<2x32xf32>
    %cst_351 = arith.constant 1.000000e+00 : f32
    %836 = vector.broadcast %cst_351 : f32 to vector<2x32xf32>
    %837 = arith.addf %835, %836 : vector<2x32xf32>
    %cst_352 = arith.constant 5.000000e-01 : f32
    %838 = vector.broadcast %cst_352 : f32 to vector<2x32xf32>
    %839 = arith.mulf %838, %837 : vector<2x32xf32>
    %840 = vector.extract_strided_slice %829 {offsets = [0, 64], sizes = [2, 32], strides = [1, 1]} : vector<2x128xf32> to vector<2x32xf32>
    %cst_353 = arith.constant 1.000000e+00 : f32
    %841 = vector.broadcast %cst_353 : f32 to vector<2x32xf32>
    %842 = arith.addf %840, %841 : vector<2x32xf32>
    %cst_354 = arith.constant 5.000000e-01 : f32
    %843 = vector.broadcast %cst_354 : f32 to vector<2x32xf32>
    %844 = arith.mulf %843, %842 : vector<2x32xf32>
    %845 = vector.extract_strided_slice %829 {offsets = [0, 96], sizes = [2, 32], strides = [1, 1]} : vector<2x128xf32> to vector<2x32xf32>
    %846 = arith.mulf %839, %792 : vector<2x32xf32>
    %847 = arith.mulf %834, %845 : vector<2x32xf32>
    %848 = arith.addf %846, %847 : vector<2x32xf32>
    %849 = math.tanh %848 : vector<2x32xf32>
    %850 = arith.mulf %844, %849 : vector<2x32xf32>
    %cst_355 = arith.constant dense<0.000000e+00> : vector<2x128xf32>
    %851 = tpu.matmul %820, %536, %cst_355 {dimension_numbers = #tpu.dot_dimension_numbers<[1], [0], [0], [1], [0, 0, 1, 1], [], []>} : vector<2x32xf32>, vector<32x128xf32>, vector<2x128xf32> -> vector<2x128xf32>
    %852 = arith.addf %824, %851 : vector<2x128xf32>
    %853 = vector.broadcast %5 : vector<1x128xf32> to vector<2x128xf32>
    %854 = arith.mulf %852, %853 : vector<2x128xf32>
    %855 = math.tanh %854 : vector<2x128xf32>
    %856 = vector.extract_strided_slice %855 {offsets = [0, 0], sizes = [2, 32], strides = [1, 1]} : vector<2x128xf32> to vector<2x32xf32>
    %cst_356 = arith.constant 1.000000e+00 : f32
    %857 = vector.broadcast %cst_356 : f32 to vector<2x32xf32>
    %858 = arith.addf %856, %857 : vector<2x32xf32>
    %cst_357 = arith.constant 5.000000e-01 : f32
    %859 = vector.broadcast %cst_357 : f32 to vector<2x32xf32>
    %860 = arith.mulf %859, %858 : vector<2x32xf32>
    %861 = vector.extract_strided_slice %855 {offsets = [0, 32], sizes = [2, 32], strides = [1, 1]} : vector<2x128xf32> to vector<2x32xf32>
    %cst_358 = arith.constant 1.000000e+00 : f32
    %862 = vector.broadcast %cst_358 : f32 to vector<2x32xf32>
    %863 = arith.addf %861, %862 : vector<2x32xf32>
    %cst_359 = arith.constant 5.000000e-01 : f32
    %864 = vector.broadcast %cst_359 : f32 to vector<2x32xf32>
    %865 = arith.mulf %864, %863 : vector<2x32xf32>
    %866 = vector.extract_strided_slice %855 {offsets = [0, 64], sizes = [2, 32], strides = [1, 1]} : vector<2x128xf32> to vector<2x32xf32>
    %cst_360 = arith.constant 1.000000e+00 : f32
    %867 = vector.broadcast %cst_360 : f32 to vector<2x32xf32>
    %868 = arith.addf %866, %867 : vector<2x32xf32>
    %cst_361 = arith.constant 5.000000e-01 : f32
    %869 = vector.broadcast %cst_361 : f32 to vector<2x32xf32>
    %870 = arith.mulf %869, %868 : vector<2x32xf32>
    %871 = vector.extract_strided_slice %855 {offsets = [0, 96], sizes = [2, 32], strides = [1, 1]} : vector<2x128xf32> to vector<2x32xf32>
    %872 = arith.mulf %865, %818 : vector<2x32xf32>
    %873 = arith.mulf %860, %871 : vector<2x32xf32>
    %874 = arith.addf %872, %873 : vector<2x32xf32>
    %875 = math.tanh %874 : vector<2x32xf32>
    %876 = arith.mulf %870, %875 : vector<2x32xf32>
    %c0_362 = arith.constant 0 : index
    %c12_363 = arith.constant 12 : index
    %c0_364 = arith.constant 0 : index
    %877 = vector.load %arg13[%c0_362, %c12_363, %c0_364] : memref<2x16x128xf32, #tpu.memory_space<vmem>>, vector<1x2x128xf32>
    %878 = vector.shape_cast %877 : vector<1x2x128xf32> to vector<2x128xf32>
    %c1_365 = arith.constant 1 : index
    %c2_366 = arith.constant 2 : index
    %c0_367 = arith.constant 0 : index
    %879 = vector.load %arg13[%c1_365, %c2_366, %c0_367] : memref<2x16x128xf32, #tpu.memory_space<vmem>>, vector<1x2x128xf32>
    %880 = vector.shape_cast %879 : vector<1x2x128xf32> to vector<2x128xf32>
    %cst_368 = arith.constant dense<0.000000e+00> : vector<2x128xf32>
    %881 = tpu.matmul %850, %534, %cst_368 {dimension_numbers = #tpu.dot_dimension_numbers<[1], [0], [0], [1], [0, 0, 1, 1], [], []>} : vector<2x32xf32>, vector<32x128xf32>, vector<2x128xf32> -> vector<2x128xf32>
    %882 = arith.addf %878, %881 : vector<2x128xf32>
    %883 = vector.broadcast %5 : vector<1x128xf32> to vector<2x128xf32>
    %884 = arith.mulf %882, %883 : vector<2x128xf32>
    %885 = math.tanh %884 : vector<2x128xf32>
    %886 = vector.extract_strided_slice %885 {offsets = [0, 0], sizes = [2, 32], strides = [1, 1]} : vector<2x128xf32> to vector<2x32xf32>
    %cst_369 = arith.constant 1.000000e+00 : f32
    %887 = vector.broadcast %cst_369 : f32 to vector<2x32xf32>
    %888 = arith.addf %886, %887 : vector<2x32xf32>
    %cst_370 = arith.constant 5.000000e-01 : f32
    %889 = vector.broadcast %cst_370 : f32 to vector<2x32xf32>
    %890 = arith.mulf %889, %888 : vector<2x32xf32>
    %891 = vector.extract_strided_slice %885 {offsets = [0, 32], sizes = [2, 32], strides = [1, 1]} : vector<2x128xf32> to vector<2x32xf32>
    %cst_371 = arith.constant 1.000000e+00 : f32
    %892 = vector.broadcast %cst_371 : f32 to vector<2x32xf32>
    %893 = arith.addf %891, %892 : vector<2x32xf32>
    %cst_372 = arith.constant 5.000000e-01 : f32
    %894 = vector.broadcast %cst_372 : f32 to vector<2x32xf32>
    %895 = arith.mulf %894, %893 : vector<2x32xf32>
    %896 = vector.extract_strided_slice %885 {offsets = [0, 64], sizes = [2, 32], strides = [1, 1]} : vector<2x128xf32> to vector<2x32xf32>
    %cst_373 = arith.constant 1.000000e+00 : f32
    %897 = vector.broadcast %cst_373 : f32 to vector<2x32xf32>
    %898 = arith.addf %896, %897 : vector<2x32xf32>
    %cst_374 = arith.constant 5.000000e-01 : f32
    %899 = vector.broadcast %cst_374 : f32 to vector<2x32xf32>
    %900 = arith.mulf %899, %898 : vector<2x32xf32>
    %901 = vector.extract_strided_slice %885 {offsets = [0, 96], sizes = [2, 32], strides = [1, 1]} : vector<2x128xf32> to vector<2x32xf32>
    %902 = arith.mulf %895, %848 : vector<2x32xf32>
    %903 = arith.mulf %890, %901 : vector<2x32xf32>
    %904 = arith.addf %902, %903 : vector<2x32xf32>
    %905 = math.tanh %904 : vector<2x32xf32>
    %906 = arith.mulf %900, %905 : vector<2x32xf32>
    %cst_375 = arith.constant dense<0.000000e+00> : vector<2x128xf32>
    %907 = tpu.matmul %876, %536, %cst_375 {dimension_numbers = #tpu.dot_dimension_numbers<[1], [0], [0], [1], [0, 0, 1, 1], [], []>} : vector<2x32xf32>, vector<32x128xf32>, vector<2x128xf32> -> vector<2x128xf32>
    %908 = arith.addf %880, %907 : vector<2x128xf32>
    %909 = vector.broadcast %5 : vector<1x128xf32> to vector<2x128xf32>
    %910 = arith.mulf %908, %909 : vector<2x128xf32>
    %911 = math.tanh %910 : vector<2x128xf32>
    %912 = vector.extract_strided_slice %911 {offsets = [0, 0], sizes = [2, 32], strides = [1, 1]} : vector<2x128xf32> to vector<2x32xf32>
    %cst_376 = arith.constant 1.000000e+00 : f32
    %913 = vector.broadcast %cst_376 : f32 to vector<2x32xf32>
    %914 = arith.addf %912, %913 : vector<2x32xf32>
    %cst_377 = arith.constant 5.000000e-01 : f32
    %915 = vector.broadcast %cst_377 : f32 to vector<2x32xf32>
    %916 = arith.mulf %915, %914 : vector<2x32xf32>
    %917 = vector.extract_strided_slice %911 {offsets = [0, 32], sizes = [2, 32], strides = [1, 1]} : vector<2x128xf32> to vector<2x32xf32>
    %cst_378 = arith.constant 1.000000e+00 : f32
    %918 = vector.broadcast %cst_378 : f32 to vector<2x32xf32>
    %919 = arith.addf %917, %918 : vector<2x32xf32>
    %cst_379 = arith.constant 5.000000e-01 : f32
    %920 = vector.broadcast %cst_379 : f32 to vector<2x32xf32>
    %921 = arith.mulf %920, %919 : vector<2x32xf32>
    %922 = vector.extract_strided_slice %911 {offsets = [0, 64], sizes = [2, 32], strides = [1, 1]} : vector<2x128xf32> to vector<2x32xf32>
    %cst_380 = arith.constant 1.000000e+00 : f32
    %923 = vector.broadcast %cst_380 : f32 to vector<2x32xf32>
    %924 = arith.addf %922, %923 : vector<2x32xf32>
    %cst_381 = arith.constant 5.000000e-01 : f32
    %925 = vector.broadcast %cst_381 : f32 to vector<2x32xf32>
    %926 = arith.mulf %925, %924 : vector<2x32xf32>
    %927 = vector.extract_strided_slice %911 {offsets = [0, 96], sizes = [2, 32], strides = [1, 1]} : vector<2x128xf32> to vector<2x32xf32>
    %928 = arith.mulf %921, %874 : vector<2x32xf32>
    %929 = arith.mulf %916, %927 : vector<2x32xf32>
    %930 = arith.addf %928, %929 : vector<2x32xf32>
    %931 = math.tanh %930 : vector<2x32xf32>
    %932 = arith.mulf %926, %931 : vector<2x32xf32>
    %c0_382 = arith.constant 0 : index
    %c14_383 = arith.constant 14 : index
    %c0_384 = arith.constant 0 : index
    %933 = vector.load %arg13[%c0_382, %c14_383, %c0_384] : memref<2x16x128xf32, #tpu.memory_space<vmem>>, vector<1x2x128xf32>
    %934 = vector.shape_cast %933 : vector<1x2x128xf32> to vector<2x128xf32>
    %c1_385 = arith.constant 1 : index
    %c0_386 = arith.constant 0 : index
    %c0_387 = arith.constant 0 : index
    %935 = vector.load %arg13[%c1_385, %c0_386, %c0_387] : memref<2x16x128xf32, #tpu.memory_space<vmem>>, vector<1x2x128xf32>
    %936 = vector.shape_cast %935 : vector<1x2x128xf32> to vector<2x128xf32>
    %cst_388 = arith.constant dense<0.000000e+00> : vector<2x128xf32>
    %937 = tpu.matmul %906, %534, %cst_388 {dimension_numbers = #tpu.dot_dimension_numbers<[1], [0], [0], [1], [0, 0, 1, 1], [], []>} : vector<2x32xf32>, vector<32x128xf32>, vector<2x128xf32> -> vector<2x128xf32>
    %938 = arith.addf %934, %937 : vector<2x128xf32>
    %939 = vector.broadcast %5 : vector<1x128xf32> to vector<2x128xf32>
    %940 = arith.mulf %938, %939 : vector<2x128xf32>
    %941 = math.tanh %940 : vector<2x128xf32>
    %942 = vector.extract_strided_slice %941 {offsets = [0, 0], sizes = [2, 32], strides = [1, 1]} : vector<2x128xf32> to vector<2x32xf32>
    %cst_389 = arith.constant 1.000000e+00 : f32
    %943 = vector.broadcast %cst_389 : f32 to vector<2x32xf32>
    %944 = arith.addf %942, %943 : vector<2x32xf32>
    %cst_390 = arith.constant 5.000000e-01 : f32
    %945 = vector.broadcast %cst_390 : f32 to vector<2x32xf32>
    %946 = arith.mulf %945, %944 : vector<2x32xf32>
    %947 = vector.extract_strided_slice %941 {offsets = [0, 32], sizes = [2, 32], strides = [1, 1]} : vector<2x128xf32> to vector<2x32xf32>
    %cst_391 = arith.constant 1.000000e+00 : f32
    %948 = vector.broadcast %cst_391 : f32 to vector<2x32xf32>
    %949 = arith.addf %947, %948 : vector<2x32xf32>
    %cst_392 = arith.constant 5.000000e-01 : f32
    %950 = vector.broadcast %cst_392 : f32 to vector<2x32xf32>
    %951 = arith.mulf %950, %949 : vector<2x32xf32>
    %952 = vector.extract_strided_slice %941 {offsets = [0, 96], sizes = [2, 32], strides = [1, 1]} : vector<2x128xf32> to vector<2x32xf32>
    %953 = arith.mulf %951, %904 : vector<2x32xf32>
    %954 = arith.mulf %946, %952 : vector<2x32xf32>
    %955 = arith.addf %953, %954 : vector<2x32xf32>
    %cst_393 = arith.constant dense<0.000000e+00> : vector<2x128xf32>
    %956 = tpu.matmul %932, %536, %cst_393 {dimension_numbers = #tpu.dot_dimension_numbers<[1], [0], [0], [1], [0, 0, 1, 1], [], []>} : vector<2x32xf32>, vector<32x128xf32>, vector<2x128xf32> -> vector<2x128xf32>
    %957 = arith.addf %936, %956 : vector<2x128xf32>
    %958 = vector.broadcast %5 : vector<1x128xf32> to vector<2x128xf32>
    %959 = arith.mulf %957, %958 : vector<2x128xf32>
    %960 = math.tanh %959 : vector<2x128xf32>
    %961 = vector.extract_strided_slice %960 {offsets = [0, 0], sizes = [2, 32], strides = [1, 1]} : vector<2x128xf32> to vector<2x32xf32>
    %cst_394 = arith.constant 1.000000e+00 : f32
    %962 = vector.broadcast %cst_394 : f32 to vector<2x32xf32>
    %963 = arith.addf %961, %962 : vector<2x32xf32>
    %cst_395 = arith.constant 5.000000e-01 : f32
    %964 = vector.broadcast %cst_395 : f32 to vector<2x32xf32>
    %965 = arith.mulf %964, %963 : vector<2x32xf32>
    %966 = vector.extract_strided_slice %960 {offsets = [0, 32], sizes = [2, 32], strides = [1, 1]} : vector<2x128xf32> to vector<2x32xf32>
    %cst_396 = arith.constant 1.000000e+00 : f32
    %967 = vector.broadcast %cst_396 : f32 to vector<2x32xf32>
    %968 = arith.addf %966, %967 : vector<2x32xf32>
    %cst_397 = arith.constant 5.000000e-01 : f32
    %969 = vector.broadcast %cst_397 : f32 to vector<2x32xf32>
    %970 = arith.mulf %969, %968 : vector<2x32xf32>
    %971 = vector.extract_strided_slice %960 {offsets = [0, 96], sizes = [2, 32], strides = [1, 1]} : vector<2x128xf32> to vector<2x32xf32>
    %972 = arith.mulf %970, %930 : vector<2x32xf32>
    %973 = arith.mulf %965, %971 : vector<2x32xf32>
    %974 = arith.addf %972, %973 : vector<2x32xf32>
    %c0_398 = arith.constant 0 : index
    %c0_399 = arith.constant 0 : index
    %975 = vector.load %arg6[%c0_398, %c0_399] : memref<1x8xf32, #tpu.memory_space<vmem>>, vector<1x8xf32>
    %c0_400 = arith.constant 0 : index
    %c0_401 = arith.constant 0 : index
    %976 = vector.load %arg7[%c0_400, %c0_401] : memref<1x8xf32, #tpu.memory_space<vmem>>, vector<1x8xf32>
    %c0_402 = arith.constant 0 : index
    %c0_403 = arith.constant 0 : index
    %c0_404 = arith.constant 0 : index
    %977 = vector.load %arg4[%c0_402, %c0_403, %c0_404] : memref<4x32x8xf32, #tpu.memory_space<vmem>>, vector<1x32x8xf32>
    %978 = vector.shape_cast %977 : vector<1x32x8xf32> to vector<32x8xf32>
    %cst_405 = arith.constant dense<0.000000e+00> : vector<2x8xf32>
    %979 = tpu.matmul %475, %978, %cst_405 {dimension_numbers = #tpu.dot_dimension_numbers<[1], [0], [0], [1], [0, 0, 1, 1], [], []>} : vector<2x32xf32>, vector<32x8xf32>, vector<2x8xf32> -> vector<2x8xf32>
    %980 = vector.broadcast %975 : vector<1x8xf32> to vector<2x8xf32>
    %981 = arith.addf %980, %979 : vector<2x8xf32>
    %c0_406 = arith.constant 0 : index
    %c0_407 = arith.constant 0 : index
    %c0_408 = arith.constant 0 : index
    %982 = vector.load %arg5[%c0_406, %c0_407, %c0_408] : memref<4x32x8xf32, #tpu.memory_space<vmem>>, vector<1x32x8xf32>
    %983 = vector.shape_cast %982 : vector<1x32x8xf32> to vector<32x8xf32>
    %cst_409 = arith.constant dense<0.000000e+00> : vector<2x8xf32>
    %984 = tpu.matmul %475, %983, %cst_409 {dimension_numbers = #tpu.dot_dimension_numbers<[1], [0], [0], [1], [0, 0, 1, 1], [], []>} : vector<2x32xf32>, vector<32x8xf32>, vector<2x8xf32> -> vector<2x8xf32>
    %985 = vector.broadcast %976 : vector<1x8xf32> to vector<2x8xf32>
    %986 = arith.addf %985, %984 : vector<2x8xf32>
    %c1_410 = arith.constant 1 : index
    %c0_411 = arith.constant 0 : index
    %c0_412 = arith.constant 0 : index
    %987 = vector.load %arg4[%c1_410, %c0_411, %c0_412] : memref<4x32x8xf32, #tpu.memory_space<vmem>>, vector<1x32x8xf32>
    %988 = vector.shape_cast %987 : vector<1x32x8xf32> to vector<32x8xf32>
    %cst_413 = arith.constant dense<0.000000e+00> : vector<2x8xf32>
    %989 = tpu.matmul %501, %988, %cst_413 {dimension_numbers = #tpu.dot_dimension_numbers<[1], [0], [0], [1], [0, 0, 1, 1], [], []>} : vector<2x32xf32>, vector<32x8xf32>, vector<2x8xf32> -> vector<2x8xf32>
    %990 = arith.addf %981, %989 : vector<2x8xf32>
    %c1_414 = arith.constant 1 : index
    %c0_415 = arith.constant 0 : index
    %c0_416 = arith.constant 0 : index
    %991 = vector.load %arg5[%c1_414, %c0_415, %c0_416] : memref<4x32x8xf32, #tpu.memory_space<vmem>>, vector<1x32x8xf32>
    %992 = vector.shape_cast %991 : vector<1x32x8xf32> to vector<32x8xf32>
    %cst_417 = arith.constant dense<0.000000e+00> : vector<2x8xf32>
    %993 = tpu.matmul %501, %992, %cst_417 {dimension_numbers = #tpu.dot_dimension_numbers<[1], [0], [0], [1], [0, 0, 1, 1], [], []>} : vector<2x32xf32>, vector<32x8xf32>, vector<2x8xf32> -> vector<2x8xf32>
    %994 = arith.addf %986, %993 : vector<2x8xf32>
    %c2_418 = arith.constant 2 : index
    %c0_419 = arith.constant 0 : index
    %c0_420 = arith.constant 0 : index
    %995 = vector.load %arg4[%c2_418, %c0_419, %c0_420] : memref<4x32x8xf32, #tpu.memory_space<vmem>>, vector<1x32x8xf32>
    %996 = vector.shape_cast %995 : vector<1x32x8xf32> to vector<32x8xf32>
    %cst_421 = arith.constant dense<0.000000e+00> : vector<2x8xf32>
    %997 = tpu.matmul %955, %996, %cst_421 {dimension_numbers = #tpu.dot_dimension_numbers<[1], [0], [0], [1], [0, 0, 1, 1], [], []>} : vector<2x32xf32>, vector<32x8xf32>, vector<2x8xf32> -> vector<2x8xf32>
    %998 = arith.addf %990, %997 : vector<2x8xf32>
    %c2_422 = arith.constant 2 : index
    %c0_423 = arith.constant 0 : index
    %c0_424 = arith.constant 0 : index
    %999 = vector.load %arg5[%c2_422, %c0_423, %c0_424] : memref<4x32x8xf32, #tpu.memory_space<vmem>>, vector<1x32x8xf32>
    %1000 = vector.shape_cast %999 : vector<1x32x8xf32> to vector<32x8xf32>
    %cst_425 = arith.constant dense<0.000000e+00> : vector<2x8xf32>
    %1001 = tpu.matmul %955, %1000, %cst_425 {dimension_numbers = #tpu.dot_dimension_numbers<[1], [0], [0], [1], [0, 0, 1, 1], [], []>} : vector<2x32xf32>, vector<32x8xf32>, vector<2x8xf32> -> vector<2x8xf32>
    %1002 = arith.addf %994, %1001 : vector<2x8xf32>
    %c3_426 = arith.constant 3 : index
    %c0_427 = arith.constant 0 : index
    %c0_428 = arith.constant 0 : index
    %1003 = vector.load %arg4[%c3_426, %c0_427, %c0_428] : memref<4x32x8xf32, #tpu.memory_space<vmem>>, vector<1x32x8xf32>
    %1004 = vector.shape_cast %1003 : vector<1x32x8xf32> to vector<32x8xf32>
    %cst_429 = arith.constant dense<0.000000e+00> : vector<2x8xf32>
    %1005 = tpu.matmul %974, %1004, %cst_429 {dimension_numbers = #tpu.dot_dimension_numbers<[1], [0], [0], [1], [0, 0, 1, 1], [], []>} : vector<2x32xf32>, vector<32x8xf32>, vector<2x8xf32> -> vector<2x8xf32>
    %1006 = arith.addf %998, %1005 : vector<2x8xf32>
    %c3_430 = arith.constant 3 : index
    %c0_431 = arith.constant 0 : index
    %c0_432 = arith.constant 0 : index
    %1007 = vector.load %arg5[%c3_430, %c0_431, %c0_432] : memref<4x32x8xf32, #tpu.memory_space<vmem>>, vector<1x32x8xf32>
    %1008 = vector.shape_cast %1007 : vector<1x32x8xf32> to vector<32x8xf32>
    %cst_433 = arith.constant dense<0.000000e+00> : vector<2x8xf32>
    %1009 = tpu.matmul %974, %1008, %cst_433 {dimension_numbers = #tpu.dot_dimension_numbers<[1], [0], [0], [1], [0, 0, 1, 1], [], []>} : vector<2x32xf32>, vector<32x8xf32>, vector<2x8xf32> -> vector<2x8xf32>
    %1010 = arith.addf %1002, %1009 : vector<2x8xf32>
    %cst_434 = arith.constant 5.000000e-01 : f32
    %1011 = vector.broadcast %cst_434 : f32 to vector<2x8xf32>
    %1012 = arith.mulf %1011, %1010 : vector<2x8xf32>
    %1013 = math.exp %1012 : vector<2x8xf32>
    %c0_435 = arith.constant 0 : index
    %c0_436 = arith.constant 0 : index
    %1014 = vector.load %arg10[%c0_435, %c0_436] : memref<2x8xf32, #tpu.memory_space<vmem>>, vector<2x8xf32>
    tpu.vector_store %arg10[%c0_435, %c0_436], %1006 {strides = array<i32>} : memref<2x8xf32, #tpu.memory_space<vmem>>, vector<2x8xf32>,
    %c0_437 = arith.constant 0 : index
    %c0_438 = arith.constant 0 : index
    %1015 = vector.load %arg11[%c0_437, %c0_438] : memref<2x8xf32, #tpu.memory_space<vmem>>, vector<2x8xf32>
    tpu.vector_store %arg11[%c0_437, %c0_438], %1013 {strides = array<i32>} : memref<2x8xf32, #tpu.memory_space<vmem>>, vector<2x8xf32>,
    %c0_439 = arith.constant 0 : index
    %c0_440 = arith.constant 0 : index
    %1016 = vector.load %arg8[%c0_439, %c0_440] : memref<2x8xf32, #tpu.memory_space<vmem>>, vector<2x8xf32>
    %1017 = arith.mulf %1016, %1013 : vector<2x8xf32>
    %1018 = arith.addf %1017, %1006 : vector<2x8xf32>
    %c0_441 = arith.constant 0 : index
    %c0_442 = arith.constant 0 : index
    %1019 = vector.load %arg9[%c0_441, %c0_442] : memref<2x8xf32, #tpu.memory_space<vmem>>, vector<2x8xf32>
    tpu.vector_store %arg9[%c0_441, %c0_442], %1018 {strides = array<i32>} : memref<2x8xf32, #tpu.memory_space<vmem>>, vector<2x8xf32>,
    return
  }
}

</mosaic_0001>

<bundles_post_ra>
// kernel: black_box_autoencoder_forward.1
= control target key start
LH: loop header
LB: loop body
LE: loop exit
PB: predicated region body
PF: predicated region fallthrough
CT: control target
= control target key end

     0   :  { %17 = vsyncpa [#allocation5], 0  ;;  %v5041_v2 = vmov 0.0   ;;  %s6118_s0 = inlined_call_operand.vmem [shape: f32[2,16,128], index: 0, kind: input, shape index: {}]   ;;  %s6119_s1 = inlined_call_operand.vmem [shape: f32[4,32,128], index: 1, kind: input, shape index: {}]   ;;  %s6120_s2 = inlined_call_operand.vmem [shape: f32[2,32,256], index: 2, kind: input, shape index: {}]   ;;  %s6121_s3 = inlined_call_operand.vmem [shape: f32[1,1,256], index: 3, kind: input, shape index: {}]   ;;  %s6122_s4 = inlined_call_operand.vmem [shape: f32[4,32,8], index: 4, kind: input, shape index: {}]   ;;  %s6123_s5 = inlined_call_operand.vmem [shape: f32[4,32,8], index: 5, kind: input, shape index: {}]   ;;  %s6124_s6 = inlined_call_operand.vmem [shape: f32[1,8], index: 6, kind: input, shape index: {}]   ;;  %s6125_s7 = inlined_call_operand.vmem [shape: f32[1,8], index: 7, kind: input, shape index: {}]   ;;  %s6126_s8 = inlined_call_operand.vmem [shape: f32[2,8], index: 8, kind: input, shape index: {}]   ;;  %s6127_s9 = inlined_call_operand.hbm [shape: f32[2,8], index: 9, kind: output, shape index: {0}]   ;;  %s6128_s10 = inlined_call_operand.hbm [shape: f32[2,8], index: 10, kind: output, shape index: {1}]   ;;  %s6129_s11 = inlined_call_operand.hbm [shape: f32[2,8], index: 11, kind: output, shape index: {2}]  }
   0x1   :  { %v5113_v0 = vld [vmem:[%s6119_s1 + $0x38] sm:$0xff]  ;;  %4413 = vmatprep.subr.mxu1 %v5041_v2  ;;  %4402 = vmatprep.subr.mxu0 %v5041_v2  ;;  %v5125_v3 = vld [vmem:[%s6119_s1 + $0x30] sm:$0xff]  ;;  %v5139_v5 = vld [vmem:[%s6119_s1 + $0x28] sm:$0xff] }
   0x2   :  { %v5118_v1 = vld [vmem:[%s6119_s1 + $0x18] sm:$0xff]  ;;  %v5130_v4 = vld [vmem:[%s6119_s1 + $0x10] sm:$0xff]  ;;  %4414 = vmatpush3.msra.mxu1 %v5113_v0 }
   0x3   :  { %4403 = vmatpush3.msra.mxu0 %v5118_v1  ;;  %4415 = vmatprep.subr.mxu1 %v5041_v2 }
   0x4   :  { %4404 = vmatprep.subr.mxu0 %v5041_v2 }
   0x5   :  { %18 = vsyncpa [#allocation7], 0  ;;  %4416 = vmatpush3.msra.mxu1 %v5125_v3  ;;  %4405 = vmatpush3.msra.mxu0 %v5130_v4  ;;  %v5146_v6 = vld [vmem:[%s6119_s1 + $0x8] sm:$0xff]  ;;  %v5153_v7 = vld [vmem:[%s6119_s1 + $0x20] sm:$0xff]  ;;  %vm5042_vm0 = vmmov 0   ;;  %v37_v9 = vlaneseq  ;;  %v5043_v12 = vmov 1.0  }
   0x6   :  { %4417 = vmatprep.subr.mxu1 %v5041_v2  ;;  %4406 = vmatprep.subr.mxu0 %v5041_v2  ;;  %v5161_v8 = vld [vmem:[%s6119_s1] sm:$0xff]  ;;  %v4112_v11 = vld [vmem:[%s6118_s0 + $0x1e] sm:$0x3]  ;;  %s5044_s18 = smov 32   ;;  %s5045_s19 = smov 64   ;;  %vm245_vm2 = vcmask 254976  }
   0x7   :  { %4418 = vmatpush3.msra.mxu1 %v5139_v5  ;;  %4421 = vmatprep.mubr.msk.f32.mxu1 %vm5042_vm0, %v5041_v2  ;;  %v38_v10 = vand.u32 127, %v37_v9  ;;  %v50_v15 = vld [vmem:[%s6118_s0] sm:$0x3]  ;;  %vm53_vm3 = vcmask 261120   ;;  %v4113_v47 = vld [vmem:[%s6118_s0 + $0x1c] sm:$0x3] }
   0x8   :  { %4419 = vmatprep.subr.mxu1 %v5041_v2  ;;  %4407 = vmatpush3.msra.mxu0 %v5146_v6  ;;  %v253_v51 = vld [vmem:[%s6118_s0 + $0x2] sm:$0x3]  ;;  %s5046_s21 = smov 96   ;;  %vm4060_vm4 = vcmask 58368  }
   0x9   :  { %4420 = vmatpush3.msra.mxu1 %v5153_v7  ;;  %4408 = vmatprep.subr.mxu0 %v5041_v2  ;;  %vm39_vm1 = vcmp.lt.s32.totalorder %v38_v10, 96 }
   0xa   :  { %4422 = vmatmul.mubr.f32.vlgmr.msra.gmra.mxu1 %v5041_v2  ;;  %4409 = vmatpush3.msra.mxu0 %v5161_v8  ;;  %v5198_v13 = vsel %vm39_vm1, 0.5, %v5043_v12 }
   0xb   :  { %4410 = vmatprep.mubr.msk.f32.mxu0 %vm5042_vm0, %v5041_v2  ;;  %4435 = vmatprep.subr.mxu1 %v5041_v2 }
   0xc   :  { %4411 = vmatmul.mubr.f32.vlgmr.msra.gmra.mxu0 %v5041_v2  ;;  %4436 = vmatpush3.msra.mxu1 %v5113_v0 }
   0xd   :  { %4437 = vmatprep.subr.mxu1 %v5041_v2  ;;  %4424 = vmatprep.subr.mxu0 %v5041_v2 }
   0xe   :  { %4438 = vmatpush3.msra.mxu1 %v5125_v3  ;;  %4425 = vmatpush3.msra.mxu0 %v5118_v1 }
   0xf   :  { %4439 = vmatprep.subr.mxu1 %v5041_v2  ;;  %4426 = vmatprep.subr.mxu0 %v5041_v2 }
  0x10   :  { %4440 = vmatpush3.msra.mxu1 %v5139_v5  ;;  %4427 = vmatpush3.msra.mxu0 %v5130_v4 }
  0x11   :  { %4441 = vmatprep.subr.mxu1 %v5041_v2  ;;  %4443 = vmatprep.mubr.msk.f32.mxu1 %vm5042_vm0, %v5041_v2 }
  0x12   :  { %4442 = vmatpush3.msra.mxu1 %v5153_v7  ;;  %4428 = vmatprep.subr.mxu0 %v5041_v2 }
  0x13   :  { %4429 = vmatpush3.msra.mxu0 %v5146_v6  ;;  %4432 = vmatprep.mubr.msk.f32.mxu0 %vm5042_vm0, %v5041_v2 }
  0x14   :  { %4430 = vmatprep.subr.mxu0 %v5041_v2  ;;  %4457 = vmatprep.subr.mxu1 %v5041_v2 }
  0x15   :  { %4431 = vmatpush3.msra.mxu0 %v5161_v8 }
  0x16   :  { %4446 = vmatprep.subr.mxu0 %v5041_v2 }
  0xca   :  { %v215_v14 = vpop.f32.mrf.mxu1 }
  0xcb   :  { %v219_v16 = vadd.f32 %v4112_v11, %v215_v14 }
  0xcc   :  { %v4423_v17 = vpop.f32.mrf.mxu1  ;;  %v123_v18 = vpop.f32.mrf.mxu0 }
  0xcd   :  { %v220_v19 = vmul.f32 %v219_v16, %v5198_v13  ;;  %v127_v20 = vadd.f32 %v123_v18, %v50_v15 }
  0xce   :  { %v4412_v21 = vpop.f32.mrf.mxu0 }
  0xcf   :  { %4851 = vtanh.f32 %v220_v19  ;;  %v128_v22 = vmul.f32 %v127_v20, %v5198_v13 }
  0xd1   :  { %4853 = vtanh.f32 %v128_v22 }
  0xdc   :  { %v4852_v23 = vpop.eup %4851 }
  0xdd   :  { %226 = vrot.lane.b32.xlu0 %v4852_v23, %s5044_s18  ;;  %v222_v25 = vadd.f32 1.0, %v4852_v23 }
  0xde   :  { %v4854_v24 = vpop.eup %4853 }
  0xdf   :  { %v223_v26 = vmul.f32 0.5, %v222_v25  ;;  %v130_v27 = vadd.f32 1.0, %v4854_v24 }
  0xe1   :  { %134 = vrot.lane.b32.xlu0 %v4854_v24, %s5044_s18  ;;  %v131_v30 = vmul.f32 0.5, %v130_v27  ;;  %v224_v33 = vmul.f32 0.0, %v223_v26 }
  0xe3   :  { %v132_v36 = vmul.f32 0.0, %v131_v30 }
 0x14f   :  { %v227_v28 = vpop.permute.xlu0 %226 }
 0x150   :  { %v229_v29 = vmul.f32 %v227_v28, %v223_v26  ;;  %v4116_v28 = vld [vmem:[%s6118_s0 + $0x1a] sm:$0x3] }
 0x152   :  { %231 = vrot.lane.b32.xlu1 %v229_v29, %s5044_s18 }
 0x153   :  { %v135_v31 = vpop.permute.xlu0 %134 }
 0x154   :  { %v137_v32 = vmul.f32 %v135_v31, %v131_v30 }
 0x156   :  { %139 = vrot.lane.b32.xlu1 %v137_v32, %s5044_s18  ;;  %v453_v32 = vld [vmem:[%s6118_s0 + $0x4] sm:$0x3] }
 0x1c4   :  { %v232_v34 = vpop.permute.xlu1 %231 }
 0x1c5   :  { %v5209_v35 = vadd.f32 %v232_v34, %v224_v33 }
 0x1c7   :  { %4855 = vtanh.f32 %v5209_v35 }
 0x1c8   :  { %v140_v37 = vpop.permute.xlu1 %139 }
 0x1c9   :  { %v5212_v38 = vadd.f32 %v140_v37, %v132_v36 }
 0x1cb   :  { %4857 = vtanh.f32 %v5212_v38 }
 0x1d4   :  { %v4856_v39 = vpop.eup %4855 }
 0x1d5   :  { %237 = vrot.lane.b32.xlu0 %v4856_v39, %s5044_s18 }
 0x1d8   :  { %v4858_v40 = vpop.eup %4857 }
 0x1d9   :  { %145 = vrot.lane.b32.xlu1 %v4858_v40, %s5044_s18 }
 0x247   :  { %v238_v41 = vpop.permute.xlu0 %237 }
 0x248   :  { %v240_v42 = vmul.f32 %v238_v41, %v223_v26 }
 0x24a   :  { %248 = vrot.lane.b32.xlu0 %v240_v42, %s5045_s19 }
 0x24b   :  { %v146_v43 = vpop.permute.xlu1 %145 }
 0x24c   :  { %v148_v44 = vmul.f32 %v146_v43, %v131_v30 }
 0x24e   :  { %242 = vrot.lane.b32.xlu1 %v148_v44, %s5045_s19 }
 0x2bc   :  { %v249_v45 = vpop.permute.xlu0 %248 }
 0x2bd   :  { %252 = vst.msk [vmem:[#allocation2 + $0x1e] sm:$0x3] %vm245_vm2, %v249_v45  ;;  %4444 = vmatmul.mubr.msk.f32.vlgmr.msra.gmra.mxu1 %vm53_vm3, %v249_v45 }
 0x2be   :  { %4458 = vmatpush3.msra.mxu1 %v5113_v0  ;;  %4465 = vmatprep.mubr.msk.f32.mxu1 %vm5042_vm0, %v5041_v2 }
 0x2bf   :  { %4459 = vmatprep.subr.mxu1 %v5041_v2 }
 0x2c0   :  { %v243_v46 = vpop.permute.xlu1 %242  ;;  %4460 = vmatpush3.msra.mxu1 %v5125_v3 }
 0x2c1   :  { %246 = vst.msk [vmem:[#allocation2] sm:$0x3] %vm245_vm2, %v243_v46  ;;  %4433 = vmatmul.mubr.msk.f32.vlgmr.msra.gmra.mxu0 %vm53_vm3, %v243_v46  ;;  %4461 = vmatprep.subr.mxu1 %v5041_v2 }
 0x2c2   :  { %4447 = vmatpush3.msra.mxu0 %v5118_v1  ;;  %4462 = vmatpush3.msra.mxu1 %v5139_v5 }
 0x2c3   :  { %4448 = vmatprep.subr.mxu0 %v5041_v2  ;;  %4463 = vmatprep.subr.mxu1 %v5041_v2 }
 0x2c4   :  { %4464 = vmatpush3.msra.mxu1 %v5153_v7  ;;  %4449 = vmatpush3.msra.mxu0 %v5130_v4 }
 0x2c5   :  { %4450 = vmatprep.subr.mxu0 %v5041_v2  ;;  %4454 = vmatprep.mubr.msk.f32.mxu0 %vm5042_vm0, %v5041_v2 }
 0x2c6   :  { %4451 = vmatpush3.msra.mxu0 %v5146_v6  ;;  %4479 = vmatprep.subr.mxu1 %v5041_v2 }
 0x2c7   :  { %4452 = vmatprep.subr.mxu0 %v5041_v2 }
 0x2c8   :  { %4453 = vmatpush3.msra.mxu0 %v5161_v8 }
 0x2c9   :  { %4468 = vmatprep.subr.mxu0 %v5041_v2 }
 0x37d   :  { %v417_v48 = vpop.f32.mrf.mxu1 }
 0x37e   :  { %v421_v49 = vadd.f32 %v4113_v47, %v417_v48 }
 0x37f   :  { %v4445_v50 = vpop.f32.mrf.mxu1 }
 0x380   :  { %v422_v52 = vmul.f32 %v421_v49, %v5198_v13 }
 0x381   :  { %v323_v53 = vpop.f32.mrf.mxu0 }
 0x382   :  { %4859 = vtanh.f32 %v422_v52  ;;  %v327_v54 = vadd.f32 %v323_v53, %v253_v51 }
 0x383   :  { %v4434_v55 = vpop.f32.mrf.mxu0 }
 0x384   :  { %v328_v56 = vmul.f32 %v327_v54, %v5198_v13 }
 0x386   :  { %4861 = vtanh.f32 %v328_v56 }
 0x38f   :  { %v4860_v57 = vpop.eup %4859 }
 0x390   :  { %428 = vrot.lane.b32.xlu0 %v4860_v57, %s5044_s18  ;;  %v424_v59 = vadd.f32 1.0, %v4860_v57 }
 0x392   :  { %v425_v60 = vmul.f32 0.5, %v424_v59 }
 0x393   :  { %v4862_v58 = vpop.eup %4861 }
 0x394   :  { %334 = vrot.lane.b32.xlu1 %v4862_v58, %s5044_s18  ;;  %v330_v61 = vadd.f32 1.0, %v4862_v58  ;;  %v426_v14 = vmul.f32 %v425_v60, %v5209_v35 }
 0x396   :  { %v331_v10 = vmul.f32 0.5, %v330_v61 }
 0x398   :  { %v332_v17 = vmul.f32 %v331_v10, %v5212_v38 }
 0x402   :  { %v429_v62 = vpop.permute.xlu0 %428 }
 0x403   :  { %v431_v63 = vmul.f32 %v429_v62, %v425_v60  ;;  %v4119_v62 = vld [vmem:[%s6118_s0 + $0x18] sm:$0x3] }
 0x405   :  { %433 = vrot.lane.b32.xlu0 %v431_v63, %s5044_s18 }
 0x406   :  { %v335_v11 = vpop.permute.xlu1 %334 }
 0x407   :  { %v337_v12 = vmul.f32 %v335_v11, %v331_v10 }
 0x409   :  { %339 = vrot.lane.b32.xlu1 %v337_v12, %s5044_s18  ;;  %v653_v12 = vld [vmem:[%s6118_s0 + $0x6] sm:$0x3] }
 0x477   :  { %v434_v15 = vpop.permute.xlu0 %433 }
 0x478   :  { %v5256_v16 = vadd.f32 %v434_v15, %v426_v14 }
 0x47a   :  { %4863 = vtanh.f32 %v5256_v16 }
 0x47b   :  { %v340_v18 = vpop.permute.xlu1 %339 }
 0x47c   :  { %v5260_v19 = vadd.f32 %v340_v18, %v332_v17 }
 0x47e   :  { %4865 = vtanh.f32 %v5260_v19 }
 0x487   :  { %v4864_v20 = vpop.eup %4863 }
 0x488   :  { %439 = vrot.lane.b32.xlu0 %v4864_v20, %s5044_s18 }
 0x48b   :  { %v4866_v21 = vpop.eup %4865 }
 0x48c   :  { %345 = vrot.lane.b32.xlu1 %v4866_v21, %s5044_s18 }
 0x4fa   :  { %v440_v22 = vpop.permute.xlu0 %439 }
 0x4fb   :  { %v442_v23 = vmul.f32 %v440_v22, %v425_v60 }
 0x4fd   :  { %449 = vrot.lane.b32.xlu0 %v442_v23, %s5045_s19 }
 0x4fe   :  { %v346_v24 = vpop.permute.xlu1 %345 }
 0x4ff   :  { %v348_v25 = vmul.f32 %v346_v24, %v331_v10 }
 0x501   :  { %444 = vrot.lane.b32.xlu1 %v348_v25, %s5045_s19 }
 0x56f   :  { %v450_v26 = vpop.permute.xlu0 %449 }
 0x570   :  { %452 = vst.msk [vmem:[#allocation2 + $0x1c] sm:$0x3] %vm245_vm2, %v450_v26  ;;  %4466 = vmatmul.mubr.msk.f32.vlgmr.msra.gmra.mxu1 %vm53_vm3, %v450_v26 }
 0x571   :  { %4480 = vmatpush3.msra.mxu1 %v5113_v0  ;;  %4487 = vmatprep.mubr.msk.f32.mxu1 %vm5042_vm0, %v5041_v2 }
 0x572   :  { %4481 = vmatprep.subr.mxu1 %v5041_v2 }
 0x573   :  { %v445_v27 = vpop.permute.xlu1 %444  ;;  %4482 = vmatpush3.msra.mxu1 %v5125_v3 }
 0x574   :  { %447 = vst.msk [vmem:[#allocation2 + $0x2] sm:$0x3] %vm245_vm2, %v445_v27  ;;  %4455 = vmatmul.mubr.msk.f32.vlgmr.msra.gmra.mxu0 %vm53_vm3, %v445_v27  ;;  %4483 = vmatprep.subr.mxu1 %v5041_v2 }
 0x575   :  { %4469 = vmatpush3.msra.mxu0 %v5118_v1  ;;  %4484 = vmatpush3.msra.mxu1 %v5139_v5 }
 0x576   :  { %4470 = vmatprep.subr.mxu0 %v5041_v2  ;;  %4485 = vmatprep.subr.mxu1 %v5041_v2 }
 0x577   :  { %4486 = vmatpush3.msra.mxu1 %v5153_v7  ;;  %4471 = vmatpush3.msra.mxu0 %v5130_v4 }
 0x578   :  { %4472 = vmatprep.subr.mxu0 %v5041_v2  ;;  %4476 = vmatprep.mubr.msk.f32.mxu0 %vm5042_vm0, %v5041_v2 }
 0x579   :  { %4473 = vmatpush3.msra.mxu0 %v5146_v6  ;;  %4501 = vmatprep.subr.mxu1 %v5041_v2 }
 0x57a   :  { %4474 = vmatprep.subr.mxu0 %v5041_v2 }
 0x57b   :  { %4475 = vmatpush3.msra.mxu0 %v5161_v8 }
 0x57c   :  { %4490 = vmatprep.subr.mxu0 %v5041_v2 }
 0x630   :  { %v617_v29 = vpop.f32.mrf.mxu1 }
 0x631   :  { %v621_v30 = vadd.f32 %v4116_v28, %v617_v29 }
 0x632   :  { %v4467_v31 = vpop.f32.mrf.mxu1 }
 0x633   :  { %v622_v33 = vmul.f32 %v621_v30, %v5198_v13 }
 0x634   :  { %v523_v34 = vpop.f32.mrf.mxu0 }
 0x635   :  { %4867 = vtanh.f32 %v622_v33  ;;  %v527_v35 = vadd.f32 %v523_v34, %v453_v32 }
 0x636   :  { %v4456_v36 = vpop.f32.mrf.mxu0 }
 0x637   :  { %v528_v37 = vmul.f32 %v527_v35, %v5198_v13 }
 0x639   :  { %4869 = vtanh.f32 %v528_v37 }
 0x642   :  { %v4868_v38 = vpop.eup %4867 }
 0x643   :  { %628 = vrot.lane.b32.xlu0 %v4868_v38, %s5044_s18  ;;  %v624_v40 = vadd.f32 1.0, %v4868_v38 }
 0x645   :  { %v625_v41 = vmul.f32 0.5, %v624_v40 }
 0x646   :  { %v4870_v39 = vpop.eup %4869 }
 0x647   :  { %534 = vrot.lane.b32.xlu1 %v4870_v39, %s5044_s18  ;;  %v530_v42 = vadd.f32 1.0, %v4870_v39  ;;  %v626_v48 = vmul.f32 %v625_v41, %v5256_v16 }
 0x649   :  { %v531_v45 = vmul.f32 0.5, %v530_v42 }
 0x64b   :  { %v532_v51 = vmul.f32 %v531_v45, %v5260_v19 }
 0x6b5   :  { %v629_v43 = vpop.permute.xlu0 %628 }
 0x6b6   :  { %v631_v44 = vmul.f32 %v629_v43, %v625_v41  ;;  %v4122_v43 = vld [vmem:[%s6118_s0 + $0x16] sm:$0x3] }
 0x6b8   :  { %633 = vrot.lane.b32.xlu0 %v631_v44, %s5044_s18 }
 0x6b9   :  { %v535_v46 = vpop.permute.xlu1 %534 }
 0x6ba   :  { %v537_v47 = vmul.f32 %v535_v46, %v531_v45 }
 0x6bc   :  { %539 = vrot.lane.b32.xlu1 %v537_v47, %s5044_s18  ;;  %v853_v47 = vld [vmem:[%s6118_s0 + $0x8] sm:$0x3] }
 0x72a   :  { %v634_v49 = vpop.permute.xlu0 %633 }
 0x72b   :  { %v5304_v50 = vadd.f32 %v634_v49, %v626_v48 }
 0x72d   :  { %4871 = vtanh.f32 %v5304_v50 }
 0x72e   :  { %v540_v52 = vpop.permute.xlu1 %539 }
 0x72f   :  { %v5308_v53 = vadd.f32 %v540_v52, %v532_v51 }
 0x731   :  { %4873 = vtanh.f32 %v5308_v53 }
 0x73a   :  { %v4872_v54 = vpop.eup %4871 }
 0x73b   :  { %639 = vrot.lane.b32.xlu0 %v4872_v54, %s5044_s18 }
 0x73e   :  { %v4874_v55 = vpop.eup %4873 }
 0x73f   :  { %545 = vrot.lane.b32.xlu1 %v4874_v55, %s5044_s18 }
 0x7ad   :  { %v640_v56 = vpop.permute.xlu0 %639 }
 0x7ae   :  { %v642_v57 = vmul.f32 %v640_v56, %v625_v41 }
 0x7b0   :  { %649 = vrot.lane.b32.xlu0 %v642_v57, %s5045_s19 }
 0x7b1   :  { %v546_v58 = vpop.permute.xlu1 %545 }
 0x7b2   :  { %v548_v59 = vmul.f32 %v546_v58, %v531_v45 }
 0x7b4   :  { %644 = vrot.lane.b32.xlu1 %v548_v59, %s5045_s19 }
 0x822   :  { %v650_v60 = vpop.permute.xlu0 %649 }
 0x823   :  { %652 = vst.msk [vmem:[#allocation2 + $0x1a] sm:$0x3] %vm245_vm2, %v650_v60  ;;  %4488 = vmatmul.mubr.msk.f32.vlgmr.msra.gmra.mxu1 %vm53_vm3, %v650_v60 }
 0x824   :  { %4502 = vmatpush3.msra.mxu1 %v5113_v0  ;;  %4509 = vmatprep.mubr.msk.f32.mxu1 %vm5042_vm0, %v5041_v2 }
 0x825   :  { %4503 = vmatprep.subr.mxu1 %v5041_v2 }
 0x826   :  { %v645_v61 = vpop.permute.xlu1 %644  ;;  %4504 = vmatpush3.msra.mxu1 %v5125_v3 }
 0x827   :  { %647 = vst.msk [vmem:[#allocation2 + $0x4] sm:$0x3] %vm245_vm2, %v645_v61  ;;  %4477 = vmatmul.mubr.msk.f32.vlgmr.msra.gmra.mxu0 %vm53_vm3, %v645_v61  ;;  %4505 = vmatprep.subr.mxu1 %v5041_v2 }
 0x828   :  { %4491 = vmatpush3.msra.mxu0 %v5118_v1  ;;  %4506 = vmatpush3.msra.mxu1 %v5139_v5 }
 0x829   :  { %4492 = vmatprep.subr.mxu0 %v5041_v2  ;;  %4507 = vmatprep.subr.mxu1 %v5041_v2 }
 0x82a   :  { %4508 = vmatpush3.msra.mxu1 %v5153_v7  ;;  %4493 = vmatpush3.msra.mxu0 %v5130_v4 }
 0x82b   :  { %4494 = vmatprep.subr.mxu0 %v5041_v2  ;;  %4498 = vmatprep.mubr.msk.f32.mxu0 %vm5042_vm0, %v5041_v2 }
 0x82c   :  { %4495 = vmatpush3.msra.mxu0 %v5146_v6  ;;  %4523 = vmatprep.subr.mxu1 %v5041_v2 }
 0x82d   :  { %4496 = vmatprep.subr.mxu0 %v5041_v2 }
 0x82e   :  { %4497 = vmatpush3.msra.mxu0 %v5161_v8 }
 0x82f   :  { %4512 = vmatprep.subr.mxu0 %v5041_v2 }
 0x8e3   :  { %v817_v63 = vpop.f32.mrf.mxu1 }
 0x8e4   :  { %v821_v10 = vadd.f32 %v4119_v62, %v817_v63 }
 0x8e5   :  { %v4489_v11 = vpop.f32.mrf.mxu1 }
 0x8e6   :  { %v822_v14 = vmul.f32 %v821_v10, %v5198_v13 }
 0x8e7   :  { %v723_v15 = vpop.f32.mrf.mxu0 }
 0x8e8   :  { %4875 = vtanh.f32 %v822_v14  ;;  %v727_v16 = vadd.f32 %v723_v15, %v653_v12 }
 0x8e9   :  { %v4478_v17 = vpop.f32.mrf.mxu0 }
 0x8ea   :  { %v728_v18 = vmul.f32 %v727_v16, %v5198_v13 }
 0x8ec   :  { %4877 = vtanh.f32 %v728_v18 }
 0x8f5   :  { %v4876_v19 = vpop.eup %4875 }
 0x8f6   :  { %828 = vrot.lane.b32.xlu0 %v4876_v19, %s5044_s18  ;;  %v824_v21 = vadd.f32 1.0, %v4876_v19 }
 0x8f8   :  { %v825_v22 = vmul.f32 0.5, %v824_v21 }
 0x8f9   :  { %v4878_v20 = vpop.eup %4877 }
 0x8fa   :  { %734 = vrot.lane.b32.xlu1 %v4878_v20, %s5044_s18  ;;  %v730_v23 = vadd.f32 1.0, %v4878_v20  ;;  %v826_v29 = vmul.f32 %v825_v22, %v5304_v50 }
 0x8fc   :  { %v731_v26 = vmul.f32 0.5, %v730_v23 }
 0x8fe   :  { %v732_v32 = vmul.f32 %v731_v26, %v5308_v53 }
 0x968   :  { %v829_v24 = vpop.permute.xlu0 %828 }
 0x969   :  { %v831_v25 = vmul.f32 %v829_v24, %v825_v22  ;;  %v4125_v24 = vld [vmem:[%s6118_s0 + $0x14] sm:$0x3] }
 0x96b   :  { %833 = vrot.lane.b32.xlu0 %v831_v25, %s5044_s18 }
 0x96c   :  { %v735_v27 = vpop.permute.xlu1 %734 }
 0x96d   :  { %v737_v28 = vmul.f32 %v735_v27, %v731_v26 }
 0x96f   :  { %739 = vrot.lane.b32.xlu1 %v737_v28, %s5044_s18  ;;  %v1053_v28 = vld [vmem:[%s6118_s0 + $0xa] sm:$0x3] }
 0x9dd   :  { %v834_v30 = vpop.permute.xlu0 %833 }
 0x9de   :  { %v5352_v31 = vadd.f32 %v834_v30, %v826_v29 }
 0x9e0   :  { %4879 = vtanh.f32 %v5352_v31 }
 0x9e1   :  { %v740_v33 = vpop.permute.xlu1 %739 }
 0x9e2   :  { %v5356_v34 = vadd.f32 %v740_v33, %v732_v32 }
 0x9e4   :  { %4881 = vtanh.f32 %v5356_v34 }
 0x9ed   :  { %v4880_v35 = vpop.eup %4879 }
 0x9ee   :  { %839 = vrot.lane.b32.xlu0 %v4880_v35, %s5044_s18 }
 0x9f1   :  { %v4882_v36 = vpop.eup %4881 }
 0x9f2   :  { %745 = vrot.lane.b32.xlu1 %v4882_v36, %s5044_s18 }
 0xa60   :  { %v840_v37 = vpop.permute.xlu0 %839 }
 0xa61   :  { %v842_v38 = vmul.f32 %v840_v37, %v825_v22 }
 0xa63   :  { %849 = vrot.lane.b32.xlu0 %v842_v38, %s5045_s19 }
 0xa64   :  { %v746_v39 = vpop.permute.xlu1 %745 }
 0xa65   :  { %v748_v40 = vmul.f32 %v746_v39, %v731_v26 }
 0xa67   :  { %844 = vrot.lane.b32.xlu1 %v748_v40, %s5045_s19 }
 0xad5   :  { %v850_v41 = vpop.permute.xlu0 %849 }
 0xad6   :  { %852 = vst.msk [vmem:[#allocation2 + $0x18] sm:$0x3] %vm245_vm2, %v850_v41  ;;  %4510 = vmatmul.mubr.msk.f32.vlgmr.msra.gmra.mxu1 %vm53_vm3, %v850_v41 }
 0xad7   :  { %4524 = vmatpush3.msra.mxu1 %v5113_v0  ;;  %4531 = vmatprep.mubr.msk.f32.mxu1 %vm5042_vm0, %v5041_v2 }
 0xad8   :  { %4525 = vmatprep.subr.mxu1 %v5041_v2 }
 0xad9   :  { %v845_v42 = vpop.permute.xlu1 %844  ;;  %4526 = vmatpush3.msra.mxu1 %v5125_v3 }
 0xada   :  { %847 = vst.msk [vmem:[#allocation2 + $0x6] sm:$0x3] %vm245_vm2, %v845_v42  ;;  %4499 = vmatmul.mubr.msk.f32.vlgmr.msra.gmra.mxu0 %vm53_vm3, %v845_v42  ;;  %4527 = vmatprep.subr.mxu1 %v5041_v2 }
 0xadb   :  { %4513 = vmatpush3.msra.mxu0 %v5118_v1  ;;  %4528 = vmatpush3.msra.mxu1 %v5139_v5 }
 0xadc   :  { %4514 = vmatprep.subr.mxu0 %v5041_v2  ;;  %4529 = vmatprep.subr.mxu1 %v5041_v2 }
 0xadd   :  { %4530 = vmatpush3.msra.mxu1 %v5153_v7  ;;  %4515 = vmatpush3.msra.mxu0 %v5130_v4 }
 0xade   :  { %4516 = vmatprep.subr.mxu0 %v5041_v2  ;;  %4520 = vmatprep.mubr.msk.f32.mxu0 %vm5042_vm0, %v5041_v2 }
 0xadf   :  { %4517 = vmatpush3.msra.mxu0 %v5146_v6  ;;  %4545 = vmatprep.subr.mxu1 %v5041_v2 }
 0xae0   :  { %4518 = vmatprep.subr.mxu0 %v5041_v2 }
 0xae1   :  { %4519 = vmatpush3.msra.mxu0 %v5161_v8 }
 0xae2   :  { %4534 = vmatprep.subr.mxu0 %v5041_v2 }
 0xb96   :  { %v1017_v44 = vpop.f32.mrf.mxu1 }
 0xb97   :  { %v1021_v45 = vadd.f32 %v4122_v43, %v1017_v44 }
 0xb98   :  { %v4511_v46 = vpop.f32.mrf.mxu1 }
 0xb99   :  { %v1022_v48 = vmul.f32 %v1021_v45, %v5198_v13 }
 0xb9a   :  { %v923_v49 = vpop.f32.mrf.mxu0 }
 0xb9b   :  { %4883 = vtanh.f32 %v1022_v48  ;;  %v927_v50 = vadd.f32 %v923_v49, %v853_v47 }
 0xb9c   :  { %v4500_v51 = vpop.f32.mrf.mxu0 }
 0xb9d   :  { %v928_v52 = vmul.f32 %v927_v50, %v5198_v13 }
 0xb9f   :  { %4885 = vtanh.f32 %v928_v52 }
 0xba8   :  { %v4884_v53 = vpop.eup %4883 }
 0xba9   :  { %1028 = vrot.lane.b32.xlu0 %v4884_v53, %s5044_s18  ;;  %v1024_v55 = vadd.f32 1.0, %v4884_v53 }
 0xbab   :  { %v1025_v56 = vmul.f32 0.5, %v1024_v55 }
 0xbac   :  { %v4886_v54 = vpop.eup %4885 }
 0xbad   :  { %934 = vrot.lane.b32.xlu1 %v4886_v54, %s5044_s18  ;;  %v930_v57 = vadd.f32 1.0, %v4886_v54  ;;  %v1026_v63 = vmul.f32 %v1025_v56, %v5352_v31 }
 0xbaf   :  { %v931_v60 = vmul.f32 0.5, %v930_v57 }
 0xbb1   :  { %v932_v12 = vmul.f32 %v931_v60, %v5356_v34 }
 0xc1b   :  { %v1029_v58 = vpop.permute.xlu0 %1028 }
 0xc1c   :  { %v1031_v59 = vmul.f32 %v1029_v58, %v1025_v56 }
 0xc1e   :  { %1033 = vrot.lane.b32.xlu0 %v1031_v59, %s5044_s18 }
 0xc1f   :  { %v935_v61 = vpop.permute.xlu1 %934 }
 0xc20   :  { %v937_v62 = vmul.f32 %v935_v61, %v931_v60 }
 0xc22   :  { %939 = vrot.lane.b32.xlu1 %v937_v62, %s5044_s18 }
 0xc90   :  { %v1034_v10 = vpop.permute.xlu0 %1033 }
 0xc91   :  { %v5400_v11 = vadd.f32 %v1034_v10, %v1026_v63 }
 0xc93   :  { %4887 = vtanh.f32 %v5400_v11 }
 0xc94   :  { %v940_v14 = vpop.permute.xlu1 %939 }
 0xc95   :  { %v5404_v15 = vadd.f32 %v940_v14, %v932_v12 }
 0xc97   :  { %4889 = vtanh.f32 %v5404_v15 }
 0xca0   :  { %v4888_v16 = vpop.eup %4887 }
 0xca1   :  { %1039 = vrot.lane.b32.xlu0 %v4888_v16, %s5044_s18 }
 0xca4   :  { %v4890_v17 = vpop.eup %4889 }
 0xca5   :  { %945 = vrot.lane.b32.xlu1 %v4890_v17, %s5044_s18 }
 0xd13   :  { %v1040_v18 = vpop.permute.xlu0 %1039 }
 0xd14   :  { %v1042_v19 = vmul.f32 %v1040_v18, %v1025_v56 }
 0xd16   :  { %1049 = vrot.lane.b32.xlu0 %v1042_v19, %s5045_s19 }
 0xd17   :  { %v946_v20 = vpop.permute.xlu1 %945 }
 0xd18   :  { %v948_v21 = vmul.f32 %v946_v20, %v931_v60 }
 0xd1a   :  { %1044 = vrot.lane.b32.xlu1 %v948_v21, %s5045_s19 }
 0xd88   :  { %v1050_v22 = vpop.permute.xlu0 %1049 }
 0xd89   :  { %1052 = vst.msk [vmem:[#allocation2 + $0x16] sm:$0x3] %vm245_vm2, %v1050_v22  ;;  %4532 = vmatmul.mubr.msk.f32.vlgmr.msra.gmra.mxu1 %vm53_vm3, %v1050_v22 }
 0xd8a   :  { %4546 = vmatpush3.msra.mxu1 %v5113_v0  ;;  %4553 = vmatprep.mubr.msk.f32.mxu1 %vm5042_vm0, %v5041_v2 }
 0xd8b   :  { %4547 = vmatprep.subr.mxu1 %v5041_v2 }
 0xd8c   :  { %v1045_v23 = vpop.permute.xlu1 %1044  ;;  %4548 = vmatpush3.msra.mxu1 %v5125_v3 }
 0xd8d   :  { %1047 = vst.msk [vmem:[#allocation2 + $0x8] sm:$0x3] %vm245_vm2, %v1045_v23  ;;  %4521 = vmatmul.mubr.msk.f32.vlgmr.msra.gmra.mxu0 %vm53_vm3, %v1045_v23  ;;  %4549 = vmatprep.subr.mxu1 %v5041_v2  ;;  %v1664_v23 = vld [vmem:[%s6120_s2 + $0x38] sm:$0xff] }
 0xd8e   :  { %4535 = vmatpush3.msra.mxu0 %v5118_v1  ;;  %4550 = vmatpush3.msra.mxu1 %v5139_v5 }
 0xd8f   :  { %4536 = vmatprep.subr.mxu0 %v5041_v2  ;;  %4551 = vmatprep.subr.mxu1 %v5041_v2 }
 0xd90   :  { %4552 = vmatpush3.msra.mxu1 %v5153_v7  ;;  %4537 = vmatpush3.msra.mxu0 %v5130_v4 }
 0xd91   :  { %4538 = vmatprep.subr.mxu0 %v5041_v2  ;;  %4542 = vmatprep.mubr.msk.f32.mxu0 %vm5042_vm0, %v5041_v2 }
 0xd92   :  { %4539 = vmatpush3.msra.mxu0 %v5146_v6  ;;  %4567 = vmatprep.subr.mxu1 %v5041_v2 }
 0xd93   :  { %4540 = vmatprep.subr.mxu0 %v5041_v2 }
 0xd94   :  { %4541 = vmatpush3.msra.mxu0 %v5161_v8 }
 0xd95   :  { %4556 = vmatprep.subr.mxu0 %v5041_v2 }
 0xe49   :  { %v1217_v25 = vpop.f32.mrf.mxu1 }
 0xe4a   :  { %v1221_v26 = vadd.f32 %v4125_v24, %v1217_v25 }
 0xe4b   :  { %v4533_v27 = vpop.f32.mrf.mxu1 }
 0xe4c   :  { %v1222_v29 = vmul.f32 %v1221_v26, %v5198_v13 }
 0xe4d   :  { %v1123_v30 = vpop.f32.mrf.mxu0 }
 0xe4e   :  { %4891 = vtanh.f32 %v1222_v29  ;;  %v1127_v31 = vadd.f32 %v1123_v30, %v1053_v28  ;;  %v1663_v30 = vld [vmem:[%s6120_s2 + $0x30] sm:$0xff] }
 0xe4f   :  { %v4522_v32 = vpop.f32.mrf.mxu0 }
 0xe50   :  { %v1128_v33 = vmul.f32 %v1127_v31, %v5198_v13  ;;  %v1662_v32 = vld [vmem:[%s6120_s2 + $0x28] sm:$0xff] }
 0xe52   :  { %4893 = vtanh.f32 %v1128_v33  ;;  %v1661_v33 = vld [vmem:[%s6120_s2 + $0x20] sm:$0xff] }
 0xe5b   :  { %v4892_v34 = vpop.eup %4891 }
 0xe5c   :  { %1228 = vrot.lane.b32.xlu0 %v4892_v34, %s5044_s18  ;;  %v1224_v36 = vadd.f32 1.0, %v4892_v34  ;;  %v1660_v34 = vld [vmem:[%s6120_s2 + $0x18] sm:$0xff] }
 0xe5e   :  { %v1225_v37 = vmul.f32 0.5, %v1224_v36 }
 0xe5f   :  { %v4894_v35 = vpop.eup %4893 }
 0xe60   :  { %1134 = vrot.lane.b32.xlu1 %v4894_v35, %s5044_s18  ;;  %v1130_v38 = vadd.f32 1.0, %v4894_v35  ;;  %v1226_v44 = vmul.f32 %v1225_v37, %v5400_v11  ;;  %v1659_v35 = vld [vmem:[%s6120_s2 + $0x10] sm:$0xff] }
 0xe62   :  { %v1131_v41 = vmul.f32 0.5, %v1130_v38  ;;  %v1657_v38 = vld [vmem:[%s6120_s2] sm:$0xff] }
 0xe64   :  { %v1132_v47 = vmul.f32 %v1131_v41, %v5404_v15 }
 0xece   :  { %v1229_v39 = vpop.permute.xlu0 %1228 }
 0xecf   :  { %v1231_v40 = vmul.f32 %v1229_v39, %v1225_v37  ;;  %v1653_v39 = vld [vmem:[#allocation2] sm:$0xff] }
 0xed1   :  { %1233 = vrot.lane.b32.xlu0 %v1231_v40, %s5044_s18  ;;  %v4131_v40 = vld [vmem:[%s6118_s0 + $0x10] sm:$0x3] }
 0xed2   :  { %v1135_v42 = vpop.permute.xlu1 %1134 }
 0xed3   :  { %v1137_v43 = vmul.f32 %v1135_v42, %v1131_v41 }
 0xed5   :  { %1139 = vrot.lane.b32.xlu1 %v1137_v43, %s5044_s18 }
 0xf43   :  { %v1234_v45 = vpop.permute.xlu0 %1233 }
 0xf44   :  { %v5448_v46 = vadd.f32 %v1234_v45, %v1226_v44  ;;  %v1453_v44 = vld [vmem:[%s6118_s0 + $0xe] sm:$0x3] }
 0xf46   :  { %4895 = vtanh.f32 %v5448_v46 }
 0xf47   :  { %v1140_v48 = vpop.permute.xlu1 %1139 }
 0xf48   :  { %v5452_v49 = vadd.f32 %v1140_v48, %v1132_v47 }
 0xf4a   :  { %4897 = vtanh.f32 %v5452_v49 }
 0xf53   :  { %v4896_v50 = vpop.eup %4895 }
 0xf54   :  { %1239 = vrot.lane.b32.xlu0 %v4896_v50, %s5044_s18 }
 0xf57   :  { %v4898_v51 = vpop.eup %4897 }
 0xf58   :  { %1145 = vrot.lane.b32.xlu1 %v4898_v51, %s5044_s18 }
 0xfc6   :  { %v1240_v52 = vpop.permute.xlu0 %1239 }
 0xfc7   :  { %v1242_v53 = vmul.f32 %v1240_v52, %v1225_v37  ;;  %v1658_v37 = vld [vmem:[%s6120_s2 + $0x8] sm:$0xff] }
 0xfc9   :  { %1249 = vrot.lane.b32.xlu0 %v1242_v53, %s5045_s19 }
 0xfca   :  { %v1146_v54 = vpop.permute.xlu1 %1145 }
 0xfcb   :  { %v1148_v55 = vmul.f32 %v1146_v54, %v1131_v41 }
 0xfcd   :  { %1244 = vrot.lane.b32.xlu1 %v1148_v55, %s5045_s19 }
0x103b   :  { %v1250_v56 = vpop.permute.xlu0 %1249 }
0x103c   :  { %1252 = vst.msk [vmem:[#allocation2 + $0x14] sm:$0x3] %vm245_vm2, %v1250_v56  ;;  %4554 = vmatmul.mubr.msk.f32.vlgmr.msra.gmra.mxu1 %vm53_vm3, %v1250_v56 }
0x103d   :  { %4568 = vmatpush3.msra.mxu1 %v5113_v0  ;;  %4575 = vmatprep.mubr.msk.f32.mxu1 %vm5042_vm0, %v5041_v2  ;;  %v4128_v0 = vld [vmem:[%s6118_s0 + $0x12] sm:$0x3] }
0x103e   :  { %4569 = vmatprep.subr.mxu1 %v5041_v2 }
0x103f   :  { %v1245_v57 = vpop.permute.xlu1 %1244  ;;  %4570 = vmatpush3.msra.mxu1 %v5125_v3 }
0x1040   :  { %1247 = vst.msk [vmem:[#allocation2 + $0xa] sm:$0x3] %vm245_vm2, %v1245_v57  ;;  %4543 = vmatmul.mubr.msk.f32.vlgmr.msra.gmra.mxu0 %vm53_vm3, %v1245_v57  ;;  %4571 = vmatprep.subr.mxu1 %v5041_v2 }
0x1041   :  { %4572 = vmatpush3.msra.mxu1 %v5139_v5  ;;  %4557 = vmatpush3.msra.mxu0 %v5118_v1 }
0x1042   :  { %4573 = vmatprep.subr.mxu1 %v5041_v2  ;;  %4558 = vmatprep.subr.mxu0 %v5041_v2 }
0x1043   :  { %4574 = vmatpush3.msra.mxu1 %v5153_v7  ;;  %4559 = vmatpush3.msra.mxu0 %v5130_v4  ;;  %v1253_v4 = vld [vmem:[%s6118_s0 + $0xc] sm:$0x3] }
0x1044   :  { %4560 = vmatprep.subr.mxu0 %v5041_v2  ;;  %4564 = vmatprep.mubr.msk.f32.mxu0 %vm5042_vm0, %v5041_v2 }
0x1045   :  { %4561 = vmatpush3.msra.mxu0 %v5146_v6  ;;  %1787 = vmatprep.subr.mxu1 %v1664_v23 }
0x1046   :  { %4562 = vmatprep.subr.mxu0 %v5041_v2 }
0x1047   :  { %4563 = vmatpush3.msra.mxu0 %v5161_v8 }
0x10fc   :  { %v1417_v1 = vpop.f32.mrf.mxu1 }
0x10fd   :  { %v1421_v3 = vadd.f32 %v4128_v0, %v1417_v1 }
0x10fe   :  { %v4555_v5 = vpop.f32.mrf.mxu1 }
0x10ff   :  { %v1422_v7 = vmul.f32 %v1421_v3, %v5198_v13 }
0x1100   :  { %v1323_v58 = vpop.f32.mrf.mxu0 }
0x1101   :  { %4899 = vtanh.f32 %v1422_v7  ;;  %v1327_v6 = vadd.f32 %v1323_v58, %v1253_v4 }
0x1102   :  { %v4544_v59 = vpop.f32.mrf.mxu0 }
0x1103   :  { %v1328_v60 = vmul.f32 %v1327_v6, %v5198_v13 }
0x1105   :  { %4901 = vtanh.f32 %v1328_v60 }
0x110e   :  { %v4900_v8 = vpop.eup %4899 }
0x110f   :  { %1428 = vrot.lane.b32.xlu0 %v4900_v8, %s5044_s18  ;;  %v1424_v62 = vadd.f32 1.0, %v4900_v8  ;;  %v4141_v8 = vld [vmem:[%s6120_s2 + $0x78] sm:$0xff] }
0x1110   :  { %1704 = vmatprep.subr.mxu0 %v4141_v8 }
0x1111   :  { %v1425_v63 = vmul.f32 0.5, %v1424_v62  ;;  %v4139_v62 = vld [vmem:[%s6120_s2 + $0x68] sm:$0xff] }
0x1112   :  { %v4902_v61 = vpop.eup %4901 }
0x1113   :  { %1334 = vrot.lane.b32.xlu1 %v4902_v61, %s5044_s18  ;;  %v1330_v10 = vadd.f32 1.0, %v4902_v61  ;;  %v1426_v17 = vmul.f32 %v1425_v63, %v5448_v46  ;;  %v4140_v61 = vld [vmem:[%s6120_s2 + $0x70] sm:$0xff] }
0x1115   :  { %v1331_v14 = vmul.f32 0.5, %v1330_v10  ;;  %v4137_v10 = vld [vmem:[%s6120_s2 + $0x58] sm:$0xff] }
0x1117   :  { %v1332_v20 = vmul.f32 %v1331_v14, %v5452_v49 }
0x1181   :  { %v1429_v11 = vpop.permute.xlu0 %1428 }
0x1182   :  { %v1431_v12 = vmul.f32 %v1429_v11, %v1425_v63  ;;  %v4136_v11 = vld [vmem:[%s6120_s2 + $0x50] sm:$0xff] }
0x1184   :  { %1433 = vrot.lane.b32.xlu0 %v1431_v12, %s5044_s18  ;;  %v4135_v12 = vld [vmem:[%s6120_s2 + $0x48] sm:$0xff] }
0x1185   :  { %v1335_v15 = vpop.permute.xlu1 %1334 }
0x1186   :  { %v1337_v16 = vmul.f32 %v1335_v15, %v1331_v14 }
0x1188   :  { %1339 = vrot.lane.b32.xlu1 %v1337_v16, %s5044_s18 }
0x11f6   :  { %v1434_v18 = vpop.permute.xlu0 %1433 }
0x11f7   :  { %v5494_v19 = vadd.f32 %v1434_v18, %v1426_v17 }
0x11f9   :  { %4903 = vtanh.f32 %v5494_v19 }
0x11fa   :  { %v1340_v21 = vpop.permute.xlu1 %1339 }
0x11fb   :  { %v5498_v22 = vadd.f32 %v1340_v21, %v1332_v20  ;;  %v5595_v20 = vld [vmem:[%s6119_s1 + $0x70] sm:$0xff]  ;;  %v5602_v21 = vld [vmem:[%s6119_s1 + $0x68] sm:$0xff] }
0x11fd   :  { %4905 = vtanh.f32 %v5498_v22 }
0x1206   :  { %v4904_v24 = vpop.eup %4903 }
0x1207   :  { %1439 = vrot.lane.b32.xlu0 %v4904_v24, %s5044_s18 }
0x120a   :  { %v4906_v25 = vpop.eup %4905 }
0x120b   :  { %1345 = vrot.lane.b32.xlu1 %v4906_v25, %s5044_s18  ;;  %v5620_v25 = vld [vmem:[%s6119_s1 + $0x58] sm:$0xff] }
0x1279   :  { %v1440_v26 = vpop.permute.xlu0 %1439 }
0x127a   :  { %v1442_v27 = vmul.f32 %v1440_v26, %v1425_v63  ;;  %v4138_v63 = vld [vmem:[%s6120_s2 + $0x60] sm:$0xff] }
0x127c   :  { %1449 = vrot.lane.b32.xlu0 %v1442_v27, %s5045_s19  ;;  %v5626_v27 = vld [vmem:[%s6119_s1 + $0x50] sm:$0xff] }
0x127d   :  { %v1346_v28 = vpop.permute.xlu1 %1345 }
0x127e   :  { %v1348_v29 = vmul.f32 %v1346_v28, %v1331_v14  ;;  %v4134_v14 = vld [vmem:[%s6120_s2 + $0x40] sm:$0xff]  ;;  %v1656_v28 = vld [vmem:[#allocation2 + $0x18] sm:$0xff] }
0x1280   :  { %1444 = vrot.lane.b32.xlu1 %v1348_v29, %s5045_s19 }
0x12ee   :  { %v1450_v31 = vpop.permute.xlu0 %1449 }
0x12ef   :  { %1452 = vst.msk [vmem:[#allocation2 + $0x12] sm:$0x3] %vm245_vm2, %v1450_v31  ;;  %4576 = vmatmul.mubr.msk.f32.vlgmr.msra.gmra.mxu1 %vm53_vm3, %v1450_v31  ;;  %v5643_v31 = vld [vmem:[%s6119_s1 + $0x40] sm:$0xff] }
0x12f0   :  { %1788 = vmatpush1.msra.mxu1 %v1663_v30  ;;  %1827 = vmatprep.mubr.f32.mxu1 %v5041_v2  ;;  %v5635_v30 = vld [vmem:[%s6119_s1 + $0x48] sm:$0xff] }
0x12f1   :  { %1789 = vmatprep.subr.mxu1 %v1662_v32  ;;  %v1843_v32 = vshrl.u32 %v37_v9, 7 }
0x12f2   :  { %1790 = vmatpush1.msra.mxu1 %v1661_v33  ;;  %v1445_v36 = vpop.permute.xlu1 %1444 }
0x12f3   :  { %1791 = vmatprep.subr.mxu1 %v1660_v34  ;;  %1447 = vst.msk [vmem:[#allocation2 + $0xc] sm:$0x3] %vm245_vm2, %v1445_v36  ;;  %4565 = vmatmul.mubr.msk.f32.vlgmr.msra.gmra.mxu0 %vm53_vm3, %v1445_v36  ;;  %v1844_v33 = vsub.s32 0, %v1843_v32  ;;  %v1840_v34 = vld [vmem:[%s6121_s3] sm:$0x3] }
0x12f4   :  { %1792 = vmatpush1.msra.mxu1 %v1659_v35  ;;  %1744 = vmatprep.mubr.f32.mxu0 %v5041_v2  ;;  %v1848_v35 = vsub.s32 1, %v1843_v32 }
0x12f5   :  { %1793 = vmatprep.subr.mxu1 %v1658_v37  ;;  %1705 = vmatpush1.msra.mxu0 %v4140_v61  ;;  %v1845_v37 = vrot.slane %v1840_v34, %v1844_v33 }
0x12f6   :  { %1794 = vmatpush1.msra.mxu1 %v1657_v38  ;;  %1706 = vmatprep.subr.mxu0 %v4139_v62 }
0x12f7   :  { %4144 = vmatmul.mubr.msk.f32.vlgmr.msra.gmra.mxu1 %vm53_vm3, %v1653_v39  ;;  %4589 = vmatprep.subr.mxu1 %v5041_v2 }
0x12f8   :  { %1833 = vmatprep.mubr.f32.mxu1 %v5041_v2  ;;  %1707 = vmatpush1.msra.mxu0 %v4138_v63 }
0x12f9   :  { %1708 = vmatprep.subr.mxu0 %v4137_v10 }
0x12fa   :  { %1709 = vmatpush1.msra.mxu0 %v4136_v11 }
0x12fb   :  { %1710 = vmatprep.subr.mxu0 %v4135_v12 }
0x12fc   :  { %1711 = vmatpush1.msra.mxu0 %v4134_v14 }
0x12fd   :  { %4578 = vmatprep.subr.mxu0 %v5041_v2 }
0x13af   :  { %v1617_v41 = vpop.f32.mrf.mxu1 }
0x13b0   :  { %v1621_v42 = vadd.f32 %v4131_v40, %v1617_v41  ;;  %v1849_v40 = vrot.slane %v1840_v34, %v1848_v35 }
0x13b1   :  { %v4577_v43 = vpop.f32.mrf.mxu1 }
0x13b2   :  { %v1622_v45 = vmul.f32 %v1621_v42, %v5198_v13 }
0x13b3   :  { %v1523_v46 = vpop.f32.mrf.mxu0 }
0x13b4   :  { %4907 = vtanh.f32 %v1622_v45  ;;  %v1527_v47 = vadd.f32 %v1523_v46, %v1453_v44 }
0x13b5   :  { %v4566_v48 = vpop.f32.mrf.mxu0 }
0x13b6   :  { %v1528_v49 = vmul.f32 %v1527_v47, %v5198_v13 }
0x13b7   :  { %v1829_v36 = vpop.f32.mrf.mxu1 }
0x13b8   :  { %4909 = vtanh.f32 %v1528_v49 }
0x13b9   :  { %v1831_v41 = vpop.f32.mrf.mxu1 }
0x13c1   :  { %v4908_v50 = vpop.eup %4907 }
0x13c2   :  { %1628 = vrot.lane.b32.xlu0 %v4908_v50, %s5044_s18  ;;  %v1624_v52 = vadd.f32 1.0, %v4908_v50 }
0x13c4   :  { %v1625_v53 = vmul.f32 0.5, %v1624_v52 }
0x13c5   :  { %v4910_v51 = vpop.eup %4909 }
0x13c6   :  { %1534 = vrot.lane.b32.xlu1 %v4910_v51, %s5044_s18  ;;  %v1530_v54 = vadd.f32 1.0, %v4910_v51  ;;  %v1626_v3 = vmul.f32 %v1625_v53, %v5494_v19  ;;  %v5590_v19 = vld [vmem:[%s6119_s1 + $0x78] sm:$0xff] }
0x13c7   :  { %4590 = vmatpush3.msra.mxu1 %v5590_v19 }
0x13c8   :  { %v1531_v57 = vmul.f32 0.5, %v1530_v54  ;;  %4591 = vmatprep.subr.mxu1 %v5041_v2 }
0x13c9   :  { %4592 = vmatpush3.msra.mxu1 %v5595_v20 }
0x13ca   :  { %v1532_v7 = vmul.f32 %v1531_v57, %v5498_v22  ;;  %4593 = vmatprep.subr.mxu1 %v5041_v2  ;;  %v5609_v22 = vld [vmem:[%s6119_s1 + $0x60] sm:$0xff] }
0x13cb   :  { %4594 = vmatpush3.msra.mxu1 %v5602_v21 }
0x13cc   :  { %4595 = vmatprep.subr.mxu1 %v5041_v2 }
0x13cd   :  { %4596 = vmatpush3.msra.mxu1 %v5609_v22 }
0x13ce   :  { %4611 = vmatprep.subr.mxu1 %v5041_v2 }
0x1434   :  { %v1629_v55 = vpop.permute.xlu0 %1628 }
0x1435   :  { %v1631_v56 = vmul.f32 %v1629_v55, %v1625_v53 }
0x1437   :  { %1633 = vrot.lane.b32.xlu0 %v1631_v56, %s5044_s18 }
0x1438   :  { %v1535_v0 = vpop.permute.xlu1 %1534 }
0x1439   :  { %v1537_v1 = vmul.f32 %v1535_v0, %v1531_v57 }
0x143b   :  { %1539 = vrot.lane.b32.xlu1 %v1537_v1, %s5044_s18 }
0x14a9   :  { %v1634_v5 = vpop.permute.xlu0 %1633 }
0x14aa   :  { %v5551_v4 = vadd.f32 %v1634_v5, %v1626_v3 }
0x14ac   :  { %4911 = vtanh.f32 %v5551_v4 }
0x14ad   :  { %v1540_v58 = vpop.permute.xlu1 %1539 }
0x14ae   :  { %v5555_v6 = vadd.f32 %v1540_v58, %v1532_v7 }
0x14b0   :  { %4913 = vtanh.f32 %v5555_v6 }
0x14b9   :  { %v4912_v59 = vpop.eup %4911 }
0x14ba   :  { %1639 = vrot.lane.b32.xlu0 %v4912_v59, %s5044_s18 }
0x14bd   :  { %v4914_v60 = vpop.eup %4913 }
0x14be   :  { %1545 = vrot.lane.b32.xlu1 %v4914_v60, %s5044_s18 }
0x152c   :  { %v1640_v15 = vpop.permute.xlu0 %1639 }
0x152d   :  { %v1642_v16 = vmul.f32 %v1640_v15, %v1625_v53 }
0x152f   :  { %1649 = vrot.lane.b32.xlu0 %v1642_v16, %s5045_s19 }
0x1530   :  { %v1546_v17 = vpop.permute.xlu1 %1545 }
0x1531   :  { %v1548_v18 = vmul.f32 %v1546_v17, %v1531_v57 }
0x1533   :  { %1644 = vrot.lane.b32.xlu1 %v1548_v18, %s5045_s19 }
0x15a1   :  { %v1650_v23 = vpop.permute.xlu0 %1649 }
0x15a2   :  { %1652 = vst.msk [vmem:[#allocation2 + $0x10] sm:$0x3] %vm245_vm2, %v1650_v23 }
0x15a5   :  { %v1645_v24 = vpop.permute.xlu1 %1644 }
0x15a6   :  { %1647 = vst.msk [vmem:[#allocation2 + $0xe] sm:$0x3] %vm245_vm2, %v1645_v24 }
0x15a9   :  { %v1655_v26 = vld [vmem:[#allocation2 + $0x10] sm:$0xff] }
0x15aa   :  { %4142 = vmatmul.mubr.msk.f32.vlgmr.msra.gmra.mxu0 %vm53_vm3, %v1655_v26 }
0x15ab   :  { %1750 = vmatprep.mubr.f32.mxu0 %v5041_v2  ;;  %4579 = vmatpush3.msra.mxu0 %v5620_v25 }
0x15ac   :  { %4580 = vmatprep.subr.mxu0 %v5041_v2 }
0x15ad   :  { %v1654_v29 = vld [vmem:[#allocation2 + $0x8] sm:$0xff]  ;;  %4581 = vmatpush3.msra.mxu0 %v5626_v27 }
0x15ae   :  { %4143 = vmatmul.mubr.msk.f32.gmra.mxu0 %vm53_vm3, %v1656_v28  ;;  %4145 = vmatmul.mubr.msk.f32.gmra.mxu1 %vm53_vm3, %v1654_v29 }
0x15af   :  { %4582 = vmatprep.subr.mxu0 %v5041_v2  ;;  %4586 = vmatprep.mubr.msk.f32.mxu0 %vm5042_vm0, %v5041_v2 }
0x15b0   :  { %4583 = vmatpush3.msra.mxu0 %v5635_v30  ;;  %4597 = vmatprep.mubr.msk.f32.mxu1 %vm5042_vm0, %v5041_v2 }
0x15b1   :  { %4584 = vmatprep.subr.mxu0 %v5041_v2 }
0x15b2   :  { %4585 = vmatpush3.msra.mxu0 %v5643_v31  ;;  %4598 = vmatmul.mubr.f32.vlgmr.msra.gmra.mxu1 %v5041_v2 }
0x15b3   :  { %4587 = vmatmul.mubr.f32.vlgmr.msra.gmra.mxu0 %v5041_v2  ;;  %4600 = vmatprep.subr.mxu0 %v5041_v2 }
0x15b4   :  { %4601 = vmatpush3.msra.mxu0 %v5620_v25  ;;  %4608 = vmatprep.mubr.msk.f32.mxu0 %vm5042_vm0, %v5041_v2 }
0x15b5   :  { %4602 = vmatprep.subr.mxu0 %v5041_v2  ;;  %4612 = vmatpush3.msra.mxu1 %v5590_v19 }
0x15b6   :  { %4603 = vmatpush3.msra.mxu0 %v5626_v27  ;;  %4613 = vmatprep.subr.mxu1 %v5041_v2 }
0x15b7   :  { %4604 = vmatprep.subr.mxu0 %v5041_v2  ;;  %4614 = vmatpush3.msra.mxu1 %v5595_v20 }
0x15b8   :  { %4605 = vmatpush3.msra.mxu0 %v5635_v30  ;;  %4615 = vmatprep.subr.mxu1 %v5041_v2 }
0x15b9   :  { %4606 = vmatprep.subr.mxu0 %v5041_v2  ;;  %4616 = vmatpush3.msra.mxu1 %v5602_v21 }
0x15ba   :  { %4607 = vmatpush3.msra.mxu0 %v5643_v31  ;;  %4617 = vmatprep.subr.mxu1 %v5041_v2 }
0x15bb   :  { %4618 = vmatpush3.msra.mxu1 %v5609_v22  ;;  %4619 = vmatprep.mubr.msk.f32.mxu1 %vm5042_vm0, %v5041_v2 }
0x15bc   :  { %4622 = vmatprep.subr.mxu0 %v5041_v2  ;;  %4633 = vmatprep.subr.mxu1 %v5041_v2 }
0x166a   :  { %v1746_v38 = vpop.f32.mrf.mxu0 }
0x166b   :  { %v1830_v39 = vadd.f32 %v1829_v36, %v1746_v38 }
0x166c   :  { %v1748_v42 = vpop.f32.mrf.mxu0 }
0x166d   :  { %v1852_v43 = vadd.f32 %v1845_v37, %v1830_v39  ;;  %v1832_v44 = vadd.f32 %v1831_v41, %v1748_v42 }
0x166e   :  { %v1752_v45 = vpop.f32.mrf.mxu0  ;;  %v1835_v46 = vpop.f32.mrf.mxu1 }
0x166f   :  { %1856 = vst [vmem:[#allocation3] sm:$0xff] %v1852_v43  ;;  %v1853_v47 = vadd.f32 %v1849_v40, %v1832_v44  ;;  %v1836_v9 = vadd.f32 %v1835_v46, %v1752_v45 }
0x1670   :  { %v1754_v48 = vpop.f32.mrf.mxu0  ;;  %v1837_v49 = vpop.f32.mrf.mxu1 }
0x1671   :  { %1859 = vst [vmem:[#allocation3 + $0x10] sm:$0xff] %v1853_v47  ;;  %v1854_v50 = vadd.f32 %v1845_v37, %v1836_v9  ;;  %v1838_v51 = vadd.f32 %v1837_v49, %v1754_v48 }
0x1672   :  { %v2031_v52 = vpop.f32.mrf.mxu1 }
0x1673   :  { %1857 = vst [vmem:[#allocation3 + $0x8] sm:$0xff] %v1854_v50  ;;  %v1855_v53 = vadd.f32 %v1849_v40, %v1838_v51  ;;  %v1939_v54 = vpop.f32.mrf.mxu0 }
0x1674   :  { %v4599_v55 = vpop.f32.mrf.mxu1 }
0x1675   :  { %1860 = vst [vmem:[#allocation3 + $0x18] sm:$0xff] %v1855_v53  ;;  %v4588_v56 = vpop.f32.mrf.mxu0 }
0x1676   :  { %v1871_v57 = vld [vmem:[#allocation3] sm:$0x3]  ;;  %v2057_v36 = vld [vmem:[#allocation3 + $0x2] sm:$0x3] }
0x1677   :  { %v1943_v0 = vadd.f32 %v1939_v54, %v1871_v57 }
0x1679   :  { %v1944_v1 = vmul.f32 %v1943_v0, %v5198_v13 }
0x167b   :  { %4915 = vtanh.f32 %v1944_v1 }
0x167c   :  { %v1872_v3 = vld [vmem:[#allocation3 + $0x1e] sm:$0x3]  ;;  %v2058_v41 = vld [vmem:[#allocation3 + $0x1c] sm:$0x3] }
0x167d   :  { %v2035_v5 = vadd.f32 %v2031_v52, %v1872_v3 }
0x167f   :  { %v2036_v7 = vmul.f32 %v2035_v5, %v5198_v13 }
0x1681   :  { %4917 = vtanh.f32 %v2036_v7 }
0x1688   :  { %v4916_v58 = vpop.eup %4915 }
0x1689   :  { %1950 = vrot.lane.b32.xlu0 %v4916_v58, %s5044_s18  ;;  %v1946_v60 = vadd.f32 1.0, %v4916_v58 }
0x168b   :  { %v1947_v8 = vmul.f32 0.5, %v1946_v60 }
0x168d   :  { %v1948_v14 = vmul.f32 0.0, %v1947_v8 }
0x168e   :  { %v4918_v59 = vpop.eup %4917 }
0x168f   :  { %2042 = vrot.lane.b32.xlu1 %v4918_v59, %s5044_s18  ;;  %v2038_v63 = vadd.f32 1.0, %v4918_v59 }
0x1691   :  { %v2039_v10 = vmul.f32 0.5, %v2038_v63  ;;  %v2253_v63 = vld [vmem:[#allocation3 + $0x4] sm:$0x3] }
0x1693   :  { %v2040_v17 = vmul.f32 0.0, %v2039_v10 }
0x16fb   :  { %v1951_v61 = vpop.permute.xlu0 %1950 }
0x16fc   :  { %v1953_v62 = vmul.f32 %v1951_v61, %v1947_v8 }
0x16fe   :  { %1955 = vrot.lane.b32.xlu0 %v1953_v62, %s5044_s18 }
0x1701   :  { %v2043_v11 = vpop.permute.xlu1 %2042 }
0x1702   :  { %v2045_v12 = vmul.f32 %v2043_v11, %v2039_v10 }
0x1704   :  { %2047 = vrot.lane.b32.xlu1 %v2045_v12, %s5044_s18 }
0x1770   :  { %v1956_v15 = vpop.permute.xlu0 %1955 }
0x1771   :  { %v5685_v16 = vadd.f32 %v1956_v15, %v1948_v14  ;;  %v2254_v15 = vld [vmem:[#allocation3 + $0x1a] sm:$0x3] }
0x1773   :  { %4919 = vtanh.f32 %v5685_v16 }
0x1776   :  { %v2048_v18 = vpop.permute.xlu1 %2047 }
0x1777   :  { %v5688_v23 = vadd.f32 %v2048_v18, %v2040_v17 }
0x1779   :  { %4921 = vtanh.f32 %v5688_v23 }
0x1780   :  { %v4920_v24 = vpop.eup %4919 }
0x1781   :  { %1961 = vrot.lane.b32.xlu0 %v4920_v24, %s5044_s18 }
0x1786   :  { %v4922_v26 = vpop.eup %4921 }
0x1787   :  { %2053 = vrot.lane.b32.xlu1 %v4922_v26, %s5044_s18 }
0x17f3   :  { %v1962_v28 = vpop.permute.xlu0 %1961 }
0x17f4   :  { %v1964_v29 = vmul.f32 %v1962_v28, %v1947_v8 }
0x17f6   :  { %2060 = vrot.lane.b32.xlu0 %v1964_v29, %s5045_s19 }
0x17f9   :  { %v2054_v32 = vpop.permute.xlu1 %2053 }
0x17fa   :  { %v2056_v33 = vmul.f32 %v2054_v32, %v2039_v10 }
0x17fc   :  { %2157 = vrot.lane.b32.xlu1 %v2056_v33, %s5045_s19 }
0x1868   :  { %v2061_v34 = vpop.permute.xlu0 %2060 }
0x1869   :  { %4609 = vmatmul.mubr.msk.f32.vlgmr.msra.gmra.mxu0 %vm53_vm3, %v2061_v34 }
0x186a   :  { %4623 = vmatpush3.msra.mxu0 %v5620_v25  ;;  %4630 = vmatprep.mubr.msk.f32.mxu0 %vm5042_vm0, %v5041_v2 }
0x186b   :  { %4624 = vmatprep.subr.mxu0 %v5041_v2 }
0x186c   :  { %4625 = vmatpush3.msra.mxu0 %v5626_v27 }
0x186d   :  { %4626 = vmatprep.subr.mxu0 %v5041_v2 }
0x186e   :  { %v2158_v35 = vpop.permute.xlu1 %2157  ;;  %4627 = vmatpush3.msra.mxu0 %v5635_v30 }
0x186f   :  { %4620 = vmatmul.mubr.msk.f32.vlgmr.msra.gmra.mxu1 %vm53_vm3, %v2158_v35  ;;  %4628 = vmatprep.subr.mxu0 %v5041_v2 }
0x1870   :  { %4629 = vmatpush3.msra.mxu0 %v5643_v31  ;;  %4634 = vmatpush3.msra.mxu1 %v5590_v19 }
0x1871   :  { %4635 = vmatprep.subr.mxu1 %v5041_v2  ;;  %4641 = vmatprep.mubr.msk.f32.mxu1 %vm5042_vm0, %v5041_v2 }
0x1872   :  { %4636 = vmatpush3.msra.mxu1 %v5595_v20  ;;  %4644 = vmatprep.subr.mxu0 %v5041_v2 }
0x1873   :  { %4637 = vmatprep.subr.mxu1 %v5041_v2 }
0x1874   :  { %4638 = vmatpush3.msra.mxu1 %v5602_v21 }
0x1875   :  { %4639 = vmatprep.subr.mxu1 %v5041_v2 }
0x1876   :  { %4640 = vmatpush3.msra.mxu1 %v5609_v22 }
0x1877   :  { %4655 = vmatprep.subr.mxu1 %v5041_v2 }
0x1929   :  { %v2130_v37 = vpop.f32.mrf.mxu0 }
0x192a   :  { %v2134_v38 = vadd.f32 %v2130_v37, %v2057_v36 }
0x192b   :  { %v4610_v39 = vpop.f32.mrf.mxu0 }
0x192c   :  { %v2135_v40 = vmul.f32 %v2134_v38, %v5198_v13 }
0x192e   :  { %4923 = vtanh.f32 %v2135_v40 }
0x192f   :  { %v2227_v42 = vpop.f32.mrf.mxu1 }
0x1930   :  { %v2231_v43 = vadd.f32 %v2227_v42, %v2058_v41 }
0x1931   :  { %v4621_v44 = vpop.f32.mrf.mxu1 }
0x1932   :  { %v2232_v45 = vmul.f32 %v2231_v43, %v5198_v13 }
0x1934   :  { %4925 = vtanh.f32 %v2232_v45 }
0x193b   :  { %v4924_v46 = vpop.eup %4923 }
0x193c   :  { %2141 = vrot.lane.b32.xlu0 %v4924_v46, %s5044_s18  ;;  %v2137_v9 = vadd.f32 1.0, %v4924_v46 }
0x193e   :  { %v2138_v48 = vmul.f32 0.5, %v2137_v9 }
0x1940   :  { %v2139_v55 = vmul.f32 %v2138_v48, %v5685_v16 }
0x1941   :  { %v4926_v47 = vpop.eup %4925 }
0x1942   :  { %2238 = vrot.lane.b32.xlu1 %v4926_v47, %s5044_s18  ;;  %v2234_v51 = vadd.f32 1.0, %v4926_v47 }
0x1944   :  { %v2235_v52 = vmul.f32 0.5, %v2234_v51  ;;  %v2449_v51 = vld [vmem:[#allocation3 + $0x6] sm:$0x3] }
0x1946   :  { %v2236_v0 = vmul.f32 %v2235_v52, %v5688_v23 }
0x19ae   :  { %v2142_v49 = vpop.permute.xlu0 %2141 }
0x19af   :  { %v2144_v50 = vmul.f32 %v2142_v49, %v2138_v48 }
0x19b1   :  { %2146 = vrot.lane.b32.xlu0 %v2144_v50, %s5044_s18 }
0x19b4   :  { %v2239_v53 = vpop.permute.xlu1 %2238 }
0x19b5   :  { %v2241_v54 = vmul.f32 %v2239_v53, %v2235_v52 }
0x19b7   :  { %2243 = vrot.lane.b32.xlu1 %v2241_v54, %s5044_s18 }
0x1a23   :  { %v2147_v56 = vpop.permute.xlu0 %2146 }
0x1a24   :  { %v5724_v57 = vadd.f32 %v2147_v56, %v2139_v55  ;;  %v2450_v56 = vld [vmem:[#allocation3 + $0x18] sm:$0x3] }
0x1a26   :  { %4927 = vtanh.f32 %v5724_v57 }
0x1a29   :  { %v2244_v1 = vpop.permute.xlu1 %2243 }
0x1a2a   :  { %v5728_v3 = vadd.f32 %v2244_v1, %v2236_v0 }
0x1a2c   :  { %4929 = vtanh.f32 %v5728_v3 }
0x1a33   :  { %v4928_v5 = vpop.eup %4927 }
0x1a34   :  { %2152 = vrot.lane.b32.xlu0 %v4928_v5, %s5044_s18 }
0x1a39   :  { %v4930_v7 = vpop.eup %4929 }
0x1a3a   :  { %2249 = vrot.lane.b32.xlu1 %v4930_v7, %s5044_s18 }
0x1aa6   :  { %v2153_v58 = vpop.permute.xlu0 %2152 }
0x1aa7   :  { %v2155_v59 = vmul.f32 %v2153_v58, %v2138_v48 }
0x1aa9   :  { %2256 = vrot.lane.b32.xlu0 %v2155_v59, %s5045_s19 }
0x1aac   :  { %v2250_v60 = vpop.permute.xlu1 %2249 }
0x1aad   :  { %v2252_v8 = vmul.f32 %v2250_v60, %v2235_v52 }
0x1aaf   :  { %2353 = vrot.lane.b32.xlu1 %v2252_v8, %s5045_s19 }
0x1b1b   :  { %v2257_v61 = vpop.permute.xlu0 %2256 }
0x1b1c   :  { %4631 = vmatmul.mubr.msk.f32.vlgmr.msra.gmra.mxu0 %vm53_vm3, %v2257_v61 }
0x1b1d   :  { %4645 = vmatpush3.msra.mxu0 %v5620_v25  ;;  %4652 = vmatprep.mubr.msk.f32.mxu0 %vm5042_vm0, %v5041_v2 }
0x1b1e   :  { %4646 = vmatprep.subr.mxu0 %v5041_v2 }
0x1b1f   :  { %4647 = vmatpush3.msra.mxu0 %v5626_v27 }
0x1b20   :  { %4648 = vmatprep.subr.mxu0 %v5041_v2 }
0x1b21   :  { %v2354_v62 = vpop.permute.xlu1 %2353  ;;  %4649 = vmatpush3.msra.mxu0 %v5635_v30 }
0x1b22   :  { %4642 = vmatmul.mubr.msk.f32.vlgmr.msra.gmra.mxu1 %vm53_vm3, %v2354_v62  ;;  %4650 = vmatprep.subr.mxu0 %v5041_v2 }
0x1b23   :  { %4651 = vmatpush3.msra.mxu0 %v5643_v31  ;;  %4656 = vmatpush3.msra.mxu1 %v5590_v19 }
0x1b24   :  { %4657 = vmatprep.subr.mxu1 %v5041_v2  ;;  %4663 = vmatprep.mubr.msk.f32.mxu1 %vm5042_vm0, %v5041_v2 }
0x1b25   :  { %4658 = vmatpush3.msra.mxu1 %v5595_v20  ;;  %4666 = vmatprep.subr.mxu0 %v5041_v2 }
0x1b26   :  { %4659 = vmatprep.subr.mxu1 %v5041_v2 }
0x1b27   :  { %4660 = vmatpush3.msra.mxu1 %v5602_v21 }
0x1b28   :  { %4661 = vmatprep.subr.mxu1 %v5041_v2 }
0x1b29   :  { %4662 = vmatpush3.msra.mxu1 %v5609_v22 }
0x1b2a   :  { %4677 = vmatprep.subr.mxu1 %v5041_v2 }
0x1bdc   :  { %v2326_v10 = vpop.f32.mrf.mxu0 }
0x1bdd   :  { %v2330_v11 = vadd.f32 %v2326_v10, %v2253_v63 }
0x1bde   :  { %v4632_v12 = vpop.f32.mrf.mxu0 }
0x1bdf   :  { %v2331_v14 = vmul.f32 %v2330_v11, %v5198_v13 }
0x1be1   :  { %4931 = vtanh.f32 %v2331_v14 }
0x1be2   :  { %v2423_v16 = vpop.f32.mrf.mxu1 }
0x1be3   :  { %v2427_v17 = vadd.f32 %v2423_v16, %v2254_v15 }
0x1be4   :  { %v4643_v18 = vpop.f32.mrf.mxu1 }
0x1be5   :  { %v2428_v23 = vmul.f32 %v2427_v17, %v5198_v13 }
0x1be7   :  { %4933 = vtanh.f32 %v2428_v23 }
0x1bee   :  { %v4932_v24 = vpop.eup %4931 }
0x1bef   :  { %2337 = vrot.lane.b32.xlu0 %v4932_v24, %s5044_s18  ;;  %v2333_v28 = vadd.f32 1.0, %v4932_v24 }
0x1bf1   :  { %v2334_v29 = vmul.f32 0.5, %v2333_v28 }
0x1bf3   :  { %v2335_v38 = vmul.f32 %v2334_v29, %v5724_v57 }
0x1bf4   :  { %v4934_v26 = vpop.eup %4933 }
0x1bf5   :  { %2434 = vrot.lane.b32.xlu1 %v4934_v26, %s5044_s18  ;;  %v2430_v34 = vadd.f32 1.0, %v4934_v26 }
0x1bf7   :  { %v2431_v35 = vmul.f32 0.5, %v2430_v34  ;;  %v2645_v34 = vld [vmem:[#allocation3 + $0x8] sm:$0x3] }
0x1bf9   :  { %v2432_v41 = vmul.f32 %v2431_v35, %v5728_v3 }
0x1c61   :  { %v2338_v32 = vpop.permute.xlu0 %2337 }
0x1c62   :  { %v2340_v33 = vmul.f32 %v2338_v32, %v2334_v29 }
0x1c64   :  { %2342 = vrot.lane.b32.xlu0 %v2340_v33, %s5044_s18 }
0x1c67   :  { %v2435_v36 = vpop.permute.xlu1 %2434 }
0x1c68   :  { %v2437_v37 = vmul.f32 %v2435_v36, %v2431_v35 }
0x1c6a   :  { %2439 = vrot.lane.b32.xlu1 %v2437_v37, %s5044_s18 }
0x1cd6   :  { %v2343_v39 = vpop.permute.xlu0 %2342 }
0x1cd7   :  { %v5764_v40 = vadd.f32 %v2343_v39, %v2335_v38  ;;  %v2646_v39 = vld [vmem:[#allocation3 + $0x16] sm:$0x3] }
0x1cd9   :  { %4935 = vtanh.f32 %v5764_v40 }
0x1cdc   :  { %v2440_v42 = vpop.permute.xlu1 %2439 }
0x1cdd   :  { %v5768_v43 = vadd.f32 %v2440_v42, %v2432_v41 }
0x1cdf   :  { %4937 = vtanh.f32 %v5768_v43 }
0x1ce6   :  { %v4936_v44 = vpop.eup %4935 }
0x1ce7   :  { %2348 = vrot.lane.b32.xlu0 %v4936_v44, %s5044_s18 }
0x1cec   :  { %v4938_v45 = vpop.eup %4937 }
0x1ced   :  { %2445 = vrot.lane.b32.xlu1 %v4938_v45, %s5044_s18 }
0x1d59   :  { %v2349_v46 = vpop.permute.xlu0 %2348 }
0x1d5a   :  { %v2351_v47 = vmul.f32 %v2349_v46, %v2334_v29 }
0x1d5c   :  { %2452 = vrot.lane.b32.xlu0 %v2351_v47, %s5045_s19 }
0x1d5f   :  { %v2446_v9 = vpop.permute.xlu1 %2445 }
0x1d60   :  { %v2448_v48 = vmul.f32 %v2446_v9, %v2431_v35 }
0x1d62   :  { %2549 = vrot.lane.b32.xlu1 %v2448_v48, %s5045_s19 }
0x1dce   :  { %v2453_v49 = vpop.permute.xlu0 %2452 }
0x1dcf   :  { %4653 = vmatmul.mubr.msk.f32.vlgmr.msra.gmra.mxu0 %vm53_vm3, %v2453_v49 }
0x1dd0   :  { %4667 = vmatpush3.msra.mxu0 %v5620_v25  ;;  %4674 = vmatprep.mubr.msk.f32.mxu0 %vm5042_vm0, %v5041_v2 }
0x1dd1   :  { %4668 = vmatprep.subr.mxu0 %v5041_v2 }
0x1dd2   :  { %4669 = vmatpush3.msra.mxu0 %v5626_v27 }
0x1dd3   :  { %4670 = vmatprep.subr.mxu0 %v5041_v2 }
0x1dd4   :  { %v2550_v50 = vpop.permute.xlu1 %2549  ;;  %4671 = vmatpush3.msra.mxu0 %v5635_v30 }
0x1dd5   :  { %4664 = vmatmul.mubr.msk.f32.vlgmr.msra.gmra.mxu1 %vm53_vm3, %v2550_v50  ;;  %4672 = vmatprep.subr.mxu0 %v5041_v2 }
0x1dd6   :  { %4673 = vmatpush3.msra.mxu0 %v5643_v31  ;;  %4678 = vmatpush3.msra.mxu1 %v5590_v19 }
0x1dd7   :  { %4679 = vmatprep.subr.mxu1 %v5041_v2  ;;  %4685 = vmatprep.mubr.msk.f32.mxu1 %vm5042_vm0, %v5041_v2 }
0x1dd8   :  { %4680 = vmatpush3.msra.mxu1 %v5595_v20  ;;  %4688 = vmatprep.subr.mxu0 %v5041_v2 }
0x1dd9   :  { %4681 = vmatprep.subr.mxu1 %v5041_v2 }
0x1dda   :  { %4682 = vmatpush3.msra.mxu1 %v5602_v21 }
0x1ddb   :  { %4683 = vmatprep.subr.mxu1 %v5041_v2 }
0x1ddc   :  { %4684 = vmatpush3.msra.mxu1 %v5609_v22 }
0x1ddd   :  { %4699 = vmatprep.subr.mxu1 %v5041_v2 }
0x1e8f   :  { %v2522_v52 = vpop.f32.mrf.mxu0 }
0x1e90   :  { %v2526_v53 = vadd.f32 %v2522_v52, %v2449_v51 }
0x1e91   :  { %v4654_v54 = vpop.f32.mrf.mxu0 }
0x1e92   :  { %v2527_v55 = vmul.f32 %v2526_v53, %v5198_v13 }
0x1e94   :  { %4939 = vtanh.f32 %v2527_v55 }
0x1e95   :  { %v2619_v57 = vpop.f32.mrf.mxu1 }
0x1e96   :  { %v2623_v0 = vadd.f32 %v2619_v57, %v2450_v56 }
0x1e97   :  { %v4665_v1 = vpop.f32.mrf.mxu1 }
0x1e98   :  { %v2624_v3 = vmul.f32 %v2623_v0, %v5198_v13 }
0x1e9a   :  { %4941 = vtanh.f32 %v2624_v3 }
0x1ea1   :  { %v4940_v5 = vpop.eup %4939 }
0x1ea2   :  { %2533 = vrot.lane.b32.xlu0 %v4940_v5, %s5044_s18  ;;  %v2529_v58 = vadd.f32 1.0, %v4940_v5 }
0x1ea4   :  { %v2530_v59 = vmul.f32 0.5, %v2529_v58 }
0x1ea6   :  { %v2531_v11 = vmul.f32 %v2530_v59, %v5764_v40 }
0x1ea7   :  { %v4942_v7 = vpop.eup %4941 }
0x1ea8   :  { %2630 = vrot.lane.b32.xlu1 %v4942_v7, %s5044_s18  ;;  %v2626_v61 = vadd.f32 1.0, %v4942_v7 }
0x1eaa   :  { %v2627_v62 = vmul.f32 0.5, %v2626_v61  ;;  %v2841_v61 = vld [vmem:[#allocation3 + $0xa] sm:$0x3] }
0x1eac   :  { %v2628_v15 = vmul.f32 %v2627_v62, %v5768_v43 }
0x1f14   :  { %v2534_v60 = vpop.permute.xlu0 %2533 }
0x1f15   :  { %v2536_v8 = vmul.f32 %v2534_v60, %v2530_v59 }
0x1f17   :  { %2538 = vrot.lane.b32.xlu0 %v2536_v8, %s5044_s18 }
0x1f1a   :  { %v2631_v63 = vpop.permute.xlu1 %2630 }
0x1f1b   :  { %v2633_v10 = vmul.f32 %v2631_v63, %v2627_v62 }
0x1f1d   :  { %2635 = vrot.lane.b32.xlu1 %v2633_v10, %s5044_s18 }
0x1f89   :  { %v2539_v12 = vpop.permute.xlu0 %2538 }
0x1f8a   :  { %v5804_v14 = vadd.f32 %v2539_v12, %v2531_v11  ;;  %v2842_v12 = vld [vmem:[#allocation3 + $0x14] sm:$0x3] }
0x1f8c   :  { %4943 = vtanh.f32 %v5804_v14 }
0x1f8f   :  { %v2636_v16 = vpop.permute.xlu1 %2635 }
0x1f90   :  { %v5808_v17 = vadd.f32 %v2636_v16, %v2628_v15 }
0x1f92   :  { %4945 = vtanh.f32 %v5808_v17 }
0x1f99   :  { %v4944_v18 = vpop.eup %4943 }
0x1f9a   :  { %2544 = vrot.lane.b32.xlu0 %v4944_v18, %s5044_s18 }
0x1f9f   :  { %v4946_v23 = vpop.eup %4945 }
0x1fa0   :  { %2641 = vrot.lane.b32.xlu1 %v4946_v23, %s5044_s18 }
0x200c   :  { %v2545_v24 = vpop.permute.xlu0 %2544 }
0x200d   :  { %v2547_v26 = vmul.f32 %v2545_v24, %v2530_v59 }
0x200f   :  { %2648 = vrot.lane.b32.xlu0 %v2547_v26, %s5045_s19 }
0x2012   :  { %v2642_v28 = vpop.permute.xlu1 %2641 }
0x2013   :  { %v2644_v29 = vmul.f32 %v2642_v28, %v2627_v62 }
0x2015   :  { %2745 = vrot.lane.b32.xlu1 %v2644_v29, %s5045_s19 }
0x2081   :  { %v2649_v32 = vpop.permute.xlu0 %2648 }
0x2082   :  { %4675 = vmatmul.mubr.msk.f32.vlgmr.msra.gmra.mxu0 %vm53_vm3, %v2649_v32 }
0x2083   :  { %4689 = vmatpush3.msra.mxu0 %v5620_v25  ;;  %4696 = vmatprep.mubr.msk.f32.mxu0 %vm5042_vm0, %v5041_v2 }
0x2084   :  { %4690 = vmatprep.subr.mxu0 %v5041_v2 }
0x2085   :  { %4691 = vmatpush3.msra.mxu0 %v5626_v27 }
0x2086   :  { %4692 = vmatprep.subr.mxu0 %v5041_v2 }
0x2087   :  { %v2746_v33 = vpop.permute.xlu1 %2745  ;;  %4693 = vmatpush3.msra.mxu0 %v5635_v30 }
0x2088   :  { %4686 = vmatmul.mubr.msk.f32.vlgmr.msra.gmra.mxu1 %vm53_vm3, %v2746_v33  ;;  %4694 = vmatprep.subr.mxu0 %v5041_v2 }
0x2089   :  { %4695 = vmatpush3.msra.mxu0 %v5643_v31  ;;  %4700 = vmatpush3.msra.mxu1 %v5590_v19 }
0x208a   :  { %4701 = vmatprep.subr.mxu1 %v5041_v2  ;;  %4707 = vmatprep.mubr.msk.f32.mxu1 %vm5042_vm0, %v5041_v2 }
0x208b   :  { %4702 = vmatpush3.msra.mxu1 %v5595_v20  ;;  %4710 = vmatprep.subr.mxu0 %v5041_v2 }
0x208c   :  { %4703 = vmatprep.subr.mxu1 %v5041_v2 }
0x208d   :  { %4704 = vmatpush3.msra.mxu1 %v5602_v21 }
0x208e   :  { %4705 = vmatprep.subr.mxu1 %v5041_v2 }
0x208f   :  { %4706 = vmatpush3.msra.mxu1 %v5609_v22 }
0x2090   :  { %4721 = vmatprep.subr.mxu1 %v5041_v2 }
0x2142   :  { %v2718_v35 = vpop.f32.mrf.mxu0 }
0x2143   :  { %v2722_v36 = vadd.f32 %v2718_v35, %v2645_v34 }
0x2144   :  { %v4676_v37 = vpop.f32.mrf.mxu0 }
0x2145   :  { %v2723_v38 = vmul.f32 %v2722_v36, %v5198_v13 }
0x2147   :  { %4947 = vtanh.f32 %v2723_v38 }
0x2148   :  { %v2815_v40 = vpop.f32.mrf.mxu1 }
0x2149   :  { %v2819_v41 = vadd.f32 %v2815_v40, %v2646_v39 }
0x214a   :  { %v4687_v42 = vpop.f32.mrf.mxu1 }
0x214b   :  { %v2820_v43 = vmul.f32 %v2819_v41, %v5198_v13 }
0x214d   :  { %4949 = vtanh.f32 %v2820_v43 }
0x2154   :  { %v4948_v44 = vpop.eup %4947 }
0x2155   :  { %2729 = vrot.lane.b32.xlu0 %v4948_v44, %s5044_s18  ;;  %v2725_v46 = vadd.f32 1.0, %v4948_v44 }
0x2157   :  { %v2726_v47 = vmul.f32 0.5, %v2725_v46 }
0x2159   :  { %v2727_v53 = vmul.f32 %v2726_v47, %v5804_v14 }
0x215a   :  { %v4950_v45 = vpop.eup %4949 }
0x215b   :  { %2826 = vrot.lane.b32.xlu1 %v4950_v45, %s5044_s18  ;;  %v2822_v49 = vadd.f32 1.0, %v4950_v45 }
0x215d   :  { %v2823_v50 = vmul.f32 0.5, %v2822_v49 }
0x215f   :  { %v2824_v56 = vmul.f32 %v2823_v50, %v5808_v17 }
0x21c7   :  { %v2730_v9 = vpop.permute.xlu0 %2729 }
0x21c8   :  { %v2732_v48 = vmul.f32 %v2730_v9, %v2726_v47 }
0x21ca   :  { %2734 = vrot.lane.b32.xlu0 %v2732_v48, %s5044_s18 }
0x21cd   :  { %v2827_v51 = vpop.permute.xlu1 %2826 }
0x21ce   :  { %v2829_v52 = vmul.f32 %v2827_v51, %v2823_v50 }
0x21d0   :  { %2831 = vrot.lane.b32.xlu1 %v2829_v52, %s5044_s18 }
0x223c   :  { %v2735_v54 = vpop.permute.xlu0 %2734 }
0x223d   :  { %v5844_v55 = vadd.f32 %v2735_v54, %v2727_v53 }
0x223f   :  { %4951 = vtanh.f32 %v5844_v55 }
0x2242   :  { %v2832_v57 = vpop.permute.xlu1 %2831 }
0x2243   :  { %v5848_v0 = vadd.f32 %v2832_v57, %v2824_v56 }
0x2245   :  { %4953 = vtanh.f32 %v5848_v0 }
0x224c   :  { %v4952_v1 = vpop.eup %4951 }
0x224d   :  { %2740 = vrot.lane.b32.xlu0 %v4952_v1, %s5044_s18 }
0x2252   :  { %v4954_v3 = vpop.eup %4953 }
0x2253   :  { %2837 = vrot.lane.b32.xlu1 %v4954_v3, %s5044_s18 }
0x22bf   :  { %v2741_v5 = vpop.permute.xlu0 %2740 }
0x22c0   :  { %v2743_v7 = vmul.f32 %v2741_v5, %v2726_v47 }
0x22c2   :  { %2844 = vrot.lane.b32.xlu0 %v2743_v7, %s5045_s19 }
0x22c5   :  { %v2838_v58 = vpop.permute.xlu1 %2837 }
0x22c6   :  { %v2840_v59 = vmul.f32 %v2838_v58, %v2823_v50 }
0x22c8   :  { %2941 = vrot.lane.b32.xlu1 %v2840_v59, %s5045_s19 }
0x2334   :  { %v2845_v60 = vpop.permute.xlu0 %2844 }
0x2335   :  { %4697 = vmatmul.mubr.msk.f32.vlgmr.msra.gmra.mxu0 %vm53_vm3, %v2845_v60 }
0x2336   :  { %4711 = vmatpush3.msra.mxu0 %v5620_v25  ;;  %4718 = vmatprep.mubr.msk.f32.mxu0 %vm5042_vm0, %v5041_v2 }
0x2337   :  { %4712 = vmatprep.subr.mxu0 %v5041_v2 }
0x2338   :  { %4713 = vmatpush3.msra.mxu0 %v5626_v27 }
0x2339   :  { %4714 = vmatprep.subr.mxu0 %v5041_v2 }
0x233a   :  { %v2942_v8 = vpop.permute.xlu1 %2941  ;;  %4715 = vmatpush3.msra.mxu0 %v5635_v30 }
0x233b   :  { %4708 = vmatmul.mubr.msk.f32.vlgmr.msra.gmra.mxu1 %vm53_vm3, %v2942_v8  ;;  %4716 = vmatprep.subr.mxu0 %v5041_v2 }
0x233c   :  { %4717 = vmatpush3.msra.mxu0 %v5643_v31  ;;  %4722 = vmatpush3.msra.mxu1 %v5590_v19 }
0x233d   :  { %4723 = vmatprep.subr.mxu1 %v5041_v2  ;;  %4729 = vmatprep.mubr.msk.f32.mxu1 %vm5042_vm0, %v5041_v2 }
0x233e   :  { %4724 = vmatpush3.msra.mxu1 %v5595_v20  ;;  %4732 = vmatprep.subr.mxu0 %v5041_v2 }
0x233f   :  { %4725 = vmatprep.subr.mxu1 %v5041_v2 }
0x2340   :  { %4726 = vmatpush3.msra.mxu1 %v5602_v21 }
0x2341   :  { %4727 = vmatprep.subr.mxu1 %v5041_v2 }
0x2342   :  { %4728 = vmatpush3.msra.mxu1 %v5609_v22 }
0x2343   :  { %4743 = vmatprep.subr.mxu1 %v5041_v2 }
0x23f5   :  { %v2914_v62 = vpop.f32.mrf.mxu0 }
0x23f6   :  { %v2918_v63 = vadd.f32 %v2914_v62, %v2841_v61 }
0x23f7   :  { %v4698_v10 = vpop.f32.mrf.mxu0 }
0x23f8   :  { %v2919_v11 = vmul.f32 %v2918_v63, %v5198_v13 }
0x23fa   :  { %4955 = vtanh.f32 %v2919_v11 }
0x23fb   :  { %v3011_v14 = vpop.f32.mrf.mxu1 }
0x23fc   :  { %v3015_v15 = vadd.f32 %v3011_v14, %v2842_v12 }
0x23fd   :  { %v4709_v16 = vpop.f32.mrf.mxu1 }
0x23fe   :  { %v3016_v17 = vmul.f32 %v3015_v15, %v5198_v13  ;;  %v3233_v16 = vld [vmem:[#allocation3 + $0xe] sm:$0x3] }
0x2400   :  { %4957 = vtanh.f32 %v3016_v17 }
0x2407   :  { %v4956_v18 = vpop.eup %4955 }
0x2408   :  { %2925 = vrot.lane.b32.xlu0 %v4956_v18, %s5044_s18  ;;  %v2921_v24 = vadd.f32 1.0, %v4956_v18 }
0x240a   :  { %v2922_v26 = vmul.f32 0.5, %v2921_v24 }
0x240c   :  { %v2923_v36 = vmul.f32 %v2922_v26, %v5844_v55 }
0x240d   :  { %v4958_v23 = vpop.eup %4957 }
0x240e   :  { %3022 = vrot.lane.b32.xlu1 %v4958_v23, %s5044_s18  ;;  %v3018_v32 = vadd.f32 1.0, %v4958_v23 }
0x2410   :  { %v3019_v33 = vmul.f32 0.5, %v3018_v32 }
0x2412   :  { %v3020_v39 = vmul.f32 %v3019_v33, %v5848_v0 }
0x247a   :  { %v2926_v28 = vpop.permute.xlu0 %2925 }
0x247b   :  { %v2928_v29 = vmul.f32 %v2926_v28, %v2922_v26 }
0x247d   :  { %2930 = vrot.lane.b32.xlu0 %v2928_v29, %s5044_s18 }
0x2480   :  { %v3023_v34 = vpop.permute.xlu1 %3022 }
0x2481   :  { %v3025_v35 = vmul.f32 %v3023_v34, %v3019_v33 }
0x2483   :  { %3027 = vrot.lane.b32.xlu1 %v3025_v35, %s5044_s18  ;;  %v3422_v35 = vld [vmem:[%s6122_s4 + $0x18] sm:$0xff] }
0x24ef   :  { %v2931_v37 = vpop.permute.xlu0 %2930 }
0x24f0   :  { %v5884_v38 = vadd.f32 %v2931_v37, %v2923_v36  ;;  %v3508_v36 = vld [vmem:[%s6123_s5 + $0x18] sm:$0xff]  ;;  %v3421_v37 = vld [vmem:[%s6122_s4 + $0x10] sm:$0xff] }
0x24f2   :  { %4959 = vtanh.f32 %v5884_v38 }
0x24f5   :  { %v3028_v40 = vpop.permute.xlu1 %3027 }
0x24f6   :  { %v5888_v41 = vadd.f32 %v3028_v40, %v3020_v39  ;;  %v3420_v39 = vld [vmem:[%s6122_s4 + $0x8] sm:$0xff] }
0x24f7   :  { %v3506_v40 = vld [vmem:[%s6123_s5 + $0x8] sm:$0xff] }
0x24f8   :  { %4961 = vtanh.f32 %v5888_v41 }
0x24ff   :  { %v4960_v42 = vpop.eup %4959 }
0x2500   :  { %2936 = vrot.lane.b32.xlu0 %v4960_v42, %s5044_s18  ;;  %v3505_v42 = vld [vmem:[%s6123_s5] sm:$0xff] }
0x2505   :  { %v4962_v43 = vpop.eup %4961 }
0x2506   :  { %3033 = vrot.lane.b32.xlu1 %v4962_v43, %s5044_s18 }
0x2572   :  { %v2937_v44 = vpop.permute.xlu0 %2936 }
0x2573   :  { %v2939_v45 = vmul.f32 %v2937_v44, %v2922_v26  ;;  %v3234_v26 = vld [vmem:[#allocation3 + $0x10] sm:$0x3] }
0x2575   :  { %3040 = vrot.lane.b32.xlu0 %v2939_v45, %s5045_s19 }
0x2578   :  { %v3034_v46 = vpop.permute.xlu1 %3033 }
0x2579   :  { %v3036_v47 = vmul.f32 %v3034_v46, %v3019_v33 }
0x257b   :  { %3137 = vrot.lane.b32.xlu1 %v3036_v47, %s5045_s19 }
0x25e7   :  { %v3041_v9 = vpop.permute.xlu0 %3040 }
0x25e8   :  { %4719 = vmatmul.mubr.msk.f32.vlgmr.msra.gmra.mxu0 %vm53_vm3, %v3041_v9 }
0x25e9   :  { %4733 = vmatpush3.msra.mxu0 %v5620_v25  ;;  %4740 = vmatprep.mubr.msk.f32.mxu0 %vm5042_vm0, %v5041_v2 }
0x25ea   :  { %4734 = vmatprep.subr.mxu0 %v5041_v2 }
0x25eb   :  { %4735 = vmatpush3.msra.mxu0 %v5626_v27 }
0x25ec   :  { %4736 = vmatprep.subr.mxu0 %v5041_v2 }
0x25ed   :  { %v3138_v48 = vpop.permute.xlu1 %3137  ;;  %4737 = vmatpush3.msra.mxu0 %v5635_v30 }
0x25ee   :  { %4730 = vmatmul.mubr.msk.f32.vlgmr.msra.gmra.mxu1 %vm53_vm3, %v3138_v48  ;;  %4738 = vmatprep.subr.mxu0 %v5041_v2 }
0x25ef   :  { %4739 = vmatpush3.msra.mxu0 %v5643_v31  ;;  %4744 = vmatpush3.msra.mxu1 %v5590_v19  ;;  %v3037_v19 = vld [vmem:[#allocation3 + $0xc] sm:$0x3] }
0x25f0   :  { %4745 = vmatprep.subr.mxu1 %v5041_v2  ;;  %4751 = vmatprep.mubr.msk.f32.mxu1 %vm5042_vm0, %v5041_v2 }
0x25f1   :  { %4746 = vmatpush3.msra.mxu1 %v5595_v20  ;;  %4754 = vmatprep.subr.mxu0 %v5041_v2  ;;  %v3038_v20 = vld [vmem:[#allocation3 + $0x12] sm:$0x3] }
0x25f2   :  { %4747 = vmatprep.subr.mxu1 %v5041_v2 }
0x25f3   :  { %4748 = vmatpush3.msra.mxu1 %v5602_v21 }
0x25f4   :  { %4749 = vmatprep.subr.mxu1 %v5041_v2 }
0x25f5   :  { %4750 = vmatpush3.msra.mxu1 %v5609_v22 }
0x25f6   :  { %4765 = vmatprep.subr.mxu1 %v5041_v2 }
0x26a8   :  { %v3110_v25 = vpop.f32.mrf.mxu0 }
0x26a9   :  { %v3114_v27 = vadd.f32 %v3110_v25, %v3037_v19 }
0x26aa   :  { %v4720_v30 = vpop.f32.mrf.mxu0 }
0x26ab   :  { %v3115_v31 = vmul.f32 %v3114_v27, %v5198_v13 }
0x26ad   :  { %4963 = vtanh.f32 %v3115_v31  ;;  %v4175_v31 = vld [vmem:[%s6122_s4 + $0x38] sm:$0xff] }
0x26ae   :  { %v3207_v49 = vpop.f32.mrf.mxu1 }
0x26af   :  { %v3211_v50 = vadd.f32 %v3207_v49, %v3038_v20  ;;  %v4180_v20 = vld [vmem:[%s6123_s5 + $0x38] sm:$0xff] }
0x26b0   :  { %v4731_v51 = vpop.f32.mrf.mxu1 }
0x26b1   :  { %v3212_v52 = vmul.f32 %v3211_v50, %v5198_v13  ;;  %v4179_v50 = vld [vmem:[%s6123_s5 + $0x30] sm:$0xff] }
0x26b3   :  { %4965 = vtanh.f32 %v3212_v52 }
0x26ba   :  { %v4964_v21 = vpop.eup %4963 }
0x26bb   :  { %3121 = vrot.lane.b32.xlu0 %v4964_v21, %s5044_s18  ;;  %v3117_v53 = vadd.f32 1.0, %v4964_v21  ;;  %v4173_v21 = vld [vmem:[%s6122_s4 + $0x28] sm:$0xff] }
0x26bd   :  { %v3118_v54 = vmul.f32 0.5, %v3117_v53  ;;  %v4172_v53 = vld [vmem:[%s6122_s4 + $0x20] sm:$0xff] }
0x26bf   :  { %v3119_v5 = vmul.f32 %v3118_v54, %v5884_v38 }
0x26c0   :  { %v4966_v22 = vpop.eup %4965 }
0x26c1   :  { %3218 = vrot.lane.b32.xlu1 %v4966_v22, %s5044_s18  ;;  %v3214_v57 = vadd.f32 1.0, %v4966_v22  ;;  %v4178_v22 = vld [vmem:[%s6123_s5 + $0x28] sm:$0xff] }
0x26c3   :  { %v3215_v0 = vmul.f32 0.5, %v3214_v57  ;;  %v4190_v57 = vld [vmem:[%s6123_s5 + $0x58] sm:$0xff] }
0x26c5   :  { %v3216_v59 = vmul.f32 %v3215_v0, %v5888_v41  ;;  %v3419_v41 = vld [vmem:[%s6122_s4] sm:$0xff] }
0x272d   :  { %v3122_v55 = vpop.permute.xlu0 %3121 }
0x272e   :  { %v3124_v56 = vmul.f32 %v3122_v55, %v3118_v54 }
0x2730   :  { %3126 = vrot.lane.b32.xlu0 %v3124_v56, %s5044_s18  ;;  %v4185_v56 = vld [vmem:[%s6122_s4 + $0x58] sm:$0xff] }
0x2733   :  { %v3219_v1 = vpop.permute.xlu1 %3218 }
0x2734   :  { %v3221_v3 = vmul.f32 %v3219_v1, %v3215_v0  ;;  %v4189_v1 = vld [vmem:[%s6123_s5 + $0x50] sm:$0xff] }
0x2736   :  { %3223 = vrot.lane.b32.xlu1 %v3221_v3, %s5044_s18  ;;  %v4183_v3 = vld [vmem:[%s6122_s4 + $0x48] sm:$0xff] }
0x27a2   :  { %v3127_v7 = vpop.permute.xlu0 %3126 }
0x27a3   :  { %v5924_v58 = vadd.f32 %v3127_v7, %v3119_v5  ;;  %v4188_v5 = vld [vmem:[%s6123_s5 + $0x48] sm:$0xff]  ;;  %v4182_v7 = vld [vmem:[%s6122_s4 + $0x40] sm:$0xff] }
0x27a5   :  { %4967 = vtanh.f32 %v5924_v58 }
0x27a8   :  { %v3224_v60 = vpop.permute.xlu1 %3223 }
0x27a9   :  { %v5928_v8 = vadd.f32 %v3224_v60, %v3216_v59  ;;  %v4195_v59 = vld [vmem:[%s6122_s4 + $0x78] sm:$0xff] }
0x27aa   :  { %v4200_v60 = vld [vmem:[%s6123_s5 + $0x78] sm:$0xff] }
0x27ab   :  { %4969 = vtanh.f32 %v5928_v8 }
0x27b2   :  { %v4968_v61 = vpop.eup %4967 }
0x27b3   :  { %3132 = vrot.lane.b32.xlu0 %v4968_v61, %s5044_s18  ;;  %v4194_v61 = vld [vmem:[%s6122_s4 + $0x70] sm:$0xff] }
0x27b8   :  { %v4970_v62 = vpop.eup %4969 }
0x27b9   :  { %3229 = vrot.lane.b32.xlu1 %v4970_v62, %s5044_s18  ;;  %v4199_v62 = vld [vmem:[%s6123_s5 + $0x70] sm:$0xff] }
0x2825   :  { %v3133_v63 = vpop.permute.xlu0 %3132 }
0x2826   :  { %v3135_v10 = vmul.f32 %v3133_v63, %v3118_v54  ;;  %v4177_v54 = vld [vmem:[%s6123_s5 + $0x20] sm:$0xff]  ;;  %v4193_v63 = vld [vmem:[%s6122_s4 + $0x68] sm:$0xff] }
0x2828   :  { %3236 = vrot.lane.b32.xlu0 %v3135_v10, %s5045_s19  ;;  %v4198_v10 = vld [vmem:[%s6123_s5 + $0x68] sm:$0xff] }
0x282b   :  { %v3230_v11 = vpop.permute.xlu1 %3229 }
0x282c   :  { %v3232_v12 = vmul.f32 %v3230_v11, %v3215_v0  ;;  %v4184_v0 = vld [vmem:[%s6122_s4 + $0x50] sm:$0xff]  ;;  %v4192_v11 = vld [vmem:[%s6122_s4 + $0x60] sm:$0xff] }
0x282e   :  { %3327 = vrot.lane.b32.xlu1 %v3232_v12, %s5045_s19  ;;  %v4197_v12 = vld [vmem:[%s6123_s5 + $0x60] sm:$0xff] }
0x289a   :  { %v3237_v14 = vpop.permute.xlu0 %3236 }
0x289b   :  { %4741 = vmatmul.mubr.msk.f32.vlgmr.msra.gmra.mxu0 %vm53_vm3, %v3237_v14 }
0x289c   :  { %4762 = vmatprep.mubr.msk.f32.mxu0 %vm5042_vm0, %v5041_v2  ;;  %4755 = vmatpush3.msra.mxu0 %v3422_v35 }
0x289d   :  { %4756 = vmatprep.subr.mxu0 %v5041_v2 }
0x289e   :  { %4757 = vmatpush3.msra.mxu0 %v3421_v37 }
0x289f   :  { %4758 = vmatprep.subr.mxu0 %v5041_v2 }
0x28a0   :  { %v3328_v15 = vpop.permute.xlu1 %3327  ;;  %4759 = vmatpush3.msra.mxu0 %v3420_v39 }
0x28a1   :  { %4752 = vmatmul.mubr.msk.f32.vlgmr.msra.gmra.mxu1 %vm53_vm3, %v3328_v15  ;;  %4760 = vmatprep.subr.mxu0 %v5041_v2 }
0x28a2   :  { %4773 = vmatprep.mubr.msk.f32.mxu1 %vm5042_vm0, %v5041_v2  ;;  %4766 = vmatpush3.msra.mxu1 %v3508_v36 }
0x28a3   :  { %4767 = vmatprep.subr.mxu1 %v5041_v2  ;;  %4761 = vmatpush3.msra.mxu0 %v3419_v41 }
0x28a4   :  { %4776 = vmatprep.subr.mxu0 %v5041_v2 }
0x295b   :  { %v3306_v17 = vpop.f32.mrf.mxu0 }
0x295c   :  { %v3310_v18 = vadd.f32 %v3306_v17, %v3233_v16 }
0x295d   :  { %v4742_v23 = vpop.f32.mrf.mxu0 }
0x295e   :  { %v3311_v24 = vmul.f32 %v3310_v18, %v5198_v13  ;;  %v4169_v23 = vld [vmem:[%s6124_s6] ss:$0 sm:$0xff] }
0x2960   :  { %4971 = vtanh.f32 %v3311_v24  ;;  %v4171_v24 = vld [vmem:[%s6125_s7] ss:$0 sm:$0xff] }
0x2961   :  { %v3397_v28 = vpop.f32.mrf.mxu1 }
0x2962   :  { %v3401_v29 = vadd.f32 %v3397_v28, %v3234_v26 }
0x2963   :  { %v4753_v32 = vpop.f32.mrf.mxu1 }
0x2964   :  { %v3402_v33 = vmul.f32 %v3401_v29, %v5198_v13  ;;  %v3507_v13 = vld [vmem:[%s6123_s5 + $0x10] sm:$0xff] }
0x2965   :  { %4768 = vmatpush3.msra.mxu1 %v3507_v13 }
0x2966   :  { %4973 = vtanh.f32 %v3402_v33  ;;  %4769 = vmatprep.subr.mxu1 %v5041_v2 }
0x2967   :  { %4770 = vmatpush3.msra.mxu1 %v3506_v40 }
0x2968   :  { %4771 = vmatprep.subr.mxu1 %v5041_v2 }
0x2969   :  { %4772 = vmatpush3.msra.mxu1 %v3505_v42 }
0x296a   :  { %4787 = vmatprep.subr.mxu1 %v5041_v2 }
0x296d   :  { %v4972_v34 = vpop.eup %4971 }
0x296e   :  { %3317 = vrot.lane.b32.xlu0 %v4972_v34, %s5044_s18  ;;  %v3313_v43 = vadd.f32 1.0, %v4972_v34 }
0x2970   :  { %v3314_v44 = vmul.f32 0.5, %v3313_v43 }
0x2972   :  { %v3315_v25 = vmul.f32 %v3314_v44, %v5924_v58  ;;  %v4187_v58 = vld [vmem:[%s6123_s5 + $0x40] sm:$0xff] }
0x2973   :  { %v4974_v38 = vpop.eup %4973 }
0x2974   :  { %3408 = vrot.lane.b32.xlu1 %v4974_v38, %s5044_s18  ;;  %v3404_v47 = vadd.f32 1.0, %v4974_v38 }
0x2976   :  { %v3405_v9 = vmul.f32 0.5, %v3404_v47 }
0x29e0   :  { %v3318_v45 = vpop.permute.xlu0 %3317 }
0x29e1   :  { %v3320_v46 = vmul.f32 %v3318_v45, %v3314_v44 }
0x29e3   :  { %3322 = vrot.lane.b32.xlu0 %v3320_v46, %s5044_s18 }
0x29e6   :  { %v3409_v48 = vpop.permute.xlu1 %3408 }
0x29e7   :  { %v3411_v19 = vmul.f32 %v3409_v48, %v3405_v9  ;;  %3424 = vrot.lane.b32.xlu0 %v5555_v6, %s5046_s21  ;;  %v4174_v6 = vld [vmem:[%s6122_s4 + $0x30] sm:$0xff] }
0x29e9   :  { %3413 = vrot.lane.b32.xlu1 %v3411_v19, %s5044_s18  ;;  %s5047_s18 = smov [#allocation6]  }
0x29ea   :  { %s4083_s25 = sshll.u32 %s5047_s18, 4  ;;  %s4084_s25 = int_to_ptr.vmem [resolvable:$true] %s4083_s25 }
0x29eb   :  { %s4977_s6 = scalar_lea.vmem %s4084_s25, 32  ;;  %p4982_p1 = scmp.lt.s32.totalorder %s4084_s25, %s4084_s25 }
0x29ec   :  { %p4978_p0 = scmp.ne.s32.totalorder %s4084_s25, %s4977_s6  ;;  %p4983_p2 = scmp.lt.s32.totalorder %s4977_s6, %s4977_s6 }
0x29ed   :  { %3592 = vrot.lane.b32.xlu1 %v5551_v4, %s5046_s21  ;;  %v3406_v4 = vmul.f32 %v3405_v9, %v5928_v8 }
0x29ee   :  { %p4984_p3 = por %p4983_p2, %p4982_p1 }
0x29f0   :  { %p4985_p4 = pnand %p4984_p3, %p4978_p0 }
0x2a55   :  { %v3323_v27 = vpop.permute.xlu0 %3322 }
0x2a56   :  { %v3325_v30 = vadd.f32 %v3323_v27, %v3315_v25 }
0x2a58   :  { %3749 = vrot.lane.b32.xlu0 %v3325_v30, %s5046_s21 }
0x2a59   :  { %v3425_v49 = vpop.permute.xlu0 %3424 }
0x2a5a   :  { %4763 = vmatmul.mubr.msk.f32.vlgmr.msra.gmra.mxu0 %vm53_vm3, %v3425_v49  ;;  %4774 = vmatmul.mubr.msk.f32.vlgmr.msra.gmra.mxu1 %vm53_vm3, %v3425_v49 }
0x2a5b   :  { %4777 = vmatpush3.msra.mxu0 %v4175_v31  ;;  %4788 = vmatpush3.msra.mxu1 %v4180_v20  ;;  %v3414_v51 = vpop.permute.xlu1 %3413 }
0x2a5c   :  { %v3416_v52 = vadd.f32 %v3414_v51, %v3406_v4  ;;  %4778 = vmatprep.subr.mxu0 %v5041_v2  ;;  %4789 = vmatprep.subr.mxu1 %v5041_v2 }
0x2a5d   :  { %4779 = vmatpush3.msra.mxu0 %v4174_v6  ;;  %4790 = vmatpush3.msra.mxu1 %v4179_v50 }
0x2a5e   :  { %4780 = vmatprep.subr.mxu0 %v5041_v2  ;;  %4791 = vmatprep.subr.mxu1 %v5041_v2 }
0x2a5f   :  { %3906 = vrot.lane.b32.xlu1 %v3416_v52, %s5046_s21  ;;  %4781 = vmatpush3.msra.mxu0 %v4173_v21  ;;  %v3593_v55 = vpop.permute.xlu1 %3592 }
0x2a60   :  { %4792 = vmatpush3.msra.mxu1 %v4178_v22  ;;  %4782 = vmatprep.subr.mxu0 %v5041_v2 }
0x2a61   :  { %4793 = vmatprep.subr.mxu1 %v5041_v2  ;;  %4783 = vmatpush3.msra.mxu0 %v4172_v53 }
0x2a62   :  { %4784 = vmatprep.mubr.msk.f32.mxu0 %vm5042_vm0, %v5041_v2  ;;  %4794 = vmatpush3.msra.mxu1 %v4177_v54 }
0x2a63   :  { %4795 = vmatprep.mubr.msk.f32.mxu1 %vm5042_vm0, %v5041_v2  ;;  %4785 = vmatmul.mubr.msk.f32.vlgmr.msra.gmra.mxu0 %vm53_vm3, %v3593_v55 }
0x2a64   :  { %4796 = vmatmul.mubr.msk.f32.vlgmr.msra.gmra.mxu1 %vm53_vm3, %v3593_v55  ;;  %4798 = vmatprep.subr.mxu0 %v5041_v2 }
0x2a65   :  { %4809 = vmatprep.subr.mxu1 %v5041_v2  ;;  %4799 = vmatpush3.msra.mxu0 %v4185_v56 }
0x2a66   :  { %4810 = vmatpush3.msra.mxu1 %v4190_v57  ;;  %4800 = vmatprep.subr.mxu0 %v5041_v2 }
0x2a67   :  { %4811 = vmatprep.subr.mxu1 %v5041_v2  ;;  %4801 = vmatpush3.msra.mxu0 %v4184_v0 }
0x2a68   :  { %4812 = vmatpush3.msra.mxu1 %v4189_v1  ;;  %4802 = vmatprep.subr.mxu0 %v5041_v2 }
0x2a69   :  { %4813 = vmatprep.subr.mxu1 %v5041_v2  ;;  %4803 = vmatpush3.msra.mxu0 %v4183_v3 }
0x2a6a   :  { %4814 = vmatpush3.msra.mxu1 %v4188_v5  ;;  %4804 = vmatprep.subr.mxu0 %v5041_v2 }
0x2a6b   :  { %4815 = vmatprep.subr.mxu1 %v5041_v2  ;;  %4805 = vmatpush3.msra.mxu0 %v4182_v7 }
0x2a6c   :  { %4816 = vmatpush3.msra.mxu1 %v4187_v58  ;;  %4806 = vmatprep.mubr.msk.f32.mxu0 %vm5042_vm0, %v5041_v2 }
0x2a6d   :  { %4817 = vmatprep.mubr.msk.f32.mxu1 %vm5042_vm0, %v5041_v2  ;;  %4820 = vmatprep.subr.mxu0 %v5041_v2 }
0x2a6e   :  { %4831 = vmatprep.subr.mxu1 %v5041_v2 }
0x2aca   :  { %v3750_v8 = vpop.permute.xlu0 %3749 }
0x2acb   :  { %4807 = vmatmul.mubr.msk.f32.vlgmr.msra.gmra.mxu0 %vm53_vm3, %v3750_v8  ;;  %4818 = vmatmul.mubr.msk.f32.vlgmr.msra.gmra.mxu1 %vm53_vm3, %v3750_v8 }
0x2acc   :  { %4821 = vmatpush3.msra.mxu0 %v4195_v59  ;;  %4832 = vmatpush3.msra.mxu1 %v4200_v60 }
0x2acd   :  { %4822 = vmatprep.subr.mxu0 %v5041_v2  ;;  %4833 = vmatprep.subr.mxu1 %v5041_v2 }
0x2ace   :  { %4823 = vmatpush3.msra.mxu0 %v4194_v61  ;;  %4834 = vmatpush3.msra.mxu1 %v4199_v62 }
0x2acf   :  { %4824 = vmatprep.subr.mxu0 %v5041_v2  ;;  %4835 = vmatprep.subr.mxu1 %v5041_v2 }
0x2ad0   :  { %4825 = vmatpush3.msra.mxu0 %v4193_v63  ;;  %4836 = vmatpush3.msra.mxu1 %v4198_v10 }
0x2ad1   :  { %v3907_v14 = vpop.permute.xlu1 %3906  ;;  %4826 = vmatprep.subr.mxu0 %v5041_v2  ;;  %4837 = vmatprep.subr.mxu1 %v5041_v2 }
0x2ad2   :  { %4827 = vmatpush3.msra.mxu0 %v4192_v11  ;;  %4828 = vmatprep.mubr.msk.f32.mxu0 %vm5042_vm0, %v5041_v2 }
0x2ad3   :  { %4838 = vmatpush3.msra.mxu1 %v4197_v12  ;;  %4839 = vmatprep.mubr.msk.f32.mxu1 %vm5042_vm0, %v5041_v2 }
0x2ad4   :  { %4829 = vmatmul.mubr.msk.f32.vlgmr.msra.gmra.mxu0 %vm53_vm3, %v3907_v14  ;;  %4840 = vmatmul.mubr.msk.f32.vlgmr.msra.gmra.mxu1 %vm53_vm3, %v3907_v14 }
0x2b1a   :  { %v3494_v15 = vpop.f32.mrf.mxu0  ;;  %v3575_v16 = vpop.f32.mrf.mxu1 }
0x2b1b   :  { %v3504_v26 = vadd.f32 %v4169_v23, %v3494_v15  ;;  %v3585_v28 = vadd.f32 %v4171_v24, %v3575_v16 }
0x2b1c   :  { %v4764_v17 = vpop.f32.mrf.mxu0  ;;  %v4775_v18 = vpop.f32.mrf.mxu1 }
0x2b23   :  { %v3662_v29 = vpop.f32.mrf.mxu0 }
0x2b24   :  { %v3666_v2 = vadd.f32 %v3662_v29, %v3504_v26  ;;  %v3738_v32 = vpop.f32.mrf.mxu1 }
0x2b25   :  { %v3742_v33 = vadd.f32 %v3738_v32, %v3585_v28  ;;  %v4786_v34 = vpop.f32.mrf.mxu0 }
0x2b26   :  { %v4797_v35 = vpop.f32.mrf.mxu1 }
0x2b8b   :  { %v3819_v36 = vpop.f32.mrf.mxu0  ;;  %v3895_v37 = vpop.f32.mrf.mxu1 }
0x2b8c   :  { %v3823_v39 = vadd.f32 %v3819_v36, %v3666_v2  ;;  %v3899_v40 = vadd.f32 %v3895_v37, %v3742_v33 }
0x2b8d   :  { %v4808_v13 = vpop.f32.mrf.mxu0  ;;  %v4819_v38 = vpop.f32.mrf.mxu1 }
0x2b94   :  { %v3976_v41 = vpop.f32.mrf.mxu0  ;;  %v4052_v42 = vpop.f32.mrf.mxu1 }
0x2b95   :  { %v3980_v43 = vadd.f32 %v3976_v41, %v3823_v39  ;;  %v4056_v44 = vadd.f32 %v4052_v42, %v3899_v40 }
0x2b96   :  { %v4830_v45 = vpop.f32.mrf.mxu0  ;;  %v4841_v46 = vpop.f32.mrf.mxu1 }
0x2b97   :  { %v4057_v47 = vmul.f32 0.5, %v4056_v44  ;;  %4061 = vst.msk [vmem:[#allocation6] sm:$0x3] %vm4060_vm4, %v3980_v43 }
0x2b98   :  { %4988 = shalt.err (!%p4985_p4)
}
0x2b99   :  { %4086 = dma.vmem_to_hbm [thread:$0]  %s4084_s25, 32, %s6128_s10, [#allocation7]   ;;  %v4058_v9 = vmul.f32 1.442695, %v4057_v47  ;;  %v4063_v48 = vld [vmem:[%s6126_s8] sm:$0x3] }
0x2b9a   :  { %s5048_s19 = smov [#allocation8]   ;;  %s5049_s29 = smov [#allocation4]  }
0x2b9b   :  { %4975 = vpow2.f32 %v4058_v9  ;;  %s4093_s26 = sshll.u32 %s5048_s19, 4  ;;  %s4073_s0 = sshll.u32 %s5049_s29, 4  ;;  %s4094_s26 = int_to_ptr.vmem [resolvable:$true] %s4093_s26  ;;  %s4074_s0 = int_to_ptr.vmem [resolvable:$true] %s4073_s0 }
0x2b9c   :  { %s4997_s2 = scalar_lea.vmem %s4094_s26, 32  ;;  %p5002_p6 = scmp.lt.s32.totalorder %s4094_s26, %s4094_s26 }
0x2b9d   :  { %p4998_p5 = scmp.ne.s32.totalorder %s4094_s26, %s4997_s2  ;;  %p5003_p7 = scmp.lt.s32.totalorder %s4997_s2, %s4997_s2 }
0x2b9f   :  { %p5004_p8 = por %p5003_p7, %p5002_p6 }
0x2ba1   :  { %p5005_p9 = pnand %p5004_p8, %p4998_p5 }
0x2ba8   :  { %v4976_v19 = vpop.eup %4975 }
0x2ba9   :  { %4062 = vst.msk [vmem:[#allocation8] sm:$0x3] %vm4060_vm4, %v4976_v19  ;;  %v4064_v25 = vmul.f32 %v4976_v19, %v4063_v48 }
0x2baa   :  { %5008 = shalt.err (!%p5005_p9)
}
0x2bab   :  { %4096 = dma.vmem_to_hbm [thread:$0]  %s4094_s26, 32, %s6129_s11, [#allocation7]   ;;  %v4065_v27 = vadd.f32 %v4064_v25, %v3980_v43 }
0x2bac   :  { %s5017_s8 = scalar_lea.vmem %s4074_s0, 32  ;;  %p5022_p11 = scmp.lt.s32.totalorder %s4074_s0, %s4074_s0 }
0x2bad   :  { %4066 = vst.msk [vmem:[#allocation4] sm:$0x3] %vm4060_vm4, %v4065_v27  ;;  %p5018_p10 = scmp.ne.s32.totalorder %s4074_s0, %s5017_s8  ;;  %p5023_p12 = scmp.lt.s32.totalorder %s5017_s8, %s5017_s8 }
0x2baf   :  { %p5024_p13 = por %p5023_p12, %p5022_p11 }
0x2bb1   :  { %p5025_p0 = pnand %p5024_p13, %p5018_p10 }
0x2bb3   :  { %5028 = shalt.err (!%p5025_p0)
}
0x2bb4   :  { %4076 = dma.vmem_to_hbm [thread:$0]  %s4074_s0, 32, %s6127_s9, [#allocation5]  }
0x2bb5   :  { %5037 = dma.done.wait [#allocation5], 32  }
0x2bb6   :  { %5038 = vsyncadd [#allocation5], 4294967264 }
0x2bb7   :  { %5039 = dma.done.wait [#allocation7], 64  }
0x2bb8   :  { %5040 = vsyncadd [#allocation7], 4294967232 }
0x2bb9   :  { %4106 = vsyncpa [#allocation5], 1 }
0x2bba   :  { %4107 = vsyncpa [#allocation7], 1 }

</bundles_post_ra>
